<compile_context>
chip_gen: v6e
topology: v6e:2x2x1
jax: 0.10.0
libtpu: 0.0.40
codegen_flags: <defaults>
</compile_context>

<pallas_src>
import jax
import jax.numpy as jnp
from jax.experimental import pallas as pl
from jax.experimental.pallas import tpu as pltpu


def _pick_pool_batch_block(n, per_image_bytes, budget=2 * 1024 * 1024):
    """Largest divisor of n that fits the VMEM budget, keeping grid >= 2 when possible."""
    best = 1
    for cand in range(1, n + 1):
        if n % cand:
            continue
        if cand * per_image_bytes > budget:
            continue
        if (n // cand) < min(2, n):        # keep >= 2 grid steps for v7x megacore
            continue
        best = cand
    return best


def basic_stem_forward(x_nchw, w_oihw, gamma, beta, running_mean, running_var,
                       eps=1e-5, out_dtype=jnp.bfloat16):
    N, Cin, H, W = x_nchw.shape
    Cout, _, KH, KW = w_oihw.shape
    stride, pad = 2, 3
    Ho = (H + 2 * pad - KH) // stride + 1
    Wo = (W + 2 * pad - KW) // stride + 1
    M = Ho * Wo                                  # output pixels / image (lane axis)
    Hrows = Ho + 3                               # parity rows covering the 7-tap halo
    Le = Hrows * Wo                              # flat parity-plane length per image
    K1 = KW * Cin                                # taps per ky row (21)
    Kg = K1 + (K1 & 1)                           # per-ky group, even row count (22)
    K = KH * Kg                                  # 154
    Kp = ((K + 15) // 16) * 16                   # 160: clean bf16 (16,128) tiling

    # -------- glue 1: kx-expansion + row-parity split (only ~1.8x input volume) -----
    xh = jnp.transpose(x_nchw, (0, 2, 3, 1)).astype(jnp.bfloat16)
    xp = jnp.pad(xh, ((0, 0), (pad, pad), (pad, pad), (0, 0)))      # (N, H+6, W+6, Cin)

    def build_q(xpp):
        # xpp: one row-parity plane of the padded input, (N, rows, W+6, Cin)
        r = xpp.shape[1]
        if r < Hrows:
            xpp = jnp.pad(xpp, ((0, 0), (0, Hrows - r), (0, 0), (0, 0)))
        else:
            xpp = xpp[:, :Hrows]
        cols = [xpp[:, :, kx:kx + 2 * (Wo - 1) + 1:2, :] for kx in range(KW)]
        q = jnp.stack(cols, axis=0)                    # (KW, N, Hrows, Wo, Cin)
        q = jnp.transpose(q, (1, 0, 4, 2, 3))          # (N, KW, Cin, Hrows, Wo)
        q = q.reshape(N, K1, Le)
        return jnp.pad(q, ((0, 0), (0, Kg - K1), (0, 0)))           # (N, Kg, Le)

    q_even = build_q(xp[:, 0::2])                      # even padded-input rows
    q_odd = build_q(xp[:, 1::2])                       # odd  padded-input rows

    # -------- weights / BN(eval) folding: bf16 weights, f32 scale+shift epilogue ----
    w_t = jnp.transpose(w_oihw, (0, 2, 3, 1)).reshape(Cout, KH, K1)
    w_t = jnp.pad(w_t, ((0, 0), (0, 0), (0, Kg - K1))).reshape(Cout, K)
    w_t = jnp.pad(w_t, ((0, 0), (0, Kp - K))).astype(jnp.bfloat16)  # (Cout, Kp)

    scale = (gamma / jnp.sqrt(running_var + eps)).reshape(Cout, 1).astype(jnp.float32)
    shift = (beta.reshape(Cout, 1)
             - running_mean.reshape(Cout, 1) * scale).astype(jnp.float32)

    # -------- Pallas kernel 1: fused im2col + conv-as-matmul + BN + ReLU ------------
    def conv_kernel(w_ref, s_ref, b_ref, qe_ref, qo_ref, o_ref, p_ref):
        # Assemble the (Kp, M) patch matrix in VMEM: one contiguous lane-offset
        # slice of a row-parity plane per vertical tap ky (fused im2col).
        for ky in range(KH):
            a = ky // 2
            src = qe_ref if ky % 2 == 0 else qo_ref
            p_ref[ky * Kg:(ky + 1) * Kg, :] = src[0, :, a * Wo:a * Wo + M]
        if Kp > KH * Kg:
            p_ref[KH * Kg:Kp, :] = jnp.zeros((Kp - KH * Kg, M), jnp.bfloat16)
        acc = jnp.dot(w_ref[...], p_ref[...], preferred_element_type=jnp.float32)
        y = jnp.maximum(acc * s_ref[...] + b_ref[...], 0.0)   # f32 BN + ReLU epilogue
        o_ref[0] = y.astype(o_ref.dtype)

    conv_out = pl.pallas_call(
        conv_kernel,
        out_shape=jax.ShapeDtypeStruct((N, Cout, M), jnp.bfloat16),
        grid=(N,),
        in_specs=[
            pl.BlockSpec((Cout, Kp), lambda n: (0, 0)),        # weights, resident
            pl.BlockSpec((Cout, 1), lambda n: (0, 0)),         # BN scale (f32)
            pl.BlockSpec((Cout, 1), lambda n: (0, 0)),         # BN shift (f32)
            pl.BlockSpec((1, Kg, Le), lambda n: (n, 0, 0)),    # even-row parity plane
            pl.BlockSpec((1, Kg, Le), lambda n: (n, 0, 0)),    # odd-row parity plane
        ],
        out_specs=pl.BlockSpec((1, Cout, M), lambda n: (n, 0, 0)),
        scratch_shapes=[pltpu.VMEM((Kp, M), jnp.bfloat16)],
        compiler_params=pltpu.CompilerParams(
            dimension_semantics=("parallel",),                 # megacore split over N
            vmem_limit_bytes=32 * 1024 * 1024,
        ),
        cost_estimate=pl.CostEstimate(
            flops=2 * N * Cout * KH * KW * Cin * M,
            transcendentals=0,
            bytes_accessed=2 * (2 * N * Kg * Le + Cout * Kp + N * Cout * M) + 8 * Cout,
        ),
    )(w_t, scale, shift, q_even, q_odd)

    # -------- glue 2: pad ReLU map, split into pool parity planes (NCHW-leading) ----
    Po = (Ho + 2 * 1 - 3) // 2 + 1
    Qo = (Wo + 2 * 1 - 3) // 2 + 1
    relu_map = conv_out.reshape(N, Cout, Ho, Wo)
    rp = jnp.pad(relu_map, ((0, 0), (0, 0), (1, 1), (1, 1)),
                 constant_values=-jnp.inf)
    ee = rp[:, :, 0:2 * Po + 1:2, 0:2 * Qo + 1:2]              # (N, C, Po+1, Qo+1)
    eo = rp[:, :, 0:2 * Po + 1:2, 1:2 * Qo:2]                  # (N, C, Po+1, Qo)
    oe = rp[:, :, 1:2 * Po:2, 0:2 * Qo + 1:2]                  # (N, C, Po,   Qo+1)
    oo = rp[:, :, 1:2 * Po:2, 1:2 * Qo:2]                      # (N, C, Po,   Qo)

    # -------- Pallas kernel 2: 3x3/s2/p1 max-pool, NCHW bf16 out, no transpose ------
    def pool_kernel(ee_ref, eo_ref, oe_ref, oo_ref, o_ref):
        ee_v = ee_ref[...]
        eo_v = eo_ref[...]
        oe_v = oe_ref[...]
        oo_v = oo_ref[...]
        m = jnp.maximum(ee_v[..., :-1, :-1], ee_v[..., :-1, 1:])
        m = jnp.maximum(m, ee_v[..., 1:, :-1])
        m = jnp.maximum(m, ee_v[..., 1:, 1:])
        m = jnp.maximum(m, eo_v[..., :-1, :])
        m = jnp.maximum(m, eo_v[..., 1:, :])
        m = jnp.maximum(m, oe_v[..., :, :-1])
        m = jnp.maximum(m, oe_v[..., :, 1:])
        m = jnp.maximum(m, oo_v)
        o_ref[...] = m.astype(o_ref.dtype)

    plane_bytes = Cout * ((Po + 1) * (Qo + 1) + (Po + 1) * Qo
                          + Po * (Qo + 1) + 2 * Po * Qo) * 2
    nb = _pick_pool_batch_block(N, plane_bytes)

    pooled = pl.pallas_call(
        pool_kernel,
        out_shape=jax.ShapeDtypeStruct((N, Cout, Po, Qo), out_dtype),
        grid=(N // nb,),
        in_specs=[
            pl.BlockSpec((nb, Cout, Po + 1, Qo + 1), lambda i: (i, 0, 0, 0)),
            pl.BlockSpec((nb, Cout, Po + 1, Qo), lambda i: (i, 0, 0, 0)),
            pl.BlockSpec((nb, Cout, Po, Qo + 1), lambda i: (i, 0, 0, 0)),
            pl.BlockSpec((nb, Cout, Po, Qo), lambda i: (i, 0, 0, 0)),
        ],
        out_specs=pl.BlockSpec((nb, Cout, Po, Qo), lambda i: (i, 0, 0, 0)),
        compiler_params=pltpu.CompilerParams(
            dimension_semantics=("parallel",),
            vmem_limit_bytes=32 * 1024 * 1024,
        ),
    )(ee, eo, oe, oo)

    return pooled                                              # NCHW, bf16 by default


if __name__ == "__main__":
    key = jax.random.PRNGKey(0)
    k1, k2, k3, k4, k5, k6 = jax.random.split(key, 6)

    N, Cin, H, W = 2, 3, 16, 16
    Cout, KH, KW = 64, 7, 7

    x = jax.random.normal(k1, (N, Cin, H, W), jnp.float32)

    # c2_msra_fill == kaiming_normal_(mode="fan_out", nonlinearity="relu")
    fan_out = Cout * KH * KW
    w = jax.random.normal(k2, (Cout, Cin, KH, KW), jnp.float32) * jnp.sqrt(2.0 / fan_out)

    gamma = 1.0 + 0.1 * jax.random.normal(k3, (Cout,), jnp.float32)
    beta = 0.1 * jax.random.normal(k4, (Cout,), jnp.float32)
    running_mean = 0.1 * jax.random.normal(k5, (Cout,), jnp.float32)
    running_var = jnp.abs(1.0 + 0.1 * jax.random.normal(k6, (Cout,), jnp.float32))

    fwd = jax.jit(basic_stem_forward)
    out = jax.block_until_ready(
        fwd(x, w, gamma, beta, running_mean, running_var))

    # pure-JAX f32 reference
    eps = 1e-5
    conv = jax.lax.conv_general_dilated(
        x, w, window_strides=(2, 2), padding=((3, 3), (3, 3)),
        dimension_numbers=("NCHW", "OIHW", "NCHW"))
    s = gamma / jnp.sqrt(running_var + eps)
    b = beta - running_mean * s
    relu = jnp.maximum(conv * s[None, :, None, None] + b[None, :, None, None], 0.0)
    ref = jax.lax.reduce_window(relu, -jnp.inf, jax.lax.max,
                                (1, 1, 3, 3), (1, 1, 2, 2),
                                ((0, 0), (0, 0), (1, 1), (1, 1)))

    assert out.shape == (N, Cout, 4, 4), out.shape
    out_f32 = out.astype(jnp.float32)
    max_err = float(jnp.max(jnp.abs(out_f32 - ref)))
    assert jnp.allclose(out_f32, ref, rtol=2e-2, atol=2e-2), max_err  # bf16 operands
    print("KERNEL_OK")
</pallas_src>

<mosaic_0001>
module attributes {stable_mosaic.version = 11 : i64} {
  func.func @conv_kernel(%arg0: i32, %arg1: memref<64x160xbf16, #tpu.memory_space<vmem>>, %arg2: memref<64x1xf32, #tpu.memory_space<vmem>>, %arg3: memref<64x1xf32, #tpu.memory_space<vmem>>, %arg4: memref<1x22x88xbf16, #tpu.memory_space<vmem>>, %arg5: memref<1x22x88xbf16, #tpu.memory_space<vmem>>, %arg6: memref<1x64x64xbf16, #tpu.memory_space<vmem>>, %arg7: memref<160x64xbf16, #tpu.memory_space<vmem>>) attributes {dimension_semantics = [#tpu.dimension_semantics<parallel>], iteration_bounds = array<i64: 2>, scalar_prefetch = 0 : i64, scratch_operands = 1 : i64, tpu.core_type = #tpu.core_type<tc>, window_params = [{pipeline_mode = #tpu.pipeline_mode<synchronous>, transform_indices = @transform_0, window_bounds = array<i64: 64, 160>}, {pipeline_mode = #tpu.pipeline_mode<synchronous>, transform_indices = @transform_1, window_bounds = array<i64: 64, 1>}, {pipeline_mode = #tpu.pipeline_mode<synchronous>, transform_indices = @transform_2, window_bounds = array<i64: 64, 1>}, {transform_indices = @transform_3, window_bounds = array<i64: 1, 22, 88>}, {transform_indices = @transform_4, window_bounds = array<i64: 1, 22, 88>}, {transform_indices = @transform_5, window_bounds = array<i64: 1, 64, 64>}]} {
    %c0 = arith.constant 0 : index
    %c0_0 = arith.constant 0 : index
    %c0_1 = arith.constant 0 : index
    %0 = vector.load %arg4[%c0, %c0_0, %c0_1] : memref<1x22x88xbf16, #tpu.memory_space<vmem>>, vector<1x22x64xbf16>
    %1 = vector.shape_cast %0 : vector<1x22x64xbf16> to vector<22x64xbf16>
    %c0_2 = arith.constant 0 : index
    %c0_3 = arith.constant 0 : index
    %2 = vector.load %arg7[%c0_2, %c0_3] : memref<160x64xbf16, #tpu.memory_space<vmem>>, vector<22x64xbf16>
    tpu.vector_store %arg7[%c0_2, %c0_3], %1 {strides = array<i32>} : memref<160x64xbf16, #tpu.memory_space<vmem>>, vector<22x64xbf16>,
    %c0_4 = arith.constant 0 : index
    %c0_5 = arith.constant 0 : index
    %c0_6 = arith.constant 0 : index
    %3 = vector.load %arg5[%c0_4, %c0_5, %c0_6] : memref<1x22x88xbf16, #tpu.memory_space<vmem>>, vector<1x22x64xbf16>
    %4 = vector.shape_cast %3 : vector<1x22x64xbf16> to vector<22x64xbf16>
    %c22 = arith.constant 22 : index
    %c0_7 = arith.constant 0 : index
    %5 = vector.load %arg7[%c22, %c0_7] : memref<160x64xbf16, #tpu.memory_space<vmem>>, vector<22x64xbf16>
    tpu.vector_store %arg7[%c22, %c0_7], %4 {strides = array<i32>} : memref<160x64xbf16, #tpu.memory_space<vmem>>, vector<22x64xbf16>,
    %c0_8 = arith.constant 0 : index
    %c0_9 = arith.constant 0 : index
    %c8 = arith.constant 8 : index
    %6 = vector.load %arg4[%c0_8, %c0_9, %c8] : memref<1x22x88xbf16, #tpu.memory_space<vmem>>, vector<1x22x64xbf16>
    %7 = vector.shape_cast %6 : vector<1x22x64xbf16> to vector<22x64xbf16>
    %c44 = arith.constant 44 : index
    %c0_10 = arith.constant 0 : index
    %8 = vector.load %arg7[%c44, %c0_10] : memref<160x64xbf16, #tpu.memory_space<vmem>>, vector<22x64xbf16>
    tpu.vector_store %arg7[%c44, %c0_10], %7 {strides = array<i32>} : memref<160x64xbf16, #tpu.memory_space<vmem>>, vector<22x64xbf16>,
    %c0_11 = arith.constant 0 : index
    %c0_12 = arith.constant 0 : index
    %c8_13 = arith.constant 8 : index
    %9 = vector.load %arg5[%c0_11, %c0_12, %c8_13] : memref<1x22x88xbf16, #tpu.memory_space<vmem>>, vector<1x22x64xbf16>
    %10 = vector.shape_cast %9 : vector<1x22x64xbf16> to vector<22x64xbf16>
    %c66 = arith.constant 66 : index
    %c0_14 = arith.constant 0 : index
    %11 = vector.load %arg7[%c66, %c0_14] : memref<160x64xbf16, #tpu.memory_space<vmem>>, vector<22x64xbf16>
    tpu.vector_store %arg7[%c66, %c0_14], %10 {strides = array<i32>} : memref<160x64xbf16, #tpu.memory_space<vmem>>, vector<22x64xbf16>,
    %c0_15 = arith.constant 0 : index
    %c0_16 = arith.constant 0 : index
    %c16 = arith.constant 16 : index
    %12 = vector.load %arg4[%c0_15, %c0_16, %c16] : memref<1x22x88xbf16, #tpu.memory_space<vmem>>, vector<1x22x64xbf16>
    %13 = vector.shape_cast %12 : vector<1x22x64xbf16> to vector<22x64xbf16>
    %c88 = arith.constant 88 : index
    %c0_17 = arith.constant 0 : index
    %14 = vector.load %arg7[%c88, %c0_17] : memref<160x64xbf16, #tpu.memory_space<vmem>>, vector<22x64xbf16>
    tpu.vector_store %arg7[%c88, %c0_17], %13 {strides = array<i32>} : memref<160x64xbf16, #tpu.memory_space<vmem>>, vector<22x64xbf16>,
    %c0_18 = arith.constant 0 : index
    %c0_19 = arith.constant 0 : index
    %c16_20 = arith.constant 16 : index
    %15 = vector.load %arg5[%c0_18, %c0_19, %c16_20] : memref<1x22x88xbf16, #tpu.memory_space<vmem>>, vector<1x22x64xbf16>
    %16 = vector.shape_cast %15 : vector<1x22x64xbf16> to vector<22x64xbf16>
    %c110 = arith.constant 110 : index
    %c0_21 = arith.constant 0 : index
    %17 = vector.load %arg7[%c110, %c0_21] : memref<160x64xbf16, #tpu.memory_space<vmem>>, vector<22x64xbf16>
    tpu.vector_store %arg7[%c110, %c0_21], %16 {strides = array<i32>} : memref<160x64xbf16, #tpu.memory_space<vmem>>, vector<22x64xbf16>,
    %c0_22 = arith.constant 0 : index
    %c0_23 = arith.constant 0 : index
    %c24 = arith.constant 24 : index
    %18 = vector.load %arg4[%c0_22, %c0_23, %c24] : memref<1x22x88xbf16, #tpu.memory_space<vmem>>, vector<1x22x64xbf16>
    %19 = vector.shape_cast %18 : vector<1x22x64xbf16> to vector<22x64xbf16>
    %c132 = arith.constant 132 : index
    %c0_24 = arith.constant 0 : index
    %20 = vector.load %arg7[%c132, %c0_24] : memref<160x64xbf16, #tpu.memory_space<vmem>>, vector<22x64xbf16>
    tpu.vector_store %arg7[%c132, %c0_24], %19 {strides = array<i32>} : memref<160x64xbf16, #tpu.memory_space<vmem>>, vector<22x64xbf16>,
    %cst = arith.constant 0.000000e+00 : bf16
    %21 = vector.broadcast %cst : bf16 to vector<6x64xbf16>
    %c154 = arith.constant 154 : index
    %c0_25 = arith.constant 0 : index
    %22 = vector.load %arg7[%c154, %c0_25] : memref<160x64xbf16, #tpu.memory_space<vmem>>, vector<6x64xbf16>
    tpu.vector_store %arg7[%c154, %c0_25], %21 {strides = array<i32>} : memref<160x64xbf16, #tpu.memory_space<vmem>>, vector<6x64xbf16>,
    %c0_26 = arith.constant 0 : index
    %c0_27 = arith.constant 0 : index
    %23 = vector.load %arg1[%c0_26, %c0_27] : memref<64x160xbf16, #tpu.memory_space<vmem>>, vector<64x160xbf16>
    %c0_28 = arith.constant 0 : index
    %c0_29 = arith.constant 0 : index
    %24 = vector.load %arg7[%c0_28, %c0_29] : memref<160x64xbf16, #tpu.memory_space<vmem>>, vector<160x64xbf16>
    %cst_30 = arith.constant dense<0.000000e+00> : vector<64x64xf32>
    %25 = tpu.matmul %23, %24, %cst_30 {dimension_numbers = #tpu.dot_dimension_numbers<[1], [0], [0], [1], [0, 0, 1, 1], [], []>} : vector<64x160xbf16>, vector<160x64xbf16>, vector<64x64xf32> -> vector<64x64xf32>
    %c0_31 = arith.constant 0 : index
    %c0_32 = arith.constant 0 : index
    %26 = vector.load %arg2[%c0_31, %c0_32] : memref<64x1xf32, #tpu.memory_space<vmem>>, vector<64x1xf32>
    %27 = vector.broadcast %26 : vector<64x1xf32> to vector<64x64xf32>
    %28 = arith.mulf %25, %27 : vector<64x64xf32>
    %c0_33 = arith.constant 0 : index
    %c0_34 = arith.constant 0 : index
    %29 = vector.load %arg3[%c0_33, %c0_34] : memref<64x1xf32, #tpu.memory_space<vmem>>, vector<64x1xf32>
    %30 = vector.broadcast %29 : vector<64x1xf32> to vector<64x64xf32>
    %31 = arith.addf %28, %30 : vector<64x64xf32>
    %cst_35 = arith.constant 0.000000e+00 : f32
    %32 = vector.broadcast %cst_35 : f32 to vector<64x64xf32>
    %33 = arith.maximumf %31, %32 : vector<64x64xf32>
    %34 = arith.truncf %33 : vector<64x64xf32> to vector<64x64xbf16>
    %c0_36 = arith.constant 0 : index
    %c0_37 = arith.constant 0 : index
    %c0_38 = arith.constant 0 : index
    %35 = vector.load %arg6[%c0_36, %c0_37, %c0_38] : memref<1x64x64xbf16, #tpu.memory_space<vmem>>, vector<1x64x64xbf16>
    %36 = vector.shape_cast %35 : vector<1x64x64xbf16> to vector<64x64xbf16>
    %37 = vector.shape_cast %34 : vector<64x64xbf16> to vector<1x64x64xbf16>
    tpu.vector_store %arg6[%c0_36, %c0_37, %c0_38], %37 {strides = array<i32>} : memref<1x64x64xbf16, #tpu.memory_space<vmem>>, vector<1x64x64xbf16>,
    return
  }
  func.func @transform_0(%arg0: i32) -> (i32, i32) {
    %c0_i32 = arith.constant 0 : i32
    %c0_i32_0 = arith.constant 0 : i32
    %c0_i32_1 = arith.constant 0 : i32
    return %c0_i32, %c0_i32_0 : i32, i32
  }
  func.func @transform_1(%arg0: i32) -> (i32, i32) {
    %c0_i32 = arith.constant 0 : i32
    %c0_i32_0 = arith.constant 0 : i32
    %c0_i32_1 = arith.constant 0 : i32
    return %c0_i32, %c0_i32_0 : i32, i32
  }
  func.func @transform_2(%arg0: i32) -> (i32, i32) {
    %c0_i32 = arith.constant 0 : i32
    %c0_i32_0 = arith.constant 0 : i32
    %c0_i32_1 = arith.constant 0 : i32
    return %c0_i32, %c0_i32_0 : i32, i32
  }
  func.func @transform_3(%arg0: i32) -> (i32, i32, i32) {
    %c0_i32 = arith.constant 0 : i32
    %c0_i32_0 = arith.constant 0 : i32
    %c0_i32_1 = arith.constant 0 : i32
    return %arg0, %c0_i32, %c0_i32_0 : i32, i32, i32
  }
  func.func @transform_4(%arg0: i32) -> (i32, i32, i32) {
    %c0_i32 = arith.constant 0 : i32
    %c0_i32_0 = arith.constant 0 : i32
    %c0_i32_1 = arith.constant 0 : i32
    return %arg0, %c0_i32, %c0_i32_0 : i32, i32, i32
  }
  func.func @transform_5(%arg0: i32) -> (i32, i32, i32) {
    %c0_i32 = arith.constant 0 : i32
    %c0_i32_0 = arith.constant 0 : i32
    %c0_i32_1 = arith.constant 0 : i32
    return %arg0, %c0_i32, %c0_i32_0 : i32, i32, i32
  }
}

module attributes {stable_mosaic.version = 11 : i64} {
  func.func @pool_kernel(%arg0: i32, %arg1: memref<1x64x5x5xbf16, #tpu.memory_space<vmem>>, %arg2: memref<1x64x5x4xbf16, #tpu.memory_space<vmem>>, %arg3: memref<1x64x4x5xbf16, #tpu.memory_space<vmem>>, %arg4: memref<1x64x4x4xbf16, #tpu.memory_space<vmem>>, %arg5: memref<1x64x4x4xbf16, #tpu.memory_space<vmem>>) attributes {dimension_semantics = [#tpu.dimension_semantics<parallel>], iteration_bounds = array<i64: 2>, scalar_prefetch = 0 : i64, scratch_operands = 0 : i64, tpu.core_type = #tpu.core_type<tc>, window_params = [{transform_indices = @transform_0, window_bounds = array<i64: 1, 64, 5, 5>}, {transform_indices = @transform_1, window_bounds = array<i64: 1, 64, 5, 4>}, {transform_indices = @transform_2, window_bounds = array<i64: 1, 64, 4, 5>}, {transform_indices = @transform_3, window_bounds = array<i64: 1, 64, 4, 4>}, {transform_indices = @transform_4, window_bounds = array<i64: 1, 64, 4, 4>}]} {
    %c0 = arith.constant 0 : index
    %c0_0 = arith.constant 0 : index
    %c0_1 = arith.constant 0 : index
    %c0_2 = arith.constant 0 : index
    %0 = vector.load %arg1[%c0, %c0_0, %c0_1, %c0_2] : memref<1x64x5x5xbf16, #tpu.memory_space<vmem>>, vector<1x64x5x5xbf16>
    %c0_3 = arith.constant 0 : index
    %c0_4 = arith.constant 0 : index
    %c0_5 = arith.constant 0 : index
    %c0_6 = arith.constant 0 : index
    %1 = vector.load %arg2[%c0_3, %c0_4, %c0_5, %c0_6] : memref<1x64x5x4xbf16, #tpu.memory_space<vmem>>, vector<1x64x5x4xbf16>
    %c0_7 = arith.constant 0 : index
    %c0_8 = arith.constant 0 : index
    %c0_9 = arith.constant 0 : index
    %c0_10 = arith.constant 0 : index
    %2 = vector.load %arg3[%c0_7, %c0_8, %c0_9, %c0_10] : memref<1x64x4x5xbf16, #tpu.memory_space<vmem>>, vector<1x64x4x5xbf16>
    %c0_11 = arith.constant 0 : index
    %c0_12 = arith.constant 0 : index
    %c0_13 = arith.constant 0 : index
    %c0_14 = arith.constant 0 : index
    %3 = vector.load %arg4[%c0_11, %c0_12, %c0_13, %c0_14] : memref<1x64x4x4xbf16, #tpu.memory_space<vmem>>, vector<1x64x4x4xbf16>
    %4 = vector.extract_strided_slice %0 {offsets = [0, 0, 0, 0], sizes = [1, 64, 4, 4], strides = [1, 1, 1, 1]} : vector<1x64x5x5xbf16> to vector<1x64x4x4xbf16>
    %5 = vector.extract_strided_slice %0 {offsets = [0, 0, 0, 1], sizes = [1, 64, 4, 4], strides = [1, 1, 1, 1]} : vector<1x64x5x5xbf16> to vector<1x64x4x4xbf16>
    %6 = arith.maximumf %4, %5 : vector<1x64x4x4xbf16>
    %7 = vector.extract_strided_slice %0 {offsets = [0, 0, 1, 0], sizes = [1, 64, 4, 4], strides = [1, 1, 1, 1]} : vector<1x64x5x5xbf16> to vector<1x64x4x4xbf16>
    %8 = arith.maximumf %6, %7 : vector<1x64x4x4xbf16>
    %9 = vector.extract_strided_slice %0 {offsets = [0, 0, 1, 1], sizes = [1, 64, 4, 4], strides = [1, 1, 1, 1]} : vector<1x64x5x5xbf16> to vector<1x64x4x4xbf16>
    %10 = arith.maximumf %8, %9 : vector<1x64x4x4xbf16>
    %11 = vector.extract_strided_slice %1 {offsets = [0, 0, 0, 0], sizes = [1, 64, 4, 4], strides = [1, 1, 1, 1]} : vector<1x64x5x4xbf16> to vector<1x64x4x4xbf16>
    %12 = arith.maximumf %10, %11 : vector<1x64x4x4xbf16>
    %13 = vector.extract_strided_slice %1 {offsets = [0, 0, 1, 0], sizes = [1, 64, 4, 4], strides = [1, 1, 1, 1]} : vector<1x64x5x4xbf16> to vector<1x64x4x4xbf16>
    %14 = arith.maximumf %12, %13 : vector<1x64x4x4xbf16>
    %15 = vector.extract_strided_slice %2 {offsets = [0, 0, 0, 0], sizes = [1, 64, 4, 4], strides = [1, 1, 1, 1]} : vector<1x64x4x5xbf16> to vector<1x64x4x4xbf16>
    %16 = arith.maximumf %14, %15 : vector<1x64x4x4xbf16>
    %17 = vector.extract_strided_slice %2 {offsets = [0, 0, 0, 1], sizes = [1, 64, 4, 4], strides = [1, 1, 1, 1]} : vector<1x64x4x5xbf16> to vector<1x64x4x4xbf16>
    %18 = arith.maximumf %16, %17 : vector<1x64x4x4xbf16>
    %19 = arith.maximumf %18, %3 : vector<1x64x4x4xbf16>
    %c0_15 = arith.constant 0 : index
    %c0_16 = arith.constant 0 : index
    %c0_17 = arith.constant 0 : index
    %c0_18 = arith.constant 0 : index
    %20 = vector.load %arg5[%c0_15, %c0_16, %c0_17, %c0_18] : memref<1x64x4x4xbf16, #tpu.memory_space<vmem>>, vector<1x64x4x4xbf16>
    tpu.vector_store %arg5[%c0_15, %c0_16, %c0_17, %c0_18], %19 {strides = array<i32>} : memref<1x64x4x4xbf16, #tpu.memory_space<vmem>>, vector<1x64x4x4xbf16>,
    return
  }
  func.func @transform_0(%arg0: i32) -> (i32, i32, i32, i32) {
    %c0_i32 = arith.constant 0 : i32
    %c0_i32_0 = arith.constant 0 : i32
    %c0_i32_1 = arith.constant 0 : i32
    %c0_i32_2 = arith.constant 0 : i32
    return %arg0, %c0_i32, %c0_i32_0, %c0_i32_1 : i32, i32, i32, i32
  }
  func.func @transform_1(%arg0: i32) -> (i32, i32, i32, i32) {
    %c0_i32 = arith.constant 0 : i32
    %c0_i32_0 = arith.constant 0 : i32
    %c0_i32_1 = arith.constant 0 : i32
    %c0_i32_2 = arith.constant 0 : i32
    return %arg0, %c0_i32, %c0_i32_0, %c0_i32_1 : i32, i32, i32, i32
  }
  func.func @transform_2(%arg0: i32) -> (i32, i32, i32, i32) {
    %c0_i32 = arith.constant 0 : i32
    %c0_i32_0 = arith.constant 0 : i32
    %c0_i32_1 = arith.constant 0 : i32
    %c0_i32_2 = arith.constant 0 : i32
    return %arg0, %c0_i32, %c0_i32_0, %c0_i32_1 : i32, i32, i32, i32
  }
  func.func @transform_3(%arg0: i32) -> (i32, i32, i32, i32) {
    %c0_i32 = arith.constant 0 : i32
    %c0_i32_0 = arith.constant 0 : i32
    %c0_i32_1 = arith.constant 0 : i32
    %c0_i32_2 = arith.constant 0 : i32
    return %arg0, %c0_i32, %c0_i32_0, %c0_i32_1 : i32, i32, i32, i32
  }
  func.func @transform_4(%arg0: i32) -> (i32, i32, i32, i32) {
    %c0_i32 = arith.constant 0 : i32
    %c0_i32_0 = arith.constant 0 : i32
    %c0_i32_1 = arith.constant 0 : i32
    %c0_i32_2 = arith.constant 0 : i32
    return %arg0, %c0_i32, %c0_i32_0, %c0_i32_1 : i32, i32, i32, i32
  }
}

</mosaic_0001>

<bundles_post_ra>
// kernel: basic_stem_forward.2
= control target key start
LH: loop header
LB: loop body
LE: loop exit
PB: predicated region body
PF: predicated region fallthrough
CT: control target
= control target key end

     0   :  { %s1002_s18 = smov 0   ;;  %s1266_s0 = inlined_call_operand.vmem [shape: bf16[64,160], index: 0, kind: input, shape index: {}]   ;;  %s1267_s1 = inlined_call_operand.vmem [shape: f32[64,1], index: 1, kind: input, shape index: {}]   ;;  %s1268_s2 = inlined_call_operand.vmem [shape: f32[64,1], index: 2, kind: input, shape index: {}]   ;;  %s1269_s3 = inlined_call_operand.vmem [shape: bf16[2,22,88], index: 3, kind: input, shape index: {}]   ;;  %s1270_s4 = inlined_call_operand.vmem [shape: bf16[2,22,88], index: 4, kind: input, shape index: {}]   ;;  %s1271_s5 = inlined_call_operand.vmem [shape: bf16[2,64,64], index: 5, kind: output, shape index: {}]  }
   0x1 LB: > { %s853_s19 = sadd.s32 4294967295, %s966_s18   ;;  %p857_p0 = scmp.ge.s32.totalorder %s966_s18, 1  ;;  %s966_s18 = sphi %s1002_s18, %s15_s18  }
   0x2   : > { %p197_p1 = scmp.lt.s32.totalorder %s966_s18, 3 }
   0x4   : > { %p198_p2 = pnand %p857_p0, %p197_p1 }
   0x5   : > { %p230_p3 = scmp.lt.s32.totalorder (!%p198_p2), %s853_s19, 1  ;;  %s968_s27 = smov (!%p198_p2), 112  }
   0x6   : > { %201 = sbr.rel (%p198_p2) target bundleno = 402 (0x192), region = 40  ;;  %s970_s28 = smov (!%p198_p2), 120  }
   0x7   : > { %s971_s29 = smov (!%p198_p2), 104  }
   0xb   : > { %s1279_s19 = smov (!%p230_p3, %s853_s19), 1  ;;  %vm260_vm0 = vcmask 1042432   ;;  %vm261_vm1 = vcmask 1046532   ;;  %vm322_vm3 = vcmask 1040384   ;;  %vm323_vm4 = vcmask 1044484   ;;  %v630_v6 = vld [vmem:[%s1267_s1 + $0x20] sm:$0xff] }
   0xc   : > { %s923_s20 = smul.u32 12, %s1279_s19  ;;  %vm1033_vm2 = vmor %vm260_vm0, %vm261_vm1  ;;  %vm252_vm6 = vcmask 518144   ;;  %v969_v26 = vmov 0   ;;  %vm341_vm7 = vcmask 519169   ;;  %vm287_vm8 = vcmask 1041408   ;;  %s894_s7 = sshll.u32 %s1279_s19, 5 }
   0xd   : > { %vm1063_vm5 = vmor %vm322_vm3, %vm323_vm4  ;;  %561 = vmatprep.subr.bf16.mxu0 %v969_v26  ;;  %903 = vmatprep.subr.bf16.mxu1 %v969_v26  ;;  %423 = vst.msk [vmem:[#allocation2 + $0x4c] sm:$0xe] %vm341_vm7, %v969_v26  ;;  %vm275_vm9 = vcmask 519171   ;;  %vm288_vm10 = vcmask 1045508   ;;  %vm249_vm11 = vcmask 519168   ;;  %vm279_vm13 = vcmask 517120   ;;  %s1245_s10 = scalar_lea.vmem %s1271_s5, %s894_s7 }
   0xe   : > { %s1016_s23 = scalar_lea.vmem %s1270_s4, %s923_s20  ;;  %s1021_s26 = scalar_lea.vmem %s1269_s3, %s923_s20  ;;  %936 = vset.pattern.permute.xlu0 %v969_v26  ;;  %937 = vset.pattern.permute.xlu1 %v969_v26  ;;  %vm1095_vm12 = vmor %vm287_vm8, %vm288_vm10  ;;  %vm548_vm14 = vcmask 261120   ;;  %vm314_vm15 = vcmask 516096   ;;  %vm310_vm0 = vcmask 519170  }
   0xf   : > { %v1024_v0 = vld [vmem:[%s1016_s23] sm:$0xf]  ;;  %v364_v1 = vld [vmem:[%s1016_s23 + $0x4] sm:$0xf]  ;;  %v1031_v5 = vld [vmem:[%s1016_s23 + $0x8] sm:$0x7] }
  0x10   : > { %v346_v2 = vld [vmem:[%s1021_s26 + $0x4] sm:$0xf]  ;;  %v369_v3 = vrot.slane %v1024_v0, 5  ;;  %v371_v4 = vrot.slane %v364_v1, 5  ;;  %v347_v7 = vld [vmem:[%s1021_s26 + $0x8] sm:$0x7] }
  0x11   : > { %353 = vrot.lane.b32.xlu1 %v346_v2, %s968_s27  ;;  %v1039_v8 = vld [vmem:[%s1021_s26 + $0x8] sm:$0x7]  ;;  %v374_v11 = vrot.slane %v1031_v5, 5  ;;  %v317_v13 = vld [vmem:[%s1016_s23 + $0x4] sm:$0xf]  ;;  %v629_v5 = vld [vmem:[%s1267_s1 + $0x18] sm:$0xff] }
  0x12   : > { %v370_v9 = vrot.slane %v369_v3, 4  ;;  %v373_v10 = vrot.slane %v371_v4, 4  ;;  %v295_v12 = vrot.slane %v1039_v8, 6  ;;  %v318_v14 = vld [vmem:[%s1016_s23 + $0x8] sm:$0x7]  ;;  %v327_v15 = vrot.slane %v317_v13, 7 }
  0x13   : > { %v1046_v16 = vld [vmem:[%s1016_s23] sm:$0xf]  ;;  %v330_v20 = vrot.slane %v318_v14, 7  ;;  %v1056_v22 = vld [vmem:[%s1021_s26 + $0x4] sm:$0xf]  ;;  %v376_v60 = vrot.slane %v374_v11, 4 }
  0x14   : > { %v372_v17 = vsel %vm1033_vm2, %v370_v9, %v371_v4  ;;  %v297_v18 = vrot.slane %v295_v12, 4  ;;  %v329_v19 = vrot.slane %v327_v15, 4  ;;  %v325_v21 = vrot.slane %v1046_v16, 7  ;;  %v248_v25 = vld [vmem:[%s1021_s26 + $0x8] sm:$0x7]  ;;  %v628_v4 = vld [vmem:[%s1267_s1 + $0x10] sm:$0xff] }
  0x15   : > { %355 = vrot.lane.b32.xlu1 %v347_v7, %s968_s27  ;;  %379 = vrot.lane.b32.xlu0 %v372_v17, %s968_s27  ;;  %v375_v23 = vsel %vm1033_vm2, %v373_v10, %v374_v11  ;;  %v292_v27 = vrot.slane %v1056_v22, 6  ;;  %253 = vst.msk [vmem:[#allocation2 + $0x8] sm:$0x7] %vm252_vm6, %v248_v25  ;;  %v254_v28 = vld [vmem:[%s1016_s23] sm:$0xf]  ;;  %v627_v2 = vld [vmem:[%s1267_s1 + $0x8] sm:$0xff] }
  0x16   : > { %v331_v29 = vsel %vm1063_vm5, %v329_v19, %v330_v20  ;;  %v326_v30 = vrot.slane %v325_v21, 4  ;;  %v394_v31 = vld [vmem:[%s1021_s26 + $0x4] sm:$0xf]  ;;  %v263_v33 = vrot.slane %v254_v28, 5  ;;  %v281_v35 = vld [vmem:[%s1021_s26] sm:$0xf] }
  0x17   : > { %v255_v32 = vld [vmem:[%s1016_s23 + $0x4] sm:$0xf]  ;;  %v256_v37 = vld [vmem:[%s1016_s23 + $0x8] sm:$0x7]  ;;  %v401_v38 = vrot.slane %v394_v31, 6  ;;  %v294_v41 = vrot.slane %v292_v27, 4 }
  0x18   : > { %v265_v34 = vrot.slane %v255_v32, 5  ;;  %v264_v36 = vrot.slane %v263_v33, 4  ;;  %276 = vst.msk [vmem:[#allocation2 + $0x8] sm:$0x8] %vm275_vm9, %v263_v33  ;;  %v268_v39 = vrot.slane %v256_v37, 5  ;;  %v328_v40 = vsel %vm1063_vm5, %v326_v30, %v327_v15  ;;  %v631_v7 = vld [vmem:[%s1267_s1 + $0x28] sm:$0xff] }
  0x19   : > { %304 = vrot.lane.b32.xlu1 %v297_v18, %s970_s28  ;;  %381 = vrot.lane.b32.xlu0 %v375_v23, %s968_s27  ;;  %v345_v44 = vld [vmem:[%s1021_s26] sm:$0xf]  ;;  %v290_v46 = vrot.slane %v281_v35, 6  ;;  %v395_v47 = vld [vmem:[%s1021_s26 + $0x8] sm:$0x7]  ;;  %v296_v50 = vsel %vm1095_vm12, %v294_v41, %v295_v12  ;;  %v403_v51 = vrot.slane %v401_v38, 4 }
  0x1a   : > { %v266_v42 = vsel %vm1033_vm2, %v264_v36, %v265_v34  ;;  %v267_v43 = vrot.slane %v265_v34, 4  ;;  %v270_v48 = vrot.slane %v268_v39, 4  ;;  %v404_v52 = vrot.slane %v395_v47, 6  ;;  %v393_v54 = vld [vmem:[%s1021_s26] sm:$0xf]  ;;  %v632_v8 = vld [vmem:[%s1267_s1 + $0x30] sm:$0xff] }
  0x1b   : > { %277 = vst.msk [vmem:[#allocation2 + $0xc] sm:$0xf] %vm249_vm11, %v266_v42  ;;  %v291_v53 = vrot.slane %v290_v46, 4  ;;  %v399_v56 = vrot.slane %v393_v54, 6  ;;  %v246_v58 = vld [vmem:[%s1021_s26] sm:$0xf] }
  0x1c   : > { %v269_v49 = vsel %vm1033_vm2, %v267_v43, %v268_v39  ;;  %280 = vst.msk [vmem:[#allocation2 + $0x14] sm:$0x3] %vm279_vm13, %v270_v48  ;;  %v405_v55 = vsel %vm1095_vm12, %v403_v51, %v404_v52  ;;  %v247_v59 = vld [vmem:[%s1021_s26 + $0x4] sm:$0xf]  ;;  %v406_v62 = vrot.slane %v404_v52, 4  ;;  %v633_v9 = vld [vmem:[%s1267_s1 + $0x38] sm:$0xff] }
  0x1d   : > { %336 = vrot.lane.b32.xlu1 %v331_v29, %s970_s28  ;;  %377 = vrot.lane.b32.xlu0 %v369_v3, %s968_s27  ;;  %278 = vst.msk [vmem:[#allocation2 + $0x10] sm:$0xf] %vm249_vm11, %v269_v49  ;;  %v293_v57 = vsel %vm1095_vm12, %v291_v53, %v292_v27  ;;  %250 = vst.msk [vmem:[#allocation2] sm:$0xf] %vm249_vm11, %v246_v58  ;;  %v400_v61 = vrot.slane %v399_v56, 4  ;;  %v626_v3 = vld [vmem:[%s1267_s1] sm:$0xff] }
  0x1e   : > { %251 = vst.msk [vmem:[#allocation2 + $0x4] sm:$0xf] %vm249_vm11, %v247_v59  ;;  %v950_v0 = vld [vmem:[%s1266_s0 + $0x4] ss:$8 sps:$4 sm:$0xff]   ;;  %v684_v12 = vld [vmem:[%s1268_s2 + $0x10] sm:$0xff]  ;;  %v685_v13 = vld [vmem:[%s1268_s2 + $0x18] sm:$0xff] }
  0x1f   : > { %v402_v63 = vsel %vm1095_vm12, %v400_v61, %v401_v38  ;;  %v953_v1 = vld [vmem:[%s1266_s0 + $0x24] ss:$8 sps:$4 sm:$0xff]   ;;  %880 = vmatprep.mubr.msk.bf16.mxu0 %vm548_vm14, %v950_v0  ;;  %v688_v16 = vld [vmem:[%s1268_s2 + $0x30] sm:$0xff]  ;;  %v689_v17 = vld [vmem:[%s1268_s2 + $0x38] sm:$0xff] }
  0x20   : > { %882 = vmatprep.mubr.msk.bf16.mxu1 %vm548_vm14, %v953_v1  ;;  %v682_v10 = vld [vmem:[%s1268_s2] sm:$0xff]  ;;  %v683_v11 = vld [vmem:[%s1268_s2 + $0x8] sm:$0xff]  ;;  %v954_v49 = vld [vmem:[%s1266_s0 + $0x14] ss:$8 sps:$4 sm:$0xff]  }
  0x21   : > { %334 = vrot.lane.b32.xlu1 %v328_v40, %s970_s28  ;;  %351 = vrot.lane.b32.xlu0 %v345_v44, %s968_s27  ;;  %v686_v14 = vld [vmem:[%s1268_s2 + $0x20] sm:$0xff]  ;;  %v687_v15 = vld [vmem:[%s1268_s2 + $0x28] sm:$0xff] }
  0x22   : > { %v944_v43 = vld [vmem:[#allocation2 + $0x8] sm:$0xff]   ;;  %v959_v51 = vld [vmem:[%s1266_s0 + $0x30] ss:$8 sps:$4 sm:$0xff]  }
  0x23   : > { %v948_v47 = vld [vmem:[%s1266_s0] ss:$8 sps:$4 sm:$0xff]  }
  0x24   : > { %v951_v48 = vld [vmem:[%s1266_s0 + $0x20] ss:$8 sps:$4 sm:$0xff]  }
  0x25   : > { %302 = vrot.lane.b32.xlu1 %v296_v50, %s970_s28  ;;  %332 = vrot.lane.b32.xlu0 %v325_v21, %s970_s28  ;;  %v945_v44 = vld [vmem:[#allocation2] sm:$0xff]   ;;  %v956_v50 = vld [vmem:[%s1266_s0 + $0x34] ss:$8 sps:$4 sm:$0xff]  }
  0x29   : > { %411 = vrot.lane.b32.xlu1 %v405_v55, %s971_s29  ;;  %300 = vrot.lane.b32.xlu0 %v293_v57, %s970_s28 }
  0x2d   : > { %383 = vrot.lane.b32.xlu1 %v376_v60, %s968_s27  ;;  %298 = vrot.lane.b32.xlu0 %v290_v46, %s970_s28 }
  0x31   : > { %409 = vrot.lane.b32.xlu1 %v402_v63, %s971_s29  ;;  %413 = vrot.lane.b32.xlu0 %v406_v62, %s971_s29 }
  0x35   : > { %407 = vrot.lane.b32.xlu0 %v399_v56, %s971_s29  ;;  %641 = vperm.xlu1 %937, %v627_v2  }
  0x39   : > { %636 = vperm.xlu0 %936, %v626_v3   ;;  %646 = vperm.xlu1 %937, %v628_v4  }
  0x3d   : > { %651 = vperm.xlu0 %936, %v629_v5   ;;  %656 = vperm.xlu1 %937, %v630_v6  }
  0x41   : > { %661 = vperm.xlu0 %936, %v631_v7   ;;  %666 = vperm.xlu1 %937, %v632_v8  }
  0x45   : > { %671 = vperm.xlu0 %936, %v633_v9   ;;  %692 = vperm.xlu1 %937, %v682_v10  }
  0x49   : > { %697 = vperm.xlu0 %936, %v683_v11   ;;  %702 = vperm.xlu1 %937, %v684_v12  }
  0x4d   : > { %707 = vperm.xlu0 %936, %v685_v13   ;;  %712 = vperm.xlu1 %937, %v686_v14  }
  0x51   : > { %717 = vperm.xlu0 %936, %v687_v15   ;;  %722 = vperm.xlu1 %937, %v688_v16  }
  0x55   : > { %727 = vperm.xlu0 %936, %v689_v17  }
  0x83   : > { %v354_v18 = vpop.permute.xlu1 %353 }
  0x84   : > { %361 = vst.msk [vmem:[#allocation2 + $0x30] sm:$0xf] %vm249_vm11, %v354_v18 }
  0x87   : > { %v356_v19 = vpop.permute.xlu1 %355  ;;  %v380_v20 = vpop.permute.xlu0 %379 }
  0x88   : > { %362 = vst.msk [vmem:[#allocation2 + $0x34] sm:$0x7] %vm252_vm6, %v356_v19 }
  0x89   : > { %390 = vst.msk [vmem:[#allocation2 + $0x38] sm:$0xf] %vm249_vm11, %v380_v20 }
  0x8b   : > { %v305_v21 = vpop.permute.xlu1 %304  ;;  %v382_v22 = vpop.permute.xlu0 %381 }
  0x8c   : > { %315 = vst.msk [vmem:[#allocation2 + $0x20] sm:$0x1] %vm314_vm15, %v305_v21 }
  0x8d   : > { %391 = vst.msk [vmem:[#allocation2 + $0x3c] sm:$0xf] %vm249_vm11, %v382_v22 }
  0x8f   : > { %v337_v23 = vpop.permute.xlu1 %336  ;;  %v378_v24 = vpop.permute.xlu0 %377 }
  0x90   : > { %344 = vst.msk [vmem:[#allocation2 + $0x28] sm:$0xf] %vm249_vm11, %v337_v23 }
  0x91   : > { %389 = vst.msk [vmem:[#allocation2 + $0x34] sm:$0x8] %vm275_vm9, %v378_v24 }
  0x93   : > { %v335_v25 = vpop.permute.xlu1 %334  ;;  %v352_v27 = vpop.permute.xlu0 %351 }
  0x94   : > { %v938_v28 = vld [vmem:[#allocation2 + $0x38] sm:$0xff]   ;;  %343 = vst.msk [vmem:[#allocation2 + $0x24] sm:$0xf] %vm249_vm11, %v335_v25  ;;  %360 = vst.msk [vmem:[#allocation2 + $0x2c] sm:$0xf] %vm249_vm11, %v352_v27 }
  0x95   : > { %562 = vmatpush1.bf16.msra.mxu0 %v938_v28  ;;  %913 = vmatpush1.bf16.msra.mxu1 %v938_v28 }
  0x96   : > { %563 = vmatprep.subr.bf16.mxu0 %v969_v26  ;;  %904 = vmatprep.subr.bf16.mxu1 %v969_v26 }
  0x97   : > { %v303_v29 = vpop.permute.xlu1 %302  ;;  %v333_v30 = vpop.permute.xlu0 %332 }
  0x98   : > { %v939_v31 = vld [vmem:[#allocation2 + $0x30] sm:$0xff]   ;;  %313 = vst.msk [vmem:[#allocation2 + $0x1c] sm:$0xf] %vm249_vm11, %v303_v29 }
  0x99   : > { %342 = vst.msk [vmem:[#allocation2 + $0x20] sm:$0xe] %vm341_vm7, %v333_v30  ;;  %564 = vmatpush1.bf16.msra.mxu0 %v939_v31  ;;  %914 = vmatpush1.bf16.msra.mxu1 %v939_v31 }
  0x9a   : > { %565 = vmatprep.subr.bf16.mxu0 %v969_v26  ;;  %905 = vmatprep.subr.bf16.mxu1 %v969_v26 }
  0x9b   : > { %v412_v32 = vpop.permute.xlu1 %411  ;;  %v301_v33 = vpop.permute.xlu0 %300  ;;  %v940_v34 = vld [vmem:[#allocation2 + $0x28] sm:$0xff]  }
  0x9c   : > { %421 = vst.msk [vmem:[#allocation2 + $0x48] sm:$0xf] %vm249_vm11, %v412_v32  ;;  %312 = vst.msk [vmem:[#allocation2 + $0x18] sm:$0xf] %vm249_vm11, %v301_v33 }
  0x9d   : > { %566 = vmatpush1.bf16.msra.mxu0 %v940_v34  ;;  %915 = vmatpush1.bf16.msra.mxu1 %v940_v34 }
  0x9e   : > { %567 = vmatprep.subr.bf16.mxu0 %v969_v26  ;;  %906 = vmatprep.subr.bf16.mxu1 %v969_v26 }
  0x9f   : > { %v384_v35 = vpop.permute.xlu1 %383  ;;  %v299_v36 = vpop.permute.xlu0 %298 }
  0xa0   : > { %v941_v37 = vld [vmem:[#allocation2 + $0x20] sm:$0xff]   ;;  %392 = vst.msk [vmem:[#allocation2 + $0x40] sm:$0x3] %vm279_vm13, %v384_v35 }
  0xa1   : > { %311 = vst.msk [vmem:[#allocation2 + $0x14] sm:$0xc] %vm310_vm0, %v299_v36  ;;  %568 = vmatpush1.bf16.msra.mxu0 %v941_v37  ;;  %916 = vmatpush1.bf16.msra.mxu1 %v941_v37 }
  0xa2   : > { %569 = vmatprep.subr.bf16.mxu0 %v969_v26  ;;  %907 = vmatprep.subr.bf16.mxu1 %v969_v26 }
  0xa3   : > { %v410_v38 = vpop.permute.xlu1 %409  ;;  %v942_v39 = vld [vmem:[#allocation2 + $0x18] sm:$0xff]   ;;  %v414_v40 = vpop.permute.xlu0 %413 }
  0xa4   : > { %420 = vst.msk [vmem:[#allocation2 + $0x44] sm:$0xf] %vm249_vm11, %v410_v38 }
  0xa5   : > { %422 = vst.msk [vmem:[#allocation2 + $0x4c] sm:$0x1] %vm314_vm15, %v414_v40  ;;  %570 = vmatpush1.bf16.msra.mxu0 %v942_v39  ;;  %917 = vmatpush1.bf16.msra.mxu1 %v942_v39 }
  0xa6   : > { %571 = vmatprep.subr.bf16.mxu0 %v969_v26  ;;  %908 = vmatprep.subr.bf16.mxu1 %v969_v26 }
  0xa7   : > { %v408_v42 = vpop.permute.xlu0 %407 }
  0xa8   : > { %v943_v41 = vld [vmem:[#allocation2 + $0x10] sm:$0xff]   ;;  %419 = vst.msk [vmem:[#allocation2 + $0x40] sm:$0xc] %vm310_vm0, %v408_v42 }
  0xa9   : > { %572 = vmatpush1.bf16.msra.mxu0 %v943_v41  ;;  %918 = vmatpush1.bf16.msra.mxu1 %v943_v41 }
  0xaa   : > { %573 = vmatprep.subr.bf16.mxu0 %v969_v26  ;;  %909 = vmatprep.subr.bf16.mxu1 %v969_v26 }
  0xac   : > { %v946_v45 = vld [vmem:[#allocation2 + $0x48] sm:$0xff]  }
  0xad   : > { %574 = vmatpush1.bf16.msra.mxu0 %v944_v43  ;;  %919 = vmatpush1.bf16.msra.mxu1 %v944_v43 }
  0xae   : > { %575 = vmatprep.subr.bf16.mxu0 %v969_v26  ;;  %910 = vmatprep.subr.bf16.mxu1 %v969_v26 }
  0xaf   : > { %v947_v46 = vld [vmem:[#allocation2 + $0x40] sm:$0xff]  }
  0xb0   : > { %v642_v52 = vpop.permute.xlu1 %641 }
  0xb1   : > { %576 = vmatpush1.bf16.msra.mxu0 %v945_v44  ;;  %920 = vmatpush1.bf16.msra.mxu1 %v945_v44 }
  0xb2   : > { %589 = vmatprep.subr.bf16.mxu0 %v969_v26  ;;  %911 = vmatprep.subr.bf16.mxu1 %v969_v26 }
  0xb4   : > { %v637_v53 = vpop.permute.xlu0 %636  ;;  %v647_v54 = vpop.permute.xlu1 %646 }
  0xb5   : > { %590 = vmatpush2.bf16.msra.mxu0 %v946_v45  ;;  %921 = vmatpush2.bf16.msra.mxu1 %v946_v45 }
  0xb6   : > { %591 = vmatprep.subr.bf16.mxu0 %v969_v26  ;;  %912 = vmatprep.subr.bf16.mxu1 %v969_v26  ;;  %v958_v26 = vld [vmem:[%s1266_s0 + $0x10] ss:$8 sps:$4 sm:$0xff]  }
  0xb8   : > { %v652_v55 = vpop.permute.xlu0 %651  ;;  %v657_v56 = vpop.permute.xlu1 %656 }
  0xb9   : > { %592 = vmatpush2.bf16.msra.mxu0 %v947_v46  ;;  %922 = vmatpush2.bf16.msra.mxu1 %v947_v46 }
  0xbc   : > { %594 = vmatmul.mubr.bf16.vlgmr.msra.gmra.mxu0 %v948_v47  ;;  %610 = vmatmul.mubr.bf16.vlgmr.msra.gmra.mxu1 %v951_v48  ;;  %v662_v57 = vpop.permute.xlu0 %661  ;;  %v667_v58 = vpop.permute.xlu1 %666 }
  0xbd   : > { %881 = vmatprep.mubr.msk.bf16.mxu0 %vm548_vm14, %v954_v49  ;;  %883 = vmatprep.mubr.msk.bf16.mxu1 %vm548_vm14, %v956_v50 }
  0xc0   : > { %v672_v59 = vpop.permute.xlu0 %671  ;;  %v693_v60 = vpop.permute.xlu1 %692 }
  0xc4   : > { %602 = vmatmul.mubr.bf16.gmra.mxu0 %v958_v26  ;;  %618 = vmatmul.mubr.bf16.gmra.mxu1 %v959_v51  ;;  %v698_v61 = vpop.permute.xlu0 %697  ;;  %v703_v62 = vpop.permute.xlu1 %702 }
  0xc8   : > { %v708_v63 = vpop.permute.xlu0 %707  ;;  %v713_v2 = vpop.permute.xlu1 %712 }
  0xcc   : > { %v718_v11 = vpop.permute.xlu0 %717  ;;  %v723_v24 = vpop.permute.xlu1 %722 }
  0xd0   : > { %v728_v38 = vpop.permute.xlu0 %727 }
 0x17c   : > { %v595_v0 = vpop.f32.mrf.mxu0  ;;  %v611_v1 = vpop.f32.mrf.mxu1 }
 0x17d   : > { %v674_v3 = vmul.f32 %v637_v53, %v595_v0  ;;  %v678_v4 = vmul.f32 %v657_v56, %v611_v1 }
 0x17e   : > { %v597_v5 = vpop.f32.mrf.mxu0  ;;  %v613_v6 = vpop.f32.mrf.mxu1 }
 0x17f   : > { %v730_v7 = vadd.f32 %v693_v60, %v674_v3  ;;  %v734_v8 = vadd.f32 %v713_v2, %v678_v4 }
 0x180   : > { %v598_v9 = vpop.f32.mrf.mxu0  ;;  %v614_v10 = vpop.f32.mrf.mxu1 }
 0x181   : > { %v738_v12 = vmax.f32 %v730_v7, 0.0  ;;  %v742_v13 = vmax.f32 %v734_v8, 0.0  ;;  %v675_v14 = vmul.f32 %v642_v52, %v598_v9  ;;  %v679_v15 = vmul.f32 %v662_v57, %v614_v10 }
 0x182   : > { %v600_v16 = vpop.f32.mrf.mxu0  ;;  %v616_v17 = vpop.f32.mrf.mxu1 }
 0x183   : > { %v895_v18 = vpack.c.bf16 %v738_v12, %v738_v12  ;;  %v899_v19 = vpack.c.bf16 %v742_v13, %v742_v13  ;;  %v731_v20 = vadd.f32 %v698_v61, %v675_v14  ;;  %v735_v21 = vadd.f32 %v718_v11, %v679_v15 }
 0x184   : > { %v603_v22 = vpop.f32.mrf.mxu0  ;;  %v619_v23 = vpop.f32.mrf.mxu1 }
 0x185   : > { %778 = vst.msk [vmem:[%s1245_s10] sm:$0xf] %vm249_vm11, %v895_v18  ;;  %782 = vst.msk [vmem:[%s1245_s10 + $0x10] sm:$0xf] %vm249_vm11, %v899_v19  ;;  %v739_v25 = vmax.f32 %v731_v20, 0.0  ;;  %v743_v27 = vmax.f32 %v735_v21, 0.0  ;;  %v676_v28 = vmul.f32 %v647_v54, %v603_v22  ;;  %v680_v29 = vmul.f32 %v667_v58, %v619_v23 }
 0x186   : > { %v605_v30 = vpop.f32.mrf.mxu0  ;;  %v621_v31 = vpop.f32.mrf.mxu1 }
 0x187   : > { %v896_v32 = vpack.c.bf16 %v739_v25, %v739_v25  ;;  %v900_v33 = vpack.c.bf16 %v743_v27, %v743_v27  ;;  %v732_v34 = vadd.f32 %v703_v62, %v676_v28  ;;  %v736_v35 = vadd.f32 %v723_v24, %v680_v29 }
 0x188   : > { %v606_v36 = vpop.f32.mrf.mxu0  ;;  %v622_v37 = vpop.f32.mrf.mxu1 }
 0x189   : > { %779 = vst.msk [vmem:[%s1245_s10 + $0x4] sm:$0xf] %vm249_vm11, %v896_v32  ;;  %783 = vst.msk [vmem:[%s1245_s10 + $0x14] sm:$0xf] %vm249_vm11, %v900_v33  ;;  %v740_v39 = vmax.f32 %v732_v34, 0.0  ;;  %v744_v40 = vmax.f32 %v736_v35, 0.0  ;;  %v677_v41 = vmul.f32 %v652_v55, %v606_v36  ;;  %v681_v42 = vmul.f32 %v672_v59, %v622_v37 }
 0x18a   : > { %v608_v43 = vpop.f32.mrf.mxu0  ;;  %v624_v44 = vpop.f32.mrf.mxu1 }
 0x18b   : > { %v897_v45 = vpack.c.bf16 %v740_v39, %v740_v39  ;;  %v901_v46 = vpack.c.bf16 %v744_v40, %v744_v40  ;;  %v733_v47 = vadd.f32 %v708_v63, %v677_v41  ;;  %v737_v48 = vadd.f32 %v728_v38, %v681_v42 }
 0x18d   : > { %780 = vst.msk [vmem:[%s1245_s10 + $0x8] sm:$0xf] %vm249_vm11, %v897_v45  ;;  %784 = vst.msk [vmem:[%s1245_s10 + $0x18] sm:$0xf] %vm249_vm11, %v901_v46  ;;  %v741_v49 = vmax.f32 %v733_v47, 0.0  ;;  %v745_v50 = vmax.f32 %v737_v48, 0.0 }
 0x18f   : > { %v898_v26 = vpack.c.bf16 %v741_v49, %v741_v49  ;;  %v902_v51 = vpack.c.bf16 %v745_v50, %v745_v50 }
 0x191   : > { %781 = vst.msk [vmem:[%s1245_s10 + $0xc] sm:$0xf] %vm249_vm11, %v898_v26  ;;  %785 = vst.msk [vmem:[%s1245_s10 + $0x1c] sm:$0xf] %vm249_vm11, %v902_v51 }
 0x192 PF: > { %s15_s18 = sadd.s32 1, %s966_s18  }
 0x193   : > { %p12_p4 = scmp.ge.s32.totalorder %s15_s18, 4  }
 0x195   :  { %14 = sbr.rel (!%p12_p4) target bundleno = 1 (0x1), region = 73 }

// kernel: basic_stem_forward.3
= control target key start
LH: loop header
LB: loop body
LE: loop exit
PB: predicated region body
PF: predicated region fallthrough
CT: control target
= control target key end

     0   :  { %s3929_s15 = smov 0   ;;  %s6603_s0 = inlined_call_operand.vmem [shape: bf16[2,64,5,5], index: 0, kind: input, shape index: {}]   ;;  %s6604_s1 = inlined_call_operand.vmem [shape: bf16[2,64,5,4], index: 1, kind: input, shape index: {}]   ;;  %s6605_s2 = inlined_call_operand.vmem [shape: bf16[2,64,4,5], index: 2, kind: input, shape index: {}]   ;;  %s6606_s3 = inlined_call_operand.vmem [shape: bf16[2,64,4,4], index: 3, kind: input, shape index: {}]   ;;  %s6607_s4 = inlined_call_operand.vmem [shape: bf16[2,64,4,4], index: 4, kind: output, shape index: {}]  }
   0x1 LB: > { %s3614_s16 = sadd.s32 4294967295, %s3901_s15   ;;  %p3618_p0 = scmp.ge.s32.totalorder %s3901_s15, 1  ;;  %s3901_s15 = sphi %s3929_s15, %s14_s15  }
   0x2   : > { %p192_p1 = scmp.lt.s32.totalorder %s3901_s15, 3 }
   0x4   : > { %p193_p2 = pnand %p3618_p0, %p192_p1 }
   0x6   : > { %196 = sbr.rel (%p193_p2) target bundleno = 587 (0x24b), region = 36 }
   0xb   : > { %p233_p3 = scmp.lt.s32.totalorder %s3614_s16, 1  ;;  %s3903_s21 = smov 127   ;;  %vm3458_vm0 = vcmask 25600  }
   0xd   : > { %s7461_s16 = smov (!%p233_p3, %s3614_s16), 1 }
   0xe   : > { %s3631_s17 = sshll.u32 %s7461_s16, 8  ;;  %s4777_s25 = sshll.u32 %s7461_s16, 7 }
   0xf   : > { %s3945_s20 = scalar_lea.vmem %s6603_s0, %s3631_s17  ;;  %s4748_s24 = scalar_lea.vmem %s6604_s1, %s3631_s17 }
  0x10   : > { %v3948_v0 = vld [vmem:[%s3945_s20 + $0x8] sm:$0x7]  ;;  %v3951_v1 = vld [vmem:[%s3945_s20] sm:$0x7]  ;;  %v3958_v2 = vld [vmem:[%s3945_s20 + $0xc] sm:$0x7]  ;;  %s4801_s28 = scalar_lea.vmem %s6605_s2, %s4777_s25  ;;  %s5792_s5 = scalar_lea.vmem %s6606_s3, %s4777_s25 }
  0x11   : > { %582 = vrot.lane.b32.xlu1 %v3948_v0, %s3903_s21  ;;  %578 = vrot.lane.b32.xlu0 %v3951_v1, %s3903_s21  ;;  %v3961_v3 = vld [vmem:[%s3945_s20 + $0x4] sm:$0x7]  ;;  %v3968_v4 = vld [vmem:[%s3945_s20 + $0x14] sm:$0x7]  ;;  %s5826_s8 = scalar_lea.vmem %s6607_s4, %s4777_s25 }
  0x12   : > { %v3971_v5 = vld [vmem:[%s3945_s20 + $0x10] sm:$0x7]  ;;  %v3978_v6 = vld [vmem:[%s3945_s20 + $0x1c] sm:$0x7]  ;;  %v3981_v7 = vld [vmem:[%s3945_s20 + $0x18] sm:$0x7] }
  0x13   : > { %v3988_v8 = vld [vmem:[%s3945_s20 + $0x24] sm:$0x7]  ;;  %v3991_v9 = vld [vmem:[%s3945_s20 + $0x20] sm:$0x7]  ;;  %v3998_v10 = vld [vmem:[%s3945_s20 + $0x2c] sm:$0x7] }
  0x14   : > { %v4001_v11 = vld [vmem:[%s3945_s20 + $0x28] sm:$0x7]  ;;  %v4008_v12 = vld [vmem:[%s3945_s20 + $0x34] sm:$0x7]  ;;  %v4011_v13 = vld [vmem:[%s3945_s20 + $0x30] sm:$0x7] }
  0x15   : > { %584 = vrot.lane.b32.xlu1 %v3958_v2, %s3903_s21  ;;  %580 = vrot.lane.b32.xlu0 %v3961_v3, %s3903_s21  ;;  %v4018_v14 = vld [vmem:[%s3945_s20 + $0x3c] sm:$0x7]  ;;  %v4021_v15 = vld [vmem:[%s3945_s20 + $0x38] sm:$0x7]  ;;  %v844_v62 = vshrl.u32 %v3961_v3, 16  ;;  %v847_v63 = vshll.u32 %v3961_v3, 16 }
  0x16   : > { %v4028_v16 = vld [vmem:[%s3945_s20 + $0x44] sm:$0x7]  ;;  %v4031_v17 = vld [vmem:[%s3945_s20 + $0x40] sm:$0x7]  ;;  %v4038_v18 = vld [vmem:[%s3945_s20 + $0x4c] sm:$0x7] }
  0x17   : > { %v4041_v19 = vld [vmem:[%s3945_s20 + $0x48] sm:$0x7]  ;;  %v4048_v20 = vld [vmem:[%s3945_s20 + $0x54] sm:$0x7]  ;;  %v4051_v21 = vld [vmem:[%s3945_s20 + $0x50] sm:$0x7] }
  0x18   : > { %v4058_v22 = vld [vmem:[%s3945_s20 + $0x5c] sm:$0x7]  ;;  %v4061_v23 = vld [vmem:[%s3945_s20 + $0x58] sm:$0x7]  ;;  %v4068_v24 = vld [vmem:[%s3945_s20 + $0x64] sm:$0x7] }
  0x19   : > { %588 = vrot.lane.b32.xlu1 %v3968_v4, %s3903_s21  ;;  %586 = vrot.lane.b32.xlu0 %v3971_v5, %s3903_s21  ;;  %v4071_v25 = vld [vmem:[%s3945_s20 + $0x60] sm:$0x7]  ;;  %v4078_v26 = vld [vmem:[%s3945_s20 + $0x6c] sm:$0x7] }
  0x1a   : > { %v4081_v27 = vld [vmem:[%s3945_s20 + $0x68] sm:$0x7]  ;;  %v4088_v28 = vld [vmem:[%s3945_s20 + $0x74] sm:$0x7]  ;;  %v4091_v29 = vld [vmem:[%s3945_s20 + $0x70] sm:$0x7] }
  0x1b   : > { %v4098_v30 = vld [vmem:[%s3945_s20 + $0x7c] sm:$0x7]  ;;  %v4101_v31 = vld [vmem:[%s3945_s20 + $0x78] sm:$0x7]  ;;  %v4108_v32 = vld [vmem:[%s3945_s20 + $0x84] sm:$0x7] }
  0x1c   : > { %v4111_v33 = vld [vmem:[%s3945_s20 + $0x80] sm:$0x7]  ;;  %v4118_v34 = vld [vmem:[%s3945_s20 + $0x8c] sm:$0x7]  ;;  %v4121_v35 = vld [vmem:[%s3945_s20 + $0x88] sm:$0x7] }
  0x1d   : > { %592 = vrot.lane.b32.xlu1 %v3978_v6, %s3903_s21  ;;  %590 = vrot.lane.b32.xlu0 %v3981_v7, %s3903_s21  ;;  %v4128_v36 = vld [vmem:[%s3945_s20 + $0x94] sm:$0x7]  ;;  %v4131_v37 = vld [vmem:[%s3945_s20 + $0x90] sm:$0x7] }
  0x1e   : > { %v4138_v38 = vld [vmem:[%s3945_s20 + $0x9c] sm:$0x7]  ;;  %v4141_v39 = vld [vmem:[%s3945_s20 + $0x98] sm:$0x7]  ;;  %v4148_v40 = vld [vmem:[%s3945_s20 + $0xa4] sm:$0x7] }
  0x1f   : > { %v4151_v41 = vld [vmem:[%s3945_s20 + $0xa0] sm:$0x7]  ;;  %v4158_v42 = vld [vmem:[%s3945_s20 + $0xac] sm:$0x7]  ;;  %v4161_v43 = vld [vmem:[%s3945_s20 + $0xa8] sm:$0x7] }
  0x20   : > { %v4168_v44 = vld [vmem:[%s3945_s20 + $0xb4] sm:$0x7]  ;;  %v4171_v45 = vld [vmem:[%s3945_s20 + $0xb0] sm:$0x7]  ;;  %v4178_v46 = vld [vmem:[%s3945_s20 + $0xbc] sm:$0x7] }
  0x21   : > { %596 = vrot.lane.b32.xlu1 %v3988_v8, %s3903_s21  ;;  %594 = vrot.lane.b32.xlu0 %v3991_v9, %s3903_s21  ;;  %6778 = vst [vmem:[#allocation2_spill] sm:$0xff] %v4168_v44  ;;  %6779 = vst [vmem:[#allocation3_spill] sm:$0xff] %v4171_v45  ;;  %v4181_v47 = vld [vmem:[%s3945_s20 + $0xb8] sm:$0x7]  ;;  %v4188_v48 = vld [vmem:[%s3945_s20 + $0xc4] sm:$0x7] }
  0x22   : > { %6780 = vst [vmem:[#allocation4_spill] sm:$0xff] %v4178_v46  ;;  %6781 = vst [vmem:[#allocation5_spill] sm:$0xff] %v4181_v47  ;;  %v4191_v49 = vld [vmem:[%s3945_s20 + $0xc0] sm:$0x7]  ;;  %v4198_v50 = vld [vmem:[%s3945_s20 + $0xcc] sm:$0x7] }
  0x23   : > { %6782 = vst [vmem:[#allocation6_spill] sm:$0xff] %v4188_v48  ;;  %6783 = vst [vmem:[#allocation7_spill] sm:$0xff] %v4191_v49  ;;  %v4201_v51 = vld [vmem:[%s3945_s20 + $0xc8] sm:$0x7]  ;;  %v4208_v52 = vld [vmem:[%s3945_s20 + $0xd4] sm:$0x7] }
  0x24   : > { %6784 = vst [vmem:[#allocation8_spill] sm:$0xff] %v4198_v50  ;;  %6785 = vst [vmem:[#allocation9_spill] sm:$0xff] %v4201_v51  ;;  %v4211_v53 = vld [vmem:[%s3945_s20 + $0xd0] sm:$0x7]  ;;  %v4218_v54 = vld [vmem:[%s3945_s20 + $0xdc] sm:$0x7] }
  0x25   : > { %600 = vrot.lane.b32.xlu1 %v3998_v10, %s3903_s21  ;;  %598 = vrot.lane.b32.xlu0 %v4001_v11, %s3903_s21  ;;  %6786 = vst [vmem:[#allocation10_spill] sm:$0xff] %v4208_v52  ;;  %6787 = vst [vmem:[#allocation11_spill] sm:$0xff] %v4211_v53  ;;  %v4221_v55 = vld [vmem:[%s3945_s20 + $0xd8] sm:$0x7]  ;;  %v4228_v56 = vld [vmem:[%s3945_s20 + $0xe4] sm:$0x7] }
  0x26   : > { %6788 = vst [vmem:[#allocation12_spill] sm:$0xff] %v4218_v54  ;;  %6789 = vst [vmem:[#allocation13_spill] sm:$0xff] %v4221_v55  ;;  %v4231_v57 = vld [vmem:[%s3945_s20 + $0xe0] sm:$0x7]  ;;  %v4238_v58 = vld [vmem:[%s3945_s20 + $0xec] sm:$0x7] }
  0x27   : > { %6790 = vst [vmem:[#allocation14_spill] sm:$0xff] %v4228_v56  ;;  %6791 = vst [vmem:[#allocation15_spill] sm:$0xff] %v4231_v57  ;;  %v4241_v59 = vld [vmem:[%s3945_s20 + $0xe8] sm:$0x7]  ;;  %v4263_v3 = vld [vmem:[%s3945_s20 + $0xf0] sm:$0x7] }
  0x28   : > { %6792 = vst [vmem:[#allocation16_spill] sm:$0xff] %v4238_v58  ;;  %6793 = vst [vmem:[#allocation17_spill] sm:$0xff] %v4241_v59 }
  0x29   : > { %604 = vrot.lane.b32.xlu1 %v4008_v12, %s3903_s21  ;;  %602 = vrot.lane.b32.xlu0 %v4011_v13, %s3903_s21 }
  0x2d   : > { %608 = vrot.lane.b32.xlu1 %v4018_v14, %s3903_s21  ;;  %606 = vrot.lane.b32.xlu0 %v4021_v15, %s3903_s21 }
  0x31   : > { %612 = vrot.lane.b32.xlu1 %v4028_v16, %s3903_s21  ;;  %610 = vrot.lane.b32.xlu0 %v4031_v17, %s3903_s21 }
  0x35   : > { %616 = vrot.lane.b32.xlu1 %v4038_v18, %s3903_s21  ;;  %614 = vrot.lane.b32.xlu0 %v4041_v19, %s3903_s21 }
  0x39   : > { %620 = vrot.lane.b32.xlu1 %v4048_v20, %s3903_s21  ;;  %618 = vrot.lane.b32.xlu0 %v4051_v21, %s3903_s21 }
  0x3d   : > { %624 = vrot.lane.b32.xlu1 %v4058_v22, %s3903_s21  ;;  %622 = vrot.lane.b32.xlu0 %v4061_v23, %s3903_s21 }
  0x41   : > { %628 = vrot.lane.b32.xlu1 %v4068_v24, %s3903_s21  ;;  %626 = vrot.lane.b32.xlu0 %v4071_v25, %s3903_s21 }
  0x45   : > { %632 = vrot.lane.b32.xlu1 %v4078_v26, %s3903_s21  ;;  %630 = vrot.lane.b32.xlu0 %v4081_v27, %s3903_s21 }
  0x49   : > { %636 = vrot.lane.b32.xlu1 %v4088_v28, %s3903_s21  ;;  %634 = vrot.lane.b32.xlu0 %v4091_v29, %s3903_s21 }
  0x4d   : > { %640 = vrot.lane.b32.xlu1 %v4098_v30, %s3903_s21  ;;  %638 = vrot.lane.b32.xlu0 %v4101_v31, %s3903_s21 }
  0x51   : > { %644 = vrot.lane.b32.xlu1 %v4108_v32, %s3903_s21  ;;  %642 = vrot.lane.b32.xlu0 %v4111_v33, %s3903_s21 }
  0x55   : > { %648 = vrot.lane.b32.xlu1 %v4118_v34, %s3903_s21  ;;  %646 = vrot.lane.b32.xlu0 %v4121_v35, %s3903_s21 }
  0x59   : > { %652 = vrot.lane.b32.xlu1 %v4128_v36, %s3903_s21  ;;  %650 = vrot.lane.b32.xlu0 %v4131_v37, %s3903_s21 }
  0x5d   : > { %656 = vrot.lane.b32.xlu1 %v4138_v38, %s3903_s21  ;;  %654 = vrot.lane.b32.xlu0 %v4141_v39, %s3903_s21 }
  0x61   : > { %660 = vrot.lane.b32.xlu1 %v4148_v40, %s3903_s21  ;;  %658 = vrot.lane.b32.xlu0 %v4151_v41, %s3903_s21 }
  0x65   : > { %664 = vrot.lane.b32.xlu1 %v4158_v42, %s3903_s21  ;;  %662 = vrot.lane.b32.xlu0 %v4161_v43, %s3903_s21 }
  0x69   : > { %668 = vrot.lane.b32.xlu1 %v4168_v44, %s3903_s21  ;;  %666 = vrot.lane.b32.xlu0 %v4171_v45, %s3903_s21 }
  0x6d   : > { %672 = vrot.lane.b32.xlu1 %v4178_v46, %s3903_s21  ;;  %670 = vrot.lane.b32.xlu0 %v4181_v47, %s3903_s21 }
  0x71   : > { %676 = vrot.lane.b32.xlu1 %v4188_v48, %s3903_s21  ;;  %674 = vrot.lane.b32.xlu0 %v4191_v49, %s3903_s21  ;;  %v883_v49 = vshll.u32 %v3968_v4, 16 }
  0x73   : > { %v885_v44 = vrot.slane %v883_v49, 5 }
  0x75   : > { %680 = vrot.lane.b32.xlu1 %v4198_v50, %s3903_s21  ;;  %678 = vrot.lane.b32.xlu0 %v4201_v51, %s3903_s21 }
  0x79   : > { %684 = vrot.lane.b32.xlu1 %v4208_v52, %s3903_s21  ;;  %682 = vrot.lane.b32.xlu0 %v4211_v53, %s3903_s21  ;;  %v4260_v53 = vld [vmem:[%s3945_s20 + $0xf4] sm:$0x7]  ;;  %v846_v52 = vrot.slane %v844_v62, 4  ;;  %v4277_v62 = vld [vmem:[%s3945_s20 + $0xfc] sm:$0x7] }
  0x7a   : > { %6796 = vst [vmem:[#allocation20_spill] sm:$0xff] %v4260_v53 }
  0x7d   : > { %688 = vrot.lane.b32.xlu1 %v4218_v54, %s3903_s21  ;;  %686 = vrot.lane.b32.xlu0 %v4221_v55, %s3903_s21  ;;  %v835_v55 = vshrl.u32 %v3951_v1, 16  ;;  %v856_v54 = vshll.u32 %v3948_v0, 16 }
  0x7f   : > { %v837_v51 = vrot.slane %v835_v55, 4  ;;  %v4280_v55 = vld [vmem:[%s3945_s20 + $0xf8] sm:$0x7] }
  0x81   : > { %692 = vrot.lane.b32.xlu1 %v4228_v56, %s3903_s21  ;;  %690 = vrot.lane.b32.xlu0 %v4231_v57, %s3903_s21  ;;  %v838_v56 = vshll.u32 %v3951_v1, 16  ;;  %v862_v57 = vshrl.u32 %v3958_v2, 16 }
  0x83   : > { %v4243_v60 = vpop.permute.xlu1 %582  ;;  %v4245_v61 = vpop.permute.xlu0 %578  ;;  %v840_v50 = vrot.slane %v838_v56, 5  ;;  %v874_v56 = vshll.u32 %v3971_v5, 16 }
  0x84   : > { %6794 = vst [vmem:[#allocation18_spill] sm:$0xff] %v4243_v60  ;;  %6795 = vst [vmem:[#allocation19_spill] sm:$0xff] %v4245_v61  ;;  %v865_v60 = vshll.u32 %v3958_v2, 16  ;;  %v853_v61 = vshrl.u32 %v3948_v0, 16  ;;  %v880_v2 = vshrl.u32 %v3968_v4, 16  ;;  %v871_v0 = vshrl.u32 %v3971_v5, 16 }
  0x85   : > { %696 = vrot.lane.b32.xlu1 %v4238_v58, %s3903_s21  ;;  %694 = vrot.lane.b32.xlu0 %v4241_v59, %s3903_s21  ;;  %v849_v59 = vrot.slane %v847_v63, 5  ;;  %v841_v45 = vor.u32 %v840_v50, %v837_v51  ;;  %v876_v5 = vrot.slane %v874_v56, 5  ;;  %v892_v50 = vshll.u32 %v3981_v7, 16 }
  0x86   : > { %v867_v48 = vrot.slane %v865_v60, 5  ;;  %v855_v47 = vrot.slane %v853_v61, 4  ;;  %v873_v60 = vrot.slane %v871_v0, 4  ;;  %v898_v61 = vshrl.u32 %v3978_v6, 16 }
  0x87   : > { %v4265_v1 = vpop.permute.xlu1 %584  ;;  %v4267_v58 = vpop.permute.xlu0 %580  ;;  %v850_v46 = vor.u32 %v849_v59, %v846_v52  ;;  %v4301_v59 = vrot.slane %v841_v45, 4  ;;  %v894_v0 = vrot.slane %v892_v50, 5  ;;  %v916_v56 = vshrl.u32 %v3988_v8, 16 }
  0x88   : > { %6797 = vst [vmem:[#allocation21_spill] sm:$0xff] %v4265_v1  ;;  %6798 = vst [vmem:[#allocation22_spill] sm:$0xff] %v4267_v58  ;;  %v864_v1 = vrot.slane %v862_v57, 4  ;;  %v858_v58 = vrot.slane %v856_v54, 5 }
  0x89   : > { %700 = vrot.lane.b32.xlu1 %v4260_v53, %s3903_s21  ;;  %698 = vrot.lane.b32.xlu0 %v4263_v3, %s3903_s21  ;;  %v882_v53 = vrot.slane %v880_v2, 4  ;;  %v4299_v52 = vrot.slane %v850_v46, 4  ;;  %6803 = vst [vmem:[#allocation27_spill] sm:$0xff] %v4301_v59  ;;  %v918_v50 = vrot.slane %v916_v56, 4 }
  0x8a   : > { %v868_v54 = vor.u32 %v867_v48, %v864_v1  ;;  %v859_v57 = vor.u32 %v858_v58, %v855_v47  ;;  %v877_v58 = vor.u32 %v876_v5, %v873_v60 }
  0x8b   : > { %v4283_v63 = vpop.permute.xlu1 %588  ;;  %v4285_v4 = vpop.permute.xlu0 %586  ;;  %v886_v48 = vor.u32 %v885_v44, %v882_v53  ;;  %v937_v44 = vshll.u32 %v3998_v10, 16  ;;  %v925_v53 = vshrl.u32 %v4001_v11, 16 }
  0x8c   : > { %6799 = vst [vmem:[#allocation23_spill] sm:$0xff] %v4283_v63  ;;  %6800 = vst [vmem:[#allocation24_spill] sm:$0xff] %v4285_v4  ;;  %v901_v63 = vshll.u32 %v3978_v6, 16  ;;  %v889_v4 = vshrl.u32 %v3981_v7, 16  ;;  %v4307_v47 = vrot.slane %v868_v54, 4  ;;  %v4309_v6 = vrot.slane %v859_v57, 4 }
  0x8d   : > { %704 = vrot.lane.b32.xlu1 %v4277_v62, %s3903_s21  ;;  %702 = vrot.lane.b32.xlu0 %v4280_v55, %s3903_s21  ;;  %v900_v7 = vrot.slane %v898_v61, 4  ;;  %v910_v54 = vshll.u32 %v3991_v9, 16  ;;  %v934_v57 = vshrl.u32 %v3998_v10, 16  ;;  %v952_v10 = vshrl.u32 %v4008_v12, 16 }
  0x8e   : > { %6804 = vst [vmem:[#allocation28_spill] sm:$0xff] %v4307_v47  ;;  %6805 = vst [vmem:[#allocation29_spill] sm:$0xff] %v4309_v6  ;;  %v903_v1 = vrot.slane %v901_v63, 5  ;;  %v891_v2 = vrot.slane %v889_v4, 4  ;;  %v928_v63 = vshll.u32 %v4001_v11, 16  ;;  %v4327_v4 = vrot.slane %v886_v48, 4 }
  0x8f   : > { %v4295_v51 = vpop.permute.xlu1 %592  ;;  %v4297_v49 = vpop.permute.xlu0 %590  ;;  %v939_v11 = vrot.slane %v937_v44, 5  ;;  %v927_v48 = vrot.slane %v925_v53, 4 }
  0x90   : > { %6801 = vst [vmem:[#allocation25_spill] sm:$0xff] %v4295_v51  ;;  %6802 = vst [vmem:[#allocation26_spill] sm:$0xff] %v4297_v49  ;;  %v919_v49 = vshll.u32 %v3988_v8, 16  ;;  %v907_v51 = vshrl.u32 %v3991_v9, 16  ;;  %v4329_v8 = vrot.slane %v877_v58, 4  ;;  %v904_v60 = vor.u32 %v903_v1, %v900_v7 }
  0x91   : > { %1540 = vrot.lane.b32.xlu1 %v4299_v52, %s3903_s21  ;;  %1538 = vrot.lane.b32.xlu0 %v4301_v59, %s3903_s21  ;;  %v895_v9 = vor.u32 %v894_v0, %v891_v2  ;;  %v955_v59 = vshll.u32 %v4008_v12, 16  ;;  %v930_v7 = vrot.slane %v928_v63, 5  ;;  %v943_v58 = vshrl.u32 %v4011_v13, 16 }
  0x92   : > { %v4347_v2 = vrot.slane %v904_v60, 4  ;;  %v970_v63 = vshrl.u32 %v4018_v14, 16  ;;  %v973_v60 = vshll.u32 %v4018_v14, 16 }
  0x93   : > { %v4311_v46 = vpop.permute.xlu1 %596  ;;  %v4313_v45 = vpop.permute.xlu0 %594  ;;  %v4349_v12 = vrot.slane %v895_v9, 4  ;;  %v945_v53 = vrot.slane %v943_v58, 4  ;;  %v961_v9 = vshrl.u32 %v4021_v15, 16 }
  0x94   : > { %6806 = vst [vmem:[#allocation30_spill] sm:$0xff] %v4311_v46  ;;  %6807 = vst [vmem:[#allocation31_spill] sm:$0xff] %v4313_v45  ;;  %v921_v45 = vrot.slane %v919_v49, 5  ;;  %v909_v46 = vrot.slane %v907_v51, 4  ;;  %v946_v49 = vshll.u32 %v4011_v13, 16  ;;  %v931_v13 = vor.u32 %v930_v7, %v927_v48 }
  0x95   : > { %1544 = vrot.lane.b32.xlu1 %v4307_v47, %s3903_s21  ;;  %1542 = vrot.lane.b32.xlu0 %v4309_v6, %s3903_s21  ;;  %v912_v47 = vrot.slane %v910_v54, 5  ;;  %v936_v6 = vrot.slane %v934_v57, 4  ;;  %v954_v54 = vrot.slane %v952_v10, 4  ;;  %v957_v57 = vrot.slane %v955_v59, 5 }
  0x96   : > { %v922_v0 = vor.u32 %v921_v45, %v918_v50  ;;  %v4373_v14 = vrot.slane %v931_v13, 4  ;;  %v975_v48 = vrot.slane %v973_v60, 5  ;;  %v963_v7 = vrot.slane %v961_v9, 4 }
  0x97   : > { %v4331_v61 = vpop.permute.xlu1 %600  ;;  %v4333_v5 = vpop.permute.xlu0 %598  ;;  %v913_v56 = vor.u32 %v912_v47, %v909_v46  ;;  %v940_v44 = vor.u32 %v939_v11, %v936_v6  ;;  %v964_v47 = vshll.u32 %v4021_v15, 16  ;;  %v958_v10 = vor.u32 %v957_v57, %v954_v54 }
  0x98   : > { %v4363_v45 = vrot.slane %v922_v0, 4  ;;  %6813 = vst [vmem:[#allocation37_spill] sm:$0xff] %v4373_v14  ;;  %v972_v15 = vrot.slane %v970_v63, 4  ;;  %v1006_v13 = vshrl.u32 %v4038_v18, 16  ;;  %v997_v54 = vshrl.u32 %v4041_v19, 16 }
  0x99   : > { %1548 = vrot.lane.b32.xlu1 %v4327_v4, %s3903_s21  ;;  %1546 = vrot.lane.b32.xlu0 %v4329_v8, %s3903_s21  ;;  %v4365_v50 = vrot.slane %v913_v56, 4  ;;  %v4371_v6 = vrot.slane %v940_v44, 4  ;;  %v966_v58 = vrot.slane %v964_v47, 5  ;;  %v988_v56 = vshrl.u32 %v4028_v16, 16 }
  0x9a   : > { %v982_v44 = vshll.u32 %v4031_v17, 16  ;;  %v1000_v57 = vshll.u32 %v4041_v19, 16  ;;  %v976_v63 = vor.u32 %v975_v48, %v972_v15 }
  0x9b   : > { %v4343_v51 = vpop.permute.xlu1 %604  ;;  %v4345_v1 = vpop.permute.xlu0 %602  ;;  %6812 = vst [vmem:[#allocation36_spill] sm:$0xff] %v4371_v6  ;;  %v990_v47 = vrot.slane %v988_v56, 4 }
  0x9c   : > { %6808 = vst [vmem:[#allocation32_spill] sm:$0xff] %v4343_v51  ;;  %6809 = vst [vmem:[#allocation33_spill] sm:$0xff] %v4345_v1  ;;  %v948_v1 = vrot.slane %v946_v49, 5  ;;  %v1027_v51 = vshll.u32 %v4048_v20, 16  ;;  %v1002_v15 = vrot.slane %v1000_v57, 5  ;;  %v1042_v57 = vshrl.u32 %v4058_v22, 16 }
  0x9d   : > { %1552 = vrot.lane.b32.xlu1 %v4347_v2, %s3903_s21  ;;  %1550 = vrot.lane.b32.xlu0 %v4349_v12, %s3903_s21 }
  0x9e   : > { %v949_v11 = vor.u32 %v948_v1, %v945_v53  ;;  %v1009_v1 = vshll.u32 %v4038_v18, 16  ;;  %v4391_v53 = vrot.slane %v958_v10, 4  ;;  %v1024_v18 = vshrl.u32 %v4048_v20, 16 }
  0x9f   : > { %v4359_v46 = vpop.permute.xlu1 %608  ;;  %v4361_v59 = vpop.permute.xlu0 %606  ;;  %v999_v10 = vrot.slane %v997_v54, 4 }
  0xa0   : > { %6810 = vst [vmem:[#allocation34_spill] sm:$0xff] %v4359_v46  ;;  %6811 = vst [vmem:[#allocation35_spill] sm:$0xff] %v4361_v59  ;;  %v991_v59 = vshll.u32 %v4028_v16, 16  ;;  %v979_v46 = vshrl.u32 %v4031_v17, 16  ;;  %v4393_v16 = vrot.slane %v949_v11, 4  ;;  %v967_v17 = vor.u32 %v966_v58, %v963_v7 }
  0xa1   : > { %1556 = vrot.lane.b32.xlu1 %v4363_v45, %s3903_s21  ;;  %1554 = vrot.lane.b32.xlu0 %v4365_v50, %s3903_s21  ;;  %v1011_v19 = vrot.slane %v1009_v1, 5  ;;  %v1015_v11 = vshrl.u32 %v4051_v21, 16  ;;  %v4411_v7 = vrot.slane %v976_v63, 4  ;;  %v1045_v63 = vshll.u32 %v4058_v22, 16 }
  0xa2   : > { %v4413_v20 = vrot.slane %v967_v17, 4  ;;  %v1033_v17 = vshrl.u32 %v4061_v23, 16 }
  0xa3   : > { %v4375_v49 = vpop.permute.xlu1 %612  ;;  %v4377_v0 = vpop.permute.xlu0 %610  ;;  %v1017_v54 = vrot.slane %v1015_v11, 4 }
  0xa4   : > { %6814 = vst [vmem:[#allocation38_spill] sm:$0xff] %v4375_v49  ;;  %6815 = vst [vmem:[#allocation39_spill] sm:$0xff] %v4377_v0  ;;  %v993_v0 = vrot.slane %v991_v59, 5  ;;  %v981_v49 = vrot.slane %v979_v46, 4  ;;  %v1018_v59 = vshll.u32 %v4051_v21, 16  ;;  %v1003_v21 = vor.u32 %v1002_v15, %v999_v10 }
  0xa5   : > { %1560 = vrot.lane.b32.xlu1 %v4371_v6, %s3903_s21  ;;  %1558 = vrot.lane.b32.xlu0 %v4373_v14, %s3903_s21  ;;  %v984_v14 = vrot.slane %v982_v44, 5  ;;  %v1008_v6 = vrot.slane %v1006_v13, 4  ;;  %v1026_v44 = vrot.slane %v1024_v18, 4  ;;  %v1029_v13 = vrot.slane %v1027_v51, 5 }
  0xa6   : > { %v994_v58 = vor.u32 %v993_v0, %v990_v47  ;;  %v4437_v22 = vrot.slane %v1003_v21, 4  ;;  %v1047_v10 = vrot.slane %v1045_v63, 5  ;;  %v1035_v15 = vrot.slane %v1033_v17, 4 }
  0xa7   : > { %v4395_v60 = vpop.permute.xlu1 %616  ;;  %v4397_v9 = vpop.permute.xlu0 %614  ;;  %v985_v56 = vor.u32 %v984_v14, %v981_v49  ;;  %v1012_v1 = vor.u32 %v1011_v19, %v1008_v6  ;;  %v1036_v14 = vshll.u32 %v4061_v23, 16  ;;  %v1030_v18 = vor.u32 %v1029_v13, %v1026_v44 }
  0xa8   : > { %v4427_v0 = vrot.slane %v994_v58, 4  ;;  %6821 = vst [vmem:[#allocation45_spill] sm:$0xff] %v4437_v22  ;;  %v1044_v23 = vrot.slane %v1042_v57, 4  ;;  %v1078_v21 = vshrl.u32 %v4078_v26, 16  ;;  %v1069_v44 = vshrl.u32 %v4081_v27, 16 }
  0xa9   : > { %1564 = vrot.lane.b32.xlu1 %v4391_v53, %s3903_s21  ;;  %1562 = vrot.lane.b32.xlu0 %v4393_v16, %s3903_s21  ;;  %v4429_v47 = vrot.slane %v985_v56, 4  ;;  %v4435_v6 = vrot.slane %v1012_v1, 4  ;;  %v1038_v11 = vrot.slane %v1036_v14, 5  ;;  %v1060_v56 = vshrl.u32 %v4068_v24, 16 }
  0xaa   : > { %v1054_v1 = vshll.u32 %v4071_v25, 16  ;;  %v1072_v13 = vshll.u32 %v4081_v27, 16  ;;  %v1048_v57 = vor.u32 %v1047_v10, %v1044_v23 }
  0xab   : > { %v4407_v46 = vpop.permute.xlu1 %620  ;;  %v4409_v48 = vpop.permute.xlu0 %618  ;;  %6820 = vst [vmem:[#allocation44_spill] sm:$0xff] %v4435_v6  ;;  %v1062_v14 = vrot.slane %v1060_v56, 4 }
  0xac   : > { %6816 = vst [vmem:[#allocation40_spill] sm:$0xff] %v4407_v46  ;;  %6817 = vst [vmem:[#allocation41_spill] sm:$0xff] %v4409_v48  ;;  %v1020_v48 = vrot.slane %v1018_v59, 5  ;;  %v1080_v46 = vrot.slane %v1078_v21, 4  ;;  %v1074_v23 = vrot.slane %v1072_v13, 5  ;;  %v1114_v13 = vshrl.u32 %v4098_v30, 16 }
  0xad   : > { %1568 = vrot.lane.b32.xlu1 %v4411_v7, %s3903_s21  ;;  %1566 = vrot.lane.b32.xlu0 %v4413_v20, %s3903_s21 }
  0xae   : > { %v1021_v19 = vor.u32 %v1020_v48, %v1017_v54  ;;  %v1081_v48 = vshll.u32 %v4078_v26, 16  ;;  %v4455_v54 = vrot.slane %v1030_v18, 4  ;;  %v1096_v26 = vshrl.u32 %v4088_v28, 16 }
  0xaf   : > { %v4423_v49 = vpop.permute.xlu1 %624  ;;  %v4425_v51 = vpop.permute.xlu0 %622  ;;  %v1071_v18 = vrot.slane %v1069_v44, 4 }
  0xb0   : > { %6818 = vst [vmem:[#allocation42_spill] sm:$0xff] %v4423_v49  ;;  %6819 = vst [vmem:[#allocation43_spill] sm:$0xff] %v4425_v51  ;;  %v1063_v51 = vshll.u32 %v4068_v24, 16  ;;  %v1051_v49 = vshrl.u32 %v4071_v25, 16  ;;  %v4457_v24 = vrot.slane %v1021_v19, 4  ;;  %v1039_v25 = vor.u32 %v1038_v11, %v1035_v15 }
  0xb1   : > { %1572 = vrot.lane.b32.xlu1 %v4427_v0, %s3903_s21  ;;  %1570 = vrot.lane.b32.xlu0 %v4429_v47, %s3903_s21  ;;  %v1083_v27 = vrot.slane %v1081_v48, 5  ;;  %v1087_v19 = vshrl.u32 %v4091_v29, 16  ;;  %v4475_v15 = vrot.slane %v1048_v57, 4  ;;  %v1117_v57 = vshll.u32 %v4098_v30, 16 }
  0xb3   : > { %v4439_v59 = vpop.permute.xlu1 %628  ;;  %v4441_v58 = vpop.permute.xlu0 %626  ;;  %6828 = vst [vmem:[#allocation52_spill] sm:$0xff] %v4475_v15  ;;  %v1084_v48 = vor.u32 %v1083_v27, %v1080_v46  ;;  %v1089_v44 = vrot.slane %v1087_v19, 4 }
  0xb4   : > { %6822 = vst [vmem:[#allocation46_spill] sm:$0xff] %v4439_v59  ;;  %6823 = vst [vmem:[#allocation47_spill] sm:$0xff] %v4441_v58  ;;  %v1065_v58 = vrot.slane %v1063_v51, 5  ;;  %v1053_v59 = vrot.slane %v1051_v49, 4  ;;  %v1090_v51 = vshll.u32 %v4091_v29, 16  ;;  %v1075_v29 = vor.u32 %v1074_v23, %v1071_v18 }
  0xb5   : > { %1576 = vrot.lane.b32.xlu1 %v4435_v6, %s3903_s21  ;;  %1574 = vrot.lane.b32.xlu0 %v4437_v22, %s3903_s21  ;;  %v1056_v22 = vrot.slane %v1054_v1, 5  ;;  %v1099_v6 = vshll.u32 %v4088_v28, 16  ;;  %v4477_v28 = vrot.slane %v1039_v25, 4  ;;  %v1098_v1 = vrot.slane %v1096_v26, 4 }
  0xb6   : > { %v1066_v11 = vor.u32 %v1065_v58, %v1062_v14  ;;  %v1105_v25 = vshrl.u32 %v4101_v31, 16  ;;  %v4499_v46 = vrot.slane %v1084_v48, 4  ;;  %v4501_v30 = vrot.slane %v1075_v29, 4 }
  0xb7   : > { %v4459_v63 = vpop.permute.xlu1 %632  ;;  %v4461_v17 = vpop.permute.xlu0 %630  ;;  %6829 = vst [vmem:[#allocation53_spill] sm:$0xff] %v4477_v28  ;;  %v1057_v56 = vor.u32 %v1056_v22, %v1053_v59  ;;  %v1101_v21 = vrot.slane %v1099_v6, 5  ;;  %v1108_v22 = vshll.u32 %v4101_v31, 16  ;;  %v1116_v31 = vrot.slane %v1114_v13, 4 }
  0xb8   : > { %6824 = vst [vmem:[#allocation48_spill] sm:$0xff] %v4459_v63  ;;  %6825 = vst [vmem:[#allocation49_spill] sm:$0xff] %v4461_v17  ;;  %v4491_v58 = vrot.slane %v1066_v11, 4  ;;  %v1119_v18 = vrot.slane %v1117_v57, 5  ;;  %v1107_v23 = vrot.slane %v1105_v25, 4  ;;  %v1123_v17 = vshrl.u32 %v4111_v33, 16 }
  0xb9   : > { %1580 = vrot.lane.b32.xlu1 %v4455_v54, %s3903_s21  ;;  %1578 = vrot.lane.b32.xlu0 %v4457_v24, %s3903_s21  ;;  %v4493_v14 = vrot.slane %v1057_v56, 4  ;;  %6832 = vst [vmem:[#allocation56_spill] sm:$0xff] %v4499_v46  ;;  %6833 = vst [vmem:[#allocation57_spill] sm:$0xff] %v4501_v30  ;;  %v1102_v26 = vor.u32 %v1101_v21, %v1098_v1  ;;  %v1110_v19 = vrot.slane %v1108_v22, 5  ;;  %v1132_v56 = vshrl.u32 %v4108_v32, 16 }
  0xba   : > { %6830 = vst [vmem:[#allocation54_spill] sm:$0xff] %v4491_v58  ;;  %v1126_v48 = vshll.u32 %v4111_v33, 16  ;;  %v1150_v29 = vshrl.u32 %v4118_v34, 16  ;;  %v1153_v1 = vshll.u32 %v4118_v34, 16  ;;  %v1144_v21 = vshll.u32 %v4121_v35, 16 }
  0xbb   : > { %v4471_v49 = vpop.permute.xlu1 %636  ;;  %v4473_v10 = vpop.permute.xlu0 %634  ;;  %6831 = vst [vmem:[#allocation55_spill] sm:$0xff] %v4493_v14  ;;  %v1120_v13 = vor.u32 %v1119_v18, %v1116_v31  ;;  %v1111_v33 = vor.u32 %v1110_v19, %v1107_v23  ;;  %v1134_v34 = vrot.slane %v1132_v56, 4  ;;  %v1125_v63 = vrot.slane %v1123_v17, 4 }
  0xbc   : > { %6826 = vst [vmem:[#allocation50_spill] sm:$0xff] %v4471_v49  ;;  %6827 = vst [vmem:[#allocation51_spill] sm:$0xff] %v4473_v10  ;;  %v1092_v10 = vrot.slane %v1090_v51, 5  ;;  %v1135_v49 = vshll.u32 %v4108_v32, 16  ;;  %v1146_v31 = vrot.slane %v1144_v21, 5 }
  0xbd   : > { %1584 = vrot.lane.b32.xlu1 %v4475_v15, %s3903_s21  ;;  %1582 = vrot.lane.b32.xlu0 %v4477_v28, %s3903_s21  ;;  %v4539_v23 = vrot.slane %v1120_v13, 4  ;;  %v4541_v19 = vrot.slane %v1111_v33, 4  ;;  %v1177_v13 = vshrl.u32 %v4141_v39, 16  ;;  %v1180_v33 = vshll.u32 %v4141_v39, 16 }
  0xbe   : > { %v1093_v27 = vor.u32 %v1092_v10, %v1089_v44  ;;  %v1141_v10 = vshrl.u32 %v4121_v35, 16  ;;  %v4519_v44 = vrot.slane %v1102_v26, 4  ;;  %v1137_v22 = vrot.slane %v1135_v49, 5 }
  0xbf   : > { %v4487_v59 = vpop.permute.xlu1 %640  ;;  %v4489_v6 = vpop.permute.xlu0 %638  ;;  %v1128_v35 = vrot.slane %v1126_v48, 5  ;;  %v1162_v49 = vshll.u32 %v4131_v37, 16  ;;  %v1179_v39 = vrot.slane %v1177_v13, 4  ;;  %v1222_v15 = vshrl.u32 %v4158_v42, 16 }
  0xc0   : > { %6834 = vst [vmem:[#allocation58_spill] sm:$0xff] %v4519_v44  ;;  %v4521_v32 = vrot.slane %v1093_v27, 4  ;;  %v1143_v26 = vrot.slane %v1141_v10, 4  ;;  %v1159_v27 = vshrl.u32 %v4131_v37, 16  ;;  %v1189_v10 = vshll.u32 %v4138_v38, 16 }
  0xc1   : > { %1588 = vrot.lane.b32.xlu1 %v4491_v58, %s3903_s21  ;;  %1586 = vrot.lane.b32.xlu0 %v4493_v14, %s3903_s21  ;;  %v1152_v14 = vrot.slane %v1150_v29, 4  ;;  %v1155_v58 = vrot.slane %v1153_v1, 5  ;;  %v1129_v56 = vor.u32 %v1128_v35, %v1125_v63  ;;  %v1186_v1 = vshrl.u32 %v4138_v38, 16 }
  0xc2   : > { %6835 = vst [vmem:[#allocation59_spill] sm:$0xff] %v4521_v32  ;;  %v1161_v37 = vrot.slane %v1159_v27, 4  ;;  %v1164_v21 = vrot.slane %v1162_v49, 5  ;;  %v1207_v27 = vshll.u32 %v4148_v40, 16  ;;  %v1182_v49 = vrot.slane %v1180_v33, 5 }
  0xc3   : > { %v4503_v51 = vpop.permute.xlu1 %644  ;;  %v4505_v11 = vpop.permute.xlu0 %642  ;;  %v1156_v38 = vor.u32 %v1155_v58, %v1152_v14  ;;  %v1188_v35 = vrot.slane %v1186_v1, 4  ;;  %v1225_v13 = vshll.u32 %v4158_v42, 16 }
  0xc4   : > { %v1165_v1 = vor.u32 %v1164_v21, %v1161_v37  ;;  %v1209_v28 = vrot.slane %v1207_v27, 5  ;;  %v1183_v21 = vor.u32 %v1182_v49, %v1179_v39  ;;  %v1224_v27 = vrot.slane %v1222_v15, 4 }
  0xc5   : > { %1592 = vrot.lane.b32.xlu1 %v4499_v46, %s3903_s21  ;;  %1590 = vrot.lane.b32.xlu0 %v4501_v30, %s3903_s21  ;;  %v1168_v46 = vshrl.u32 %v4128_v36, 16  ;;  %v1171_v30 = vshll.u32 %v4128_v36, 16  ;;  %v1138_v36 = vor.u32 %v1137_v22, %v1134_v34  ;;  %v1147_v22 = vor.u32 %v1146_v31, %v1143_v26 }
  0xc6   : > { %v4571_v26 = vrot.slane %v1156_v38, 4  ;;  %v1213_v38 = vshrl.u32 %v4161_v43, 16  ;;  %v4589_v37 = vrot.slane %v1165_v1, 4  ;;  %v4605_v39 = vrot.slane %v1183_v21, 4 }
  0xc7   : > { %v4523_v57 = vpop.permute.xlu1 %648  ;;  %v4525_v25 = vpop.permute.xlu0 %646  ;;  %v1170_v48 = vrot.slane %v1168_v46, 4  ;;  %v1173_v29 = vrot.slane %v1171_v30, 5  ;;  %v4555_v46 = vrot.slane %v1138_v36, 4  ;;  %v4557_v30 = vrot.slane %v1129_v56, 4 }
  0xc8   : > { %v1195_v36 = vshrl.u32 %v4151_v41, 16  ;;  %v1198_v56 = vshll.u32 %v4151_v41, 16  ;;  %v4573_v31 = vrot.slane %v1147_v22, 4  ;;  %v1216_v22 = vshll.u32 %v4161_v43, 16  ;;  %6843 = vst [vmem:[#allocation67_spill] sm:$0xff] %v4589_v37  ;;  %6849 = vst [vmem:[#allocation69_spill] sm:$0xff] %v4605_v39 }
  0xc9   : > { %1596 = vrot.lane.b32.xlu1 %v4519_v44, %s3903_s21  ;;  %1594 = vrot.lane.b32.xlu0 %v4521_v32, %s3903_s21  ;;  %v1191_v32 = vrot.slane %v1189_v10, 5  ;;  %v1204_v44 = vshrl.u32 %v4148_v40, 16  ;;  %v1174_v40 = vor.u32 %v1173_v29, %v1170_v48  ;;  %v1215_v43 = vrot.slane %v1213_v38, 4 }
  0xca   : > { %v1197_v41 = vrot.slane %v1195_v36, 4  ;;  %v1200_v33 = vrot.slane %v1198_v56, 5  ;;  %v1218_v56 = vrot.slane %v1216_v22, 5 }
  0xcb   : > { %v4535_v17 = vpop.permute.xlu1 %652  ;;  %v4537_v18 = vpop.permute.xlu0 %650  ;;  %v1206_v10 = vrot.slane %v1204_v44, 4  ;;  %v4587_v29 = vrot.slane %v1174_v40, 4  ;;  %v1192_v42 = vor.u32 %v1191_v32, %v1188_v35  ;;  %v6845_v40 = vld [vmem:[#allocation3_spill] sm:$0xff] }
  0xcc   : > { %v1234_v1 = vshll.u32 %v6845_v40, 16 }
  0xcd   : > { %1600 = vrot.lane.b32.xlu1 %v4539_v23, %s3903_s21  ;;  %1598 = vrot.lane.b32.xlu0 %v4541_v19, %s3903_s21  ;;  %6842 = vst [vmem:[#allocation66_spill] sm:$0xff] %v4587_v29  ;;  %v4603_v35 = vrot.slane %v1192_v42, 4  ;;  %v1210_v49 = vor.u32 %v1209_v28, %v1206_v10  ;;  %v6851_v42 = vld [vmem:[#allocation5_spill] sm:$0xff] }
  0xce   : > { %v1252_v21 = vshll.u32 %v6851_v42, 16 }
  0xcf   : > { %v4551_v34 = vpop.permute.xlu1 %656  ;;  %v4553_v63 = vpop.permute.xlu0 %654  ;;  %6848 = vst [vmem:[#allocation68_spill] sm:$0xff] %v4603_v35  ;;  %v4619_v10 = vrot.slane %v1210_v49, 4  ;;  %v6857_v49 = vld [vmem:[#allocation7_spill] sm:$0xff] }
  0xd0   : > { %6836 = vst [vmem:[#allocation60_spill] sm:$0xff] %v4551_v34  ;;  %6837 = vst [vmem:[#allocation61_spill] sm:$0xff] %v4553_v63  ;;  %v3836_v34 = vld.sshfl [vmem:[%s4801_s28 + $0x8] sm:$0x3 pattern:$0x76325410] }
  0xd1   : > { %1604 = vrot.lane.b32.xlu1 %v4555_v46, %s3903_s21  ;;  %1602 = vrot.lane.b32.xlu0 %v4557_v30, %s3903_s21  ;;  %6854 = vst [vmem:[#allocation70_spill] sm:$0xff] %v4619_v10 }
  0xd3   : > { %v4567_v58 = vpop.permute.xlu1 %660  ;;  %v4569_v14 = vpop.permute.xlu0 %658 }
  0xd4   : > { %6838 = vst [vmem:[#allocation62_spill] sm:$0xff] %v4567_v58  ;;  %6839 = vst [vmem:[#allocation63_spill] sm:$0xff] %v4569_v14  ;;  %v1227_v14 = vrot.slane %v1225_v13, 5  ;;  %v6844_v58 = vld [vmem:[#allocation2_spill] sm:$0xff] }
  0xd5   : > { %1608 = vrot.lane.b32.xlu1 %v4571_v26, %s3903_s21  ;;  %1606 = vrot.lane.b32.xlu0 %v4573_v31, %s3903_s21  ;;  %v1240_v63 = vshrl.u32 %v6844_v58, 16  ;;  %v1243_v36 = vshll.u32 %v6844_v58, 16  ;;  %v1201_v58 = vor.u32 %v1200_v33, %v1197_v41 }
  0xd6   : > { %v1228_v33 = vor.u32 %v1227_v14, %v1224_v27 }
  0xd7   : > { %v4583_v48 = vpop.permute.xlu1 %664  ;;  %v4585_v44 = vpop.permute.xlu0 %662  ;;  %v1242_v13 = vrot.slane %v1240_v63, 4  ;;  %v4621_v41 = vrot.slane %v1201_v58, 4  ;;  %v1270_v58 = vshll.u32 %v6857_v49, 16 }
  0xd8   : > { %6840 = vst [vmem:[#allocation64_spill] sm:$0xff] %v4583_v48  ;;  %6841 = vst [vmem:[#allocation65_spill] sm:$0xff] %v4585_v44  ;;  %v1231_v44 = vshrl.u32 %v6845_v40, 16  ;;  %v1245_v48 = vrot.slane %v1243_v36, 5  ;;  %v1236_v40 = vrot.slane %v1234_v1, 5  ;;  %v4635_v27 = vrot.slane %v1228_v33, 4 }
  0xd9   : > { %1612 = vrot.lane.b32.xlu1 %v4587_v29, %s3903_s21  ;;  %1610 = vrot.lane.b32.xlu0 %v4589_v37, %s3903_s21  ;;  %v6850_v29 = vld [vmem:[#allocation4_spill] sm:$0xff]  ;;  %6855 = vst [vmem:[#allocation71_spill] sm:$0xff] %v4621_v41  ;;  %v6863_v33 = vld [vmem:[#allocation9_spill] sm:$0xff] }
  0xda   : > { %v1258_v37 = vshrl.u32 %v6850_v29, 16  ;;  %v1261_v38 = vshll.u32 %v6850_v29, 16  ;;  %v1233_v22 = vrot.slane %v1231_v44, 4  ;;  %v1219_v29 = vor.u32 %v1218_v56, %v1215_v43  ;;  %6860 = vst [vmem:[#allocation72_spill] sm:$0xff] %v4635_v27 }
  0xdb   : > { %v4599_v32 = vpop.permute.xlu1 %668  ;;  %v4601_v15 = vpop.permute.xlu0 %666  ;;  %v1246_v56 = vor.u32 %v1245_v48, %v1242_v13 }
  0xdc   : > { %6846 = vst [vmem:[#allocation2_spill] sm:$0xff] %v4599_v32  ;;  %6847 = vst [vmem:[#allocation3_spill] sm:$0xff] %v4601_v15  ;;  %v1249_v15 = vshrl.u32 %v6851_v42, 16  ;;  %v1260_v36 = vrot.slane %v1258_v37, 4  ;;  %v1263_v32 = vrot.slane %v1261_v38, 5  ;;  %v1254_v42 = vrot.slane %v1252_v21, 5 }
  0xdd   : > { %1616 = vrot.lane.b32.xlu1 %v4603_v35, %s3903_s21  ;;  %1614 = vrot.lane.b32.xlu0 %v4605_v39, %s3903_s21  ;;  %v6856_v35 = vld [vmem:[#allocation6_spill] sm:$0xff]  ;;  %v4637_v43 = vrot.slane %v1219_v29, 4  ;;  %v1288_v29 = vshll.u32 %v6863_v33, 16  ;;  %v4651_v13 = vrot.slane %v1246_v56, 4  ;;  %v6869_v56 = vld [vmem:[#allocation11_spill] sm:$0xff] }
  0xde   : > { %v1276_v39 = vshrl.u32 %v6856_v35, 16  ;;  %v1279_v44 = vshll.u32 %v6856_v35, 16  ;;  %v1251_v1 = vrot.slane %v1249_v15, 4  ;;  %v1237_v35 = vor.u32 %v1236_v40, %v1233_v22 }
  0xdf   : > { %v4615_v28 = vpop.permute.xlu1 %672  ;;  %v4617_v63 = vpop.permute.xlu0 %670  ;;  %6861 = vst [vmem:[#allocation73_spill] sm:$0xff] %v4637_v43  ;;  %6866 = vst [vmem:[#allocation74_spill] sm:$0xff] %v4651_v13  ;;  %v1264_v40 = vor.u32 %v1263_v32, %v1260_v36 }
  0xe0   : > { %6852 = vst [vmem:[#allocation4_spill] sm:$0xff] %v4615_v28  ;;  %6853 = vst [vmem:[#allocation5_spill] sm:$0xff] %v4617_v63  ;;  %v1267_v63 = vshrl.u32 %v6857_v49, 16  ;;  %v1278_v38 = vrot.slane %v1276_v39, 4  ;;  %v1281_v28 = vrot.slane %v1279_v44, 5  ;;  %v1272_v49 = vrot.slane %v1270_v58, 5 }
  0xe1   : > { %1620 = vrot.lane.b32.xlu1 %v4619_v10, %s3903_s21  ;;  %1618 = vrot.lane.b32.xlu0 %v4621_v41, %s3903_s21  ;;  %v6862_v10 = vld [vmem:[#allocation8_spill] sm:$0xff]  ;;  %v4653_v22 = vrot.slane %v1237_v35, 4  ;;  %v1306_v35 = vshll.u32 %v6869_v56, 16  ;;  %v4667_v36 = vrot.slane %v1264_v40, 4  ;;  %v6875_v40 = vld [vmem:[#allocation13_spill] sm:$0xff] }
  0xe2   : > { %v1294_v41 = vshrl.u32 %v6862_v10, 16  ;;  %v1297_v15 = vshll.u32 %v6862_v10, 16  ;;  %v1269_v21 = vrot.slane %v1267_v63, 4  ;;  %v1255_v10 = vor.u32 %v1254_v42, %v1251_v1 }
  0xe3   : > { %v4631_v14 = vpop.permute.xlu1 %676  ;;  %v4633_v37 = vpop.permute.xlu0 %674  ;;  %6867 = vst [vmem:[#allocation75_spill] sm:$0xff] %v4653_v22  ;;  %6872 = vst [vmem:[#allocation76_spill] sm:$0xff] %v4667_v36  ;;  %v1282_v42 = vor.u32 %v1281_v28, %v1278_v38 }
  0xe4   : > { %6858 = vst [vmem:[#allocation6_spill] sm:$0xff] %v4631_v14  ;;  %6859 = vst [vmem:[#allocation7_spill] sm:$0xff] %v4633_v37  ;;  %v1285_v37 = vshrl.u32 %v6863_v33, 16  ;;  %v1296_v44 = vrot.slane %v1294_v41, 4  ;;  %v1299_v14 = vrot.slane %v1297_v15, 5  ;;  %v1290_v33 = vrot.slane %v1288_v29, 5 }
  0xe5   : > { %1624 = vrot.lane.b32.xlu1 %v4635_v27, %s3903_s21  ;;  %1622 = vrot.lane.b32.xlu0 %v4637_v43, %s3903_s21  ;;  %v6868_v27 = vld [vmem:[#allocation10_spill] sm:$0xff]  ;;  %v4669_v1 = vrot.slane %v1255_v10, 4  ;;  %v1324_v10 = vshll.u32 %v6875_v40, 16  ;;  %v4683_v38 = vrot.slane %v1282_v42, 4  ;;  %v6881_v42 = vld [vmem:[#allocation15_spill] sm:$0xff] }
  0xe6   : > { %v1312_v43 = vshrl.u32 %v6868_v27, 16  ;;  %v1315_v63 = vshll.u32 %v6868_v27, 16  ;;  %v1287_v58 = vrot.slane %v1285_v37, 4  ;;  %v1273_v27 = vor.u32 %v1272_v49, %v1269_v21 }
  0xe7   : > { %v4647_v48 = vpop.permute.xlu1 %680  ;;  %v4649_v39 = vpop.permute.xlu0 %678  ;;  %6873 = vst [vmem:[#allocation77_spill] sm:$0xff] %v4669_v1  ;;  %6878 = vst [vmem:[#allocation78_spill] sm:$0xff] %v4683_v38  ;;  %v1300_v49 = vor.u32 %v1299_v14, %v1296_v44 }
  0xe8   : > { %6864 = vst [vmem:[#allocation8_spill] sm:$0xff] %v4647_v48  ;;  %6865 = vst [vmem:[#allocation9_spill] sm:$0xff] %v4649_v39  ;;  %v1303_v39 = vshrl.u32 %v6869_v56, 16  ;;  %v1314_v15 = vrot.slane %v1312_v43, 4  ;;  %v1317_v48 = vrot.slane %v1315_v63, 5  ;;  %v1308_v56 = vrot.slane %v1306_v35, 5 }
  0xe9   : > { %1628 = vrot.lane.b32.xlu1 %v4651_v13, %s3903_s21  ;;  %1626 = vrot.lane.b32.xlu0 %v4653_v22, %s3903_s21  ;;  %v6874_v13 = vld [vmem:[#allocation12_spill] sm:$0xff]  ;;  %v4685_v21 = vrot.slane %v1273_v27, 4  ;;  %v1342_v27 = vshll.u32 %v6881_v42, 16  ;;  %v4699_v44 = vrot.slane %v1300_v49, 4  ;;  %v6887_v49 = vld [vmem:[#allocation17_spill] sm:$0xff] }
  0xea   : > { %v1330_v22 = vshrl.u32 %v6874_v13, 16  ;;  %v1333_v37 = vshll.u32 %v6874_v13, 16  ;;  %v1305_v29 = vrot.slane %v1303_v39, 4  ;;  %v1291_v13 = vor.u32 %v1290_v33, %v1287_v58 }
  0xeb   : > { %v4663_v32 = vpop.permute.xlu1 %684  ;;  %v4665_v41 = vpop.permute.xlu0 %682  ;;  %6879 = vst [vmem:[#allocation79_spill] sm:$0xff] %v4685_v21  ;;  %6884 = vst [vmem:[#allocation80_spill] sm:$0xff] %v4699_v44  ;;  %v1318_v33 = vor.u32 %v1317_v48, %v1314_v15 }
  0xec   : > { %6870 = vst [vmem:[#allocation10_spill] sm:$0xff] %v4663_v32  ;;  %6871 = vst [vmem:[#allocation11_spill] sm:$0xff] %v4665_v41  ;;  %v1321_v41 = vshrl.u32 %v6875_v40, 16  ;;  %v1332_v63 = vrot.slane %v1330_v22, 4  ;;  %v1335_v32 = vrot.slane %v1333_v37, 5  ;;  %v1326_v40 = vrot.slane %v1324_v10, 5 }
  0xed   : > { %1632 = vrot.lane.b32.xlu1 %v4667_v36, %s3903_s21  ;;  %1630 = vrot.lane.b32.xlu0 %v4669_v1, %s3903_s21  ;;  %v6880_v36 = vld [vmem:[#allocation14_spill] sm:$0xff]  ;;  %v4701_v58 = vrot.slane %v1291_v13, 4  ;;  %v1360_v13 = vshll.u32 %v6887_v49, 16  ;;  %v4715_v15 = vrot.slane %v1318_v33, 4  ;;  %v1375_v33 = vshrl.u32 %v4263_v3, 16 }
  0xee   : > { %v1348_v1 = vshrl.u32 %v6880_v36, 16  ;;  %v1351_v39 = vshll.u32 %v6880_v36, 16  ;;  %v1323_v35 = vrot.slane %v1321_v41, 4  ;;  %v1309_v36 = vor.u32 %v1308_v56, %v1305_v29 }
  0xef   : > { %v4679_v28 = vpop.permute.xlu1 %688  ;;  %v4681_v43 = vpop.permute.xlu0 %686  ;;  %6885 = vst [vmem:[#allocation81_spill] sm:$0xff] %v4701_v58  ;;  %6890 = vst [vmem:[#allocation82_spill] sm:$0xff] %v4715_v15  ;;  %v1336_v56 = vor.u32 %v1335_v32, %v1332_v63 }
  0xf0   : > { %6876 = vst [vmem:[#allocation12_spill] sm:$0xff] %v4679_v28  ;;  %6877 = vst [vmem:[#allocation13_spill] sm:$0xff] %v4681_v43  ;;  %v1339_v43 = vshrl.u32 %v6881_v42, 16  ;;  %v1350_v37 = vrot.slane %v1348_v1, 4  ;;  %v1353_v28 = vrot.slane %v1351_v39, 5  ;;  %v1344_v42 = vrot.slane %v1342_v27, 5 }
  0xf1   : > { %1636 = vrot.lane.b32.xlu1 %v4683_v38, %s3903_s21  ;;  %1634 = vrot.lane.b32.xlu0 %v4685_v21, %s3903_s21  ;;  %v6886_v38 = vld [vmem:[#allocation16_spill] sm:$0xff]  ;;  %v4717_v29 = vrot.slane %v1309_v36, 4  ;;  %v1378_v36 = vshll.u32 %v4263_v3, 16  ;;  %v1377_v3 = vrot.slane %v1375_v33, 4 }
  0xf2   : > { %v1366_v21 = vshrl.u32 %v6886_v38, 16  ;;  %v1369_v41 = vshll.u32 %v6886_v38, 16  ;;  %v1341_v10 = vrot.slane %v1339_v43, 4  ;;  %v1327_v38 = vor.u32 %v1326_v40, %v1323_v35  ;;  %v6892_v39 = vld [vmem:[#allocation20_spill] sm:$0xff] }
  0xf3   : > { %v4695_v14 = vpop.permute.xlu1 %692  ;;  %v4697_v22 = vpop.permute.xlu0 %690  ;;  %6891 = vst [vmem:[#allocation83_spill] sm:$0xff] %v4717_v29  ;;  %v1387_v43 = vshll.u32 %v6892_v39, 16  ;;  %v1354_v40 = vor.u32 %v1353_v28, %v1350_v37 }
  0xf4   : > { %6882 = vst [vmem:[#allocation14_spill] sm:$0xff] %v4695_v14  ;;  %6883 = vst [vmem:[#allocation15_spill] sm:$0xff] %v4697_v22  ;;  %v1357_v22 = vshrl.u32 %v6887_v49, 16  ;;  %v1384_v14 = vshrl.u32 %v6892_v39, 16  ;;  %v1362_v49 = vrot.slane %v1360_v13, 5  ;;  %v4733_v35 = vrot.slane %v1327_v38, 4 }
  0xf5   : > { %1640 = vrot.lane.b32.xlu1 %v4699_v44, %s3903_s21  ;;  %1638 = vrot.lane.b32.xlu0 %v4701_v58, %s3903_s21  ;;  %v1368_v44 = vrot.slane %v1366_v21, 4  ;;  %v1371_v58 = vrot.slane %v1369_v41, 5  ;;  %v4731_v21 = vrot.slane %v1336_v56, 4  ;;  %v1345_v41 = vor.u32 %v1344_v42, %v1341_v10 }
  0xf6   : > { %v1359_v27 = vrot.slane %v1357_v22, 4  ;;  %6896 = vst [vmem:[#allocation86_spill] sm:$0xff] %v4733_v35  ;;  %v1386_v39 = vrot.slane %v1384_v14, 4  ;;  %v1402_v22 = vshrl.u32 %v4277_v62, 16  ;;  %v1405_v13 = vshll.u32 %v4277_v62, 16 }
  0xf7   : > { %v4711_v48 = vpop.permute.xlu1 %696  ;;  %v4713_v1 = vpop.permute.xlu0 %694  ;;  %6895 = vst [vmem:[#allocation85_spill] sm:$0xff] %v4731_v21  ;;  %v1380_v56 = vrot.slane %v1378_v36, 5  ;;  %v1396_v38 = vshll.u32 %v4280_v55, 16  ;;  %v4754_v14 = vrot.slane %v1354_v40, 4  ;;  %v4756_v37 = vrot.slane %v1345_v41, 4 }
  0xf8   : > { %6888 = vst [vmem:[#allocation16_spill] sm:$0xff] %v4711_v48  ;;  %6889 = vst [vmem:[#allocation17_spill] sm:$0xff] %v4713_v1  ;;  %v1389_v1 = vrot.slane %v1387_v43, 5  ;;  %v1393_v48 = vshrl.u32 %v4280_v55, 16  ;;  %v1372_v10 = vor.u32 %v1371_v58, %v1368_v44  ;;  %v1363_v42 = vor.u32 %v1362_v49, %v1359_v27  ;;  %v322_v40 = vld [vmem:[%s4748_s24] sm:$0x7] }
  0xf9   : > { %1644 = vrot.lane.b32.xlu1 %v4715_v15, %s3903_s21  ;;  %1642 = vrot.lane.b32.xlu0 %v4717_v29, %s3903_s21  ;;  %6899 = vst [vmem:[#allocation89_spill] sm:$0xff] %v4754_v14  ;;  %6900 = vst [vmem:[#allocation90_spill] sm:$0xff] %v4756_v37  ;;  %v1404_v55 = vrot.slane %v1402_v22, 4  ;;  %v1407_v43 = vrot.slane %v1405_v13, 5  ;;  %v1398_v36 = vrot.slane %v1396_v38, 5  ;;  %v1381_v49 = vor.u32 %v1380_v56, %v1377_v3 }
  0xfa   : > { %v1395_v33 = vrot.slane %v1393_v48, 4  ;;  %v4768_v44 = vrot.slane %v1372_v10, 4  ;;  %v4770_v58 = vrot.slane %v1363_v42, 4  ;;  %v1390_v27 = vor.u32 %v1389_v1, %v1386_v39  ;;  %v325_v38 = vld [vmem:[%s4748_s24 + $0xc] sm:$0x7] }
  0xfb   : > { %v4727_v32 = vpop.permute.xlu1 %700  ;;  %v4729_v63 = vpop.permute.xlu0 %698  ;;  %v1859_v48 = vshrl.u32 %v322_v40, 16  ;;  %v1862_v13 = vshll.u32 %v322_v40, 16  ;;  %v4786_v39 = vrot.slane %v1381_v49, 4  ;;  %v1408_v3 = vor.u32 %v1407_v43, %v1404_v55  ;;  %v327_v40 = vld [vmem:[%s4748_s24 + $0x14] sm:$0x7] }
  0xfc   : > { %6893 = vst [vmem:[#allocation20_spill] sm:$0xff] %v4727_v32  ;;  %6894 = vst [vmem:[#allocation84_spill] sm:$0xff] %v4729_v63  ;;  %v4784_v1 = vrot.slane %v1390_v27, 4  ;;  %v1399_v56 = vor.u32 %v1398_v36, %v1395_v33  ;;  %v1886_v43 = vshrl.u32 %v325_v38, 16  ;;  %v1889_v33 = vshll.u32 %v325_v38, 16  ;;  %v6919_v32 = vld [vmem:[#allocation22_spill] sm:$0xff] }
  0xfd   : > { %1648 = vrot.lane.b32.xlu1 %v4731_v21, %s3903_s21  ;;  %1646 = vrot.lane.b32.xlu0 %v4733_v35, %s3903_s21  ;;  %6903 = vst [vmem:[#allocation93_spill] sm:$0xff] %v4768_v44  ;;  %6904 = vst [vmem:[#allocation94_spill] sm:$0xff] %v4770_v58  ;;  %v4803_v55 = vrot.slane %v1859_v48, 4  ;;  %v6917_v48 = vld [vmem:[#allocation18_spill] sm:$0xff]  ;;  %v326_v38 = vld [vmem:[%s4748_s24 + $0x10] sm:$0x7] }
  0xfe   : > { %6907 = vst [vmem:[#allocation97_spill] sm:$0xff] %v4784_v1  ;;  %6908 = vst [vmem:[#allocation98_spill] sm:$0xff] %v4786_v39  ;;  %v3832_v35 = vld.sshfl [vmem:[%s4801_s28] sm:$0x3 pattern:$0x76325410] }
  0xff   : > { %v4750_v62 = vpop.permute.xlu1 %704  ;;  %v4752_v28 = vpop.permute.xlu0 %702  ;;  %6911 = vst [vmem:[#allocation101_spill] sm:$0xff] %v4803_v55  ;;  %v3650_v21 = vld [vmem:[%s3945_s20 + $0x14] sm:$0x7] }
 0x100   : > { %6897 = vst [vmem:[#allocation87_spill] sm:$0xff] %v4750_v62  ;;  %6898 = vst [vmem:[#allocation88_spill] sm:$0xff] %v4752_v28  ;;  %v323_v62 = vld [vmem:[%s4748_s24 + $0x4] sm:$0x7] }
 0x101   : > { %1652 = vrot.lane.b32.xlu1 %v4754_v14, %s3903_s21  ;;  %1650 = vrot.lane.b32.xlu0 %v4756_v37, %s3903_s21  ;;  %v1868_v63 = vshrl.u32 %v323_v62, 16  ;;  %v1871_v22 = vshll.u32 %v323_v62, 16  ;;  %v324_v62 = vld [vmem:[%s4748_s24 + $0x8] sm:$0x7] }
 0x102   : > { %v1877_v36 = vshrl.u32 %v324_v62, 16  ;;  %v3831_v14 = vld.sshfl [vmem:[%s4801_s28 + $0x2] sm:$0x3 pattern:$0x76325410] }
 0x103   : > { %v4763_v28 = vpop.permute.xlu1 %1540  ;;  %v4766_v41 = vpop.permute.xlu0 %1538 }
 0x104   : > { %6901 = vst [vmem:[#allocation91_spill] sm:$0xff] %v4763_v28  ;;  %6902 = vst [vmem:[#allocation92_spill] sm:$0xff] %v4766_v41  ;;  %v3648_v28 = vld [vmem:[%s3945_s20 + $0x4] sm:$0x7] }
 0x105   : > { %1656 = vrot.lane.b32.xlu1 %v4768_v44, %s3903_s21  ;;  %1654 = vrot.lane.b32.xlu0 %v4770_v58, %s3903_s21  ;;  %v4789_v58 = vrot.slane %v1868_v63, 4  ;;  %v4791_v44 = vrot.slane %v1871_v22, 5  ;;  %v4805_v63 = vrot.slane %v1862_v13, 5  ;;  %v4812_v22 = vrot.slane %v1408_v3, 4  ;;  %v6918_v13 = vld [vmem:[#allocation19_spill] sm:$0xff] }
 0x106   : > { %v771_v37 = vmax.bf16 %v3648_v28, %v6919_v32  ;;  %v4831_v3 = vrot.slane %v1886_v43, 4  ;;  %v1907_v32 = vshll.u32 %v327_v40, 16  ;;  %v6925_v28 = vld [vmem:[#allocation27_spill] sm:$0xff] }
 0x107   : > { %v4780_v10 = vpop.permute.xlu1 %1544  ;;  %v4782_v42 = vpop.permute.xlu0 %1542  ;;  %6909 = vst [vmem:[#allocation99_spill] sm:$0xff] %v4789_v58  ;;  %6910 = vst [vmem:[#allocation100_spill] sm:$0xff] %v4791_v44  ;;  %v3834_v44 = vld.sshfl [vmem:[%s4801_s28 + $0x4] sm:$0x3 pattern:$0x76325410] }
 0x108   : > { %6905 = vst [vmem:[#allocation95_spill] sm:$0xff] %v4780_v10  ;;  %6906 = vst [vmem:[#allocation96_spill] sm:$0xff] %v4782_v42  ;;  %v4814_v42 = vrot.slane %v1399_v56, 4  ;;  %v3646_v10 = vld [vmem:[%s3945_s20 + $0x8] sm:$0x7]  ;;  %v4835_v56 = vrot.slane %v1889_v33, 5  ;;  %v4847_v58 = vmax.bf16 %v4299_v52, %v771_v37 }
 0x109   : > { %1660 = vrot.lane.b32.xlu1 %v4784_v1, %s3903_s21  ;;  %1658 = vrot.lane.b32.xlu0 %v4786_v39, %s3903_s21  ;;  %6912 = vst [vmem:[#allocation102_spill] sm:$0xff] %v4805_v63  ;;  %6915 = vst [vmem:[#allocation105_spill] sm:$0xff] %v4812_v22  ;;  %v772_v39 = vmax.bf16 %v3646_v10, %v6917_v48  ;;  %v3647_v1 = vld [vmem:[%s3945_s20] sm:$0x7]  ;;  %v1895_v48 = vshrl.u32 %v326_v38, 16  ;;  %v6927_v33 = vld [vmem:[#allocation29_spill] sm:$0xff] }
 0x10a   : > { %6916 = vst [vmem:[#allocation106_spill] sm:$0xff] %v4814_v42  ;;  %v770_v41 = vmax.bf16 %v3647_v1, %v6918_v13  ;;  %6920 = vst [vmem:[#allocation18_spill] sm:$0xff] %v4831_v3  ;;  %v1904_v1 = vshrl.u32 %v327_v40, 16  ;;  %v1898_v13 = vshll.u32 %v326_v38, 16  ;;  %v328_v63 = vld [vmem:[%s4748_s24 + $0x18] sm:$0x7] }
 0x10b   : > { %v4808_v27 = vpop.permute.xlu1 %1548  ;;  %v4810_v49 = vpop.permute.xlu0 %1546  ;;  %v3833_v38 = vld.sshfl [vmem:[%s4801_s28 + $0x6] sm:$0x3 pattern:$0x76325410]  ;;  %v3651_v52 = vld [vmem:[%s3945_s20 + $0x10] sm:$0x7] }
 0x10c   : > { %6913 = vst [vmem:[#allocation103_spill] sm:$0xff] %v4808_v27  ;;  %6914 = vst [vmem:[#allocation104_spill] sm:$0xff] %v4810_v49  ;;  %v1880_v27 = vshll.u32 %v324_v62, 16  ;;  %v4837_v62 = vrot.slane %v1877_v36, 4  ;;  %v3649_v49 = vld [vmem:[%s3945_s20 + $0xc] sm:$0x7]  ;;  %v4850_v55 = vmax.bf16 %v6925_v28, %v770_v41  ;;  %v4853_v36 = vmax.bf16 %v6927_v33, %v772_v39 }
 0x10d   : > { %1664 = vrot.lane.b32.xlu1 %v4812_v22, %s3903_s21  ;;  %1662 = vrot.lane.b32.xlu0 %v4814_v42, %s3903_s21  ;;  %v329_v42 = vld [vmem:[%s4748_s24 + $0x1c] sm:$0x7]  ;;  %v6930_v37 = vld [vmem:[#allocation24_spill] sm:$0xff]  ;;  %v4866_v39 = vrot.slane %v1904_v1, 4  ;;  %v331_v28 = vld [vmem:[%s4748_s24 + $0x24] sm:$0x7] }
 0x10e   : > { %v6923_v22 = vld [vmem:[#allocation21_spill] sm:$0xff]  ;;  %6926 = vst [vmem:[#allocation27_spill] sm:$0xff] %v4850_v55  ;;  %6928 = vst [vmem:[#allocation29_spill] sm:$0xff] %v4853_v36  ;;  %v774_v41 = vmax.bf16 %v3651_v52, %v6930_v37  ;;  %v6937_v55 = vld [vmem:[#allocation26_spill] sm:$0xff] }
 0x10f   : > { %v4840_v10 = vpop.permute.xlu1 %1552  ;;  %v4842_v43 = vpop.permute.xlu0 %1550  ;;  %v773_v40 = vmax.bf16 %v3649_v49, %v6923_v22  ;;  %6924 = vst [vmem:[#allocation21_spill] sm:$0xff] %v4847_v58  ;;  %v4868_v49 = vrot.slane %v1907_v32, 5  ;;  %v1922_v22 = vshrl.u32 %v329_v42, 16  ;;  %v3652_v52 = vld [vmem:[%s3945_s20 + $0x1c] sm:$0x7]  ;;  %v6938_v58 = vld [vmem:[#allocation28_spill] sm:$0xff] }
 0x110   : > { %6921 = vst [vmem:[#allocation19_spill] sm:$0xff] %v4840_v10  ;;  %6922 = vst [vmem:[#allocation22_spill] sm:$0xff] %v4842_v43  ;;  %v6929_v10 = vld [vmem:[#allocation23_spill] sm:$0xff]  ;;  %v4860_v43 = vrot.slane %v1880_v27, 5  ;;  %v4872_v27 = vrot.slane %v1898_v13, 5  ;;  %v6936_v37 = vld [vmem:[#allocation25_spill] sm:$0xff] }
 0x111   : > { %v775_v29 = vmax.bf16 %v3650_v21, %v6929_v10  ;;  %3140 = vrot.lane.b32.xlu1 %v3831_v14, %s3903_s21  ;;  %3138 = vrot.lane.b32.xlu0 %v3832_v35, %s3903_s21  ;;  %6931 = vst [vmem:[#allocation23_spill] sm:$0xff] %v4866_v39  ;;  %v4870_v21 = vrot.slane %v1895_v48, 4  ;;  %v1925_v10 = vshll.u32 %v329_v42, 16  ;;  %v1913_v14 = vshrl.u32 %v328_v63, 16  ;;  %v3653_v36 = vld [vmem:[%s3945_s20 + $0x18] sm:$0x7] }
 0x112   : > { %6933 = vst [vmem:[#allocation107_spill] sm:$0xff] %v4872_v27  ;;  %v777_v1 = vmax.bf16 %v3652_v52, %v6936_v37  ;;  %v776_v32 = vmax.bf16 %v3653_v36, %v6937_v55  ;;  %v4884_v15 = vmax.bf16 %v6938_v58, %v773_v40  ;;  %v330_v48 = vld [vmem:[%s4748_s24 + $0x20] sm:$0x7]  ;;  %v4897_v58 = vmax.bf16 %v4329_v8, %v774_v41  ;;  %v3654_v8 = vld [vmem:[%s3945_s20 + $0x24] sm:$0x7]  ;;  %v6964_v39 = vld [vmem:[#allocation33_spill] sm:$0xff] }
 0x113   : > { %6932 = vst [vmem:[#allocation24_spill] sm:$0xff] %v4870_v21  ;;  %v4875_v33 = vpop.permute.xlu1 %1556  ;;  %v4877_v35 = vpop.permute.xlu0 %1554  ;;  %v3835_v13 = vld.sshfl [vmem:[%s4801_s28 + $0xa] sm:$0x3 pattern:$0x76325410]  ;;  %v4899_v55 = vrot.slane %v1922_v22, 4 }
 0x114   : > { %6934 = vst [vmem:[#allocation108_spill] sm:$0xff] %v4875_v33  ;;  %6935 = vst [vmem:[#allocation109_spill] sm:$0xff] %v4877_v35  ;;  %v4892_v33 = vmax.bf16 %v4327_v4, %v775_v29  ;;  %v1916_v35 = vshll.u32 %v328_v63, 16  ;;  %v1940_v40 = vshrl.u32 %v331_v28, 16  ;;  %v1943_v36 = vshll.u32 %v331_v28, 16  ;;  %v6945_v41 = vld [vmem:[#allocation30_spill] sm:$0xff] }
 0x115   : > { %3144 = vrot.lane.b32.xlu1 %v3833_v38, %s3903_s21  ;;  %3142 = vrot.lane.b32.xlu0 %v3834_v44, %s3903_s21  ;;  %6940 = vst [vmem:[#allocation26_spill] sm:$0xff] %v4897_v58  ;;  %6941 = vst [vmem:[#allocation28_spill] sm:$0xff] %v4899_v55  ;;  %v4901_v52 = vrot.slane %v1925_v10, 5  ;;  %v4903_v4 = vrot.slane %v1913_v14, 4  ;;  %v1931_v29 = vshrl.u32 %v330_v48, 16  ;;  %v1934_v63 = vshll.u32 %v330_v48, 16 }
 0x116   : > { %6939 = vst [vmem:[#allocation25_spill] sm:$0xff] %v4892_v33  ;;  %v333_v38 = vld [vmem:[%s4748_s24 + $0x2c] sm:$0x7]  ;;  %v779_v42 = vmax.bf16 %v3654_v8, %v6945_v41  ;;  %v4913_v22 = vmax.bf16 %v4347_v2, %v777_v1  ;;  %v4916_v28 = vmax.bf16 %v4349_v12, %v776_v32  ;;  %v332_v10 = vld [vmem:[%s4748_s24 + $0x28] sm:$0x7]  ;;  %v4925_v3 = vrot.slane %v1916_v35, 5 }
 0x117   : > { %6942 = vst [vmem:[#allocation110_spill] sm:$0xff] %v4903_v4  ;;  %v4906_v37 = vpop.permute.xlu1 %1560  ;;  %v4908_v44 = vpop.permute.xlu0 %1558  ;;  %v3837_v14 = vld.sshfl [vmem:[%s4801_s28 + $0xe] sm:$0x3 pattern:$0x76325410]  ;;  %v4929_v2 = vrot.slane %v1940_v40, 4 }
 0x118   : > { %6943 = vst [vmem:[#allocation111_spill] sm:$0xff] %v4906_v37  ;;  %6944 = vst [vmem:[#allocation112_spill] sm:$0xff] %v4908_v44  ;;  %v3838_v58 = vld.sshfl [vmem:[%s4801_s28 + $0xc] sm:$0x3 pattern:$0x76325410] }
 0x119   : > { %6946 = vst [vmem:[#allocation30_spill] sm:$0xff] %v4913_v22  ;;  %6947 = vst [vmem:[#allocation113_spill] sm:$0xff] %v4916_v28  ;;  %v3655_v33 = vld [vmem:[%s3945_s20 + $0x20] sm:$0x7]  ;;  %v6948_v37 = vld [vmem:[#allocation31_spill] sm:$0xff]  ;;  %3148 = vrot.lane.b32.xlu1 %v3835_v13, %s3903_s21  ;;  %3146 = vrot.lane.b32.xlu0 %v3836_v34, %s3903_s21  ;;  %v4931_v12 = vrot.slane %v1943_v36, 5 }
 0x11a   : > { %v778_v44 = vmax.bf16 %v3655_v33, %v6948_v37  ;;  %6949 = vst [vmem:[#allocation31_spill] sm:$0xff] %v4925_v3  ;;  %v1958_v1 = vshrl.u32 %v333_v38, 16  ;;  %v1961_v32 = vshll.u32 %v333_v38, 16  ;;  %v4933_v8 = vrot.slane %v1931_v29, 4  ;;  %v335_v35 = vld [vmem:[%s4748_s24 + $0x34] sm:$0x7] }
 0x11b   : > { %v4935_v41 = vrot.slane %v1934_v63, 5  ;;  %v1949_v33 = vshrl.u32 %v332_v10, 16  ;;  %v4938_v37 = vpop.permute.xlu1 %1564  ;;  %v4940_v13 = vpop.permute.xlu0 %1562  ;;  %v3656_v40 = vld [vmem:[%s3945_s20 + $0x2c] sm:$0x7]  ;;  %v3657_v48 = vld [vmem:[%s3945_s20 + $0x28] sm:$0x7]  ;;  %v4949_v29 = vmax.bf16 %v4363_v45, %v779_v42 }
 0x11c   : > { %6950 = vst [vmem:[#allocation114_spill] sm:$0xff] %v4933_v8  ;;  %6951 = vst [vmem:[#allocation115_spill] sm:$0xff] %v4938_v37  ;;  %v781_v36 = vmax.bf16 %v3656_v40, %v4331_v61  ;;  %v780_v28 = vmax.bf16 %v3657_v48, %v4333_v5  ;;  %v334_v63 = vld [vmem:[%s4748_s24 + $0x30] sm:$0x7]  ;;  %v1952_v34 = vshll.u32 %v332_v10, 16  ;;  %v4961_v61 = vrot.slane %v1958_v1, 4 }
 0x11d   : > { %6952 = vst [vmem:[#allocation116_spill] sm:$0xff] %v4940_v13  ;;  %6953 = vst [vmem:[#allocation117_spill] sm:$0xff] %v4949_v29  ;;  %v3839_v38 = vld.sshfl [vmem:[%s4801_s28 + $0x12] sm:$0x3 pattern:$0x76325410]  ;;  %v4957_v13 = vmax.bf16 %v4365_v50, %v778_v44  ;;  %3152 = vrot.lane.b32.xlu1 %v3837_v14, %s3903_s21  ;;  %3150 = vrot.lane.b32.xlu0 %v3838_v58, %s3903_s21 }
 0x11e   : > { %v3840_v22 = vld.sshfl [vmem:[%s4801_s28 + $0x10] sm:$0x3 pattern:$0x76325410]  ;;  %6955 = vst [vmem:[#allocation119_spill] sm:$0xff] %v4961_v61  ;;  %v4963_v5 = vrot.slane %v1961_v32, 5 }
 0x11f   : > { %6954 = vst [vmem:[#allocation118_spill] sm:$0xff] %v4957_v13  ;;  %v1976_v45 = vshrl.u32 %v335_v35, 16  ;;  %v1979_v42 = vshll.u32 %v335_v35, 16  ;;  %v4965_v48 = vrot.slane %v1949_v33, 4  ;;  %v1967_v40 = vshrl.u32 %v334_v63, 16  ;;  %v4968_v10 = vpop.permute.xlu1 %1568  ;;  %v4970_v14 = vpop.permute.xlu0 %1566  ;;  %v6959_v37 = vld [vmem:[#allocation32_spill] sm:$0xff] }
 0x120   : > { %v1970_v50 = vshll.u32 %v334_v63, 16  ;;  %v337_v44 = vld [vmem:[%s4748_s24 + $0x3c] sm:$0x7]  ;;  %6957 = vst [vmem:[#allocation121_spill] sm:$0xff] %v4968_v10  ;;  %6958 = vst [vmem:[#allocation122_spill] sm:$0xff] %v4970_v14  ;;  %v6960_v13 = vld [vmem:[#allocation36_spill] sm:$0xff] }
 0x121   : > { %6956 = vst [vmem:[#allocation120_spill] sm:$0xff] %v4965_v48  ;;  %v3658_v1 = vld [vmem:[%s3945_s20 + $0x34] sm:$0x7]  ;;  %v4977_v29 = vmax.bf16 %v6960_v13, %v781_v36  ;;  %v6962_v35 = vld [vmem:[#allocation37_spill] sm:$0xff]  ;;  %v3659_v14 = vld [vmem:[%s3945_s20 + $0x30] sm:$0x7]  ;;  %3156 = vrot.lane.b32.xlu1 %v3839_v38, %s3903_s21  ;;  %3154 = vrot.lane.b32.xlu0 %v3840_v22, %s3903_s21 }
 0x122   : > { %v783_v32 = vmax.bf16 %v3658_v1, %v6959_v37  ;;  %v4980_v21 = vmax.bf16 %v6962_v35, %v780_v28  ;;  %v336_v33 = vld [vmem:[%s4748_s24 + $0x38] sm:$0x7]  ;;  %v3841_v63 = vld.sshfl [vmem:[%s4801_s28 + $0x16] sm:$0x3 pattern:$0x76325410]  ;;  %v782_v58 = vmax.bf16 %v3659_v14, %v6964_v39 }
 0x123   : > { %6961 = vst [vmem:[#allocation32_spill] sm:$0xff] %v4977_v29  ;;  %v3842_v27 = vld.sshfl [vmem:[%s4801_s28 + $0x14] sm:$0x3 pattern:$0x76325410]  ;;  %v4989_v55 = vrot.slane %v1952_v34, 5  ;;  %v5002_v14 = vpop.permute.xlu1 %1572  ;;  %v5004_v38 = vpop.permute.xlu0 %1570 }
 0x124   : > { %6963 = vst [vmem:[#allocation36_spill] sm:$0xff] %v4980_v21  ;;  %v4993_v28 = vrot.slane %v1976_v45, 4  ;;  %v4995_v37 = vrot.slane %v1979_v42, 5  ;;  %v1994_v13 = vshrl.u32 %v337_v44, 16  ;;  %v1997_v36 = vshll.u32 %v337_v44, 16  ;;  %6968 = vst [vmem:[#allocation124_spill] sm:$0xff] %v5002_v14 }
 0x125   : > { %v4997_v1 = vrot.slane %v1967_v40, 4  ;;  %v4999_v35 = vrot.slane %v1970_v50, 5  ;;  %v1985_v39 = vshrl.u32 %v336_v33, 16  ;;  %v339_v34 = vld [vmem:[%s4748_s24 + $0x44] sm:$0x7]  ;;  %6969 = vst [vmem:[#allocation125_spill] sm:$0xff] %v5004_v38  ;;  %v5013_v40 = vmax.bf16 %v4391_v53, %v783_v32  ;;  %3160 = vrot.lane.b32.xlu1 %v3841_v63, %s3903_s21  ;;  %3158 = vrot.lane.b32.xlu0 %v3842_v27, %s3903_s21 }
 0x126   : > { %6965 = vst [vmem:[#allocation37_spill] sm:$0xff] %v4993_v28  ;;  %v3660_v45 = vld [vmem:[%s3945_s20 + $0x3c] sm:$0x7]  ;;  %v6970_v42 = vld [vmem:[#allocation34_spill] sm:$0xff]  ;;  %v3661_v21 = vld [vmem:[%s3945_s20 + $0x38] sm:$0x7]  ;;  %v5021_v38 = vmax.bf16 %v4393_v16, %v782_v58 }
 0x127   : > { %6966 = vst [vmem:[#allocation33_spill] sm:$0xff] %v4997_v1  ;;  %6967 = vst [vmem:[#allocation123_spill] sm:$0xff] %v4999_v35  ;;  %v785_v10 = vmax.bf16 %v3660_v45, %v6970_v42  ;;  %v6971_v29 = vld [vmem:[#allocation35_spill] sm:$0xff]  ;;  %v338_v50 = vld [vmem:[%s4748_s24 + $0x40] sm:$0x7]  ;;  %v1988_v22 = vshll.u32 %v336_v33, 16  ;;  %v5032_v33 = vpop.permute.xlu1 %1576  ;;  %v5034_v63 = vpop.permute.xlu0 %1574 }
 0x128   : > { %v784_v4 = vmax.bf16 %v3661_v21, %v6971_v29  ;;  %6972 = vst [vmem:[#allocation34_spill] sm:$0xff] %v5013_v40  ;;  %v3843_v44 = vld.sshfl [vmem:[%s4801_s28 + $0x1a] sm:$0x3 pattern:$0x76325410]  ;;  %6973 = vst [vmem:[#allocation35_spill] sm:$0xff] %v5021_v38 }
 0x129   : > { %v3844_v3 = vld.sshfl [vmem:[%s4801_s28 + $0x18] sm:$0x3 pattern:$0x76325410]  ;;  %v5025_v21 = vrot.slane %v1994_v13, 4  ;;  %v5027_v53 = vrot.slane %v1997_v36, 5  ;;  %v5041_v38 = vmax.bf16 %v4411_v7, %v785_v10  ;;  %3164 = vrot.lane.b32.xlu1 %v3843_v44, %s3903_s21 }
 0x12a   : > { %v2012_v29 = vshrl.u32 %v339_v34, 16  ;;  %v2015_v32 = vshll.u32 %v339_v34, 16  ;;  %v5029_v45 = vrot.slane %v1985_v39, 4  ;;  %v2003_v42 = vshrl.u32 %v338_v50, 16  ;;  %v341_v58 = vld [vmem:[%s4748_s24 + $0x4c] sm:$0x7]  ;;  %3162 = vrot.lane.b32.xlu0 %v3844_v3, %s3903_s21 }
 0x12b   : > { %6974 = vst [vmem:[#allocation126_spill] sm:$0xff] %v5025_v21  ;;  %6975 = vst [vmem:[#allocation127_spill] sm:$0xff] %v5027_v53  ;;  %v2006_v16 = vshll.u32 %v338_v50, 16  ;;  %v3662_v13 = vld [vmem:[%s3945_s20 + $0x44] sm:$0x7]  ;;  %v5044_v39 = vmax.bf16 %v4413_v20, %v784_v4  ;;  %v6982_v8 = vld [vmem:[#allocation39_spill] sm:$0xff]  ;;  %v5069_v3 = vpop.permute.xlu0 %1578 }
 0x12c   : > { %6976 = vst [vmem:[#allocation128_spill] sm:$0xff] %v5029_v45  ;;  %6977 = vst [vmem:[#allocation129_spill] sm:$0xff] %v5032_v33  ;;  %v6979_v14 = vld [vmem:[#allocation38_spill] sm:$0xff]  ;;  %v340_v34 = vld [vmem:[%s4748_s24 + $0x48] sm:$0x7]  ;;  %v5053_v61 = vrot.slane %v1988_v22, 5  ;;  %v5066_v33 = vpop.permute.xlu1 %1580 }
 0x12d   : > { %6978 = vst [vmem:[#allocation130_spill] sm:$0xff] %v5034_v63  ;;  %v787_v36 = vmax.bf16 %v3662_v13, %v6979_v14  ;;  %6980 = vst [vmem:[#allocation38_spill] sm:$0xff] %v5041_v38  ;;  %v3845_v50 = vld.sshfl [vmem:[%s4801_s28 + $0x1e] sm:$0x3 pattern:$0x76325410] }
 0x12e   : > { %6981 = vst [vmem:[#allocation131_spill] sm:$0xff] %v5044_v39  ;;  %v3846_v40 = vld.sshfl [vmem:[%s4801_s28 + $0x1c] sm:$0x3 pattern:$0x76325410]  ;;  %6983 = vst [vmem:[#allocation39_spill] sm:$0xff] %v5053_v61  ;;  %3168 = vrot.lane.b32.xlu1 %v3845_v50, %s3903_s21 }
 0x12f   : > { %v3663_v63 = vld [vmem:[%s3945_s20 + $0x40] sm:$0x7]  ;;  %v5057_v7 = vrot.slane %v2012_v29, 4  ;;  %v5059_v20 = vrot.slane %v2015_v32, 5  ;;  %v2030_v4 = vshrl.u32 %v341_v58, 16  ;;  %v2033_v10 = vshll.u32 %v341_v58, 16  ;;  %3166 = vrot.lane.b32.xlu0 %v3846_v40, %s3903_s21 }
 0x130   : > { %v786_v27 = vmax.bf16 %v3663_v63, %v6982_v8  ;;  %v343_v14 = vld [vmem:[%s4748_s24 + $0x54] sm:$0x7]  ;;  %v5062_v13 = vrot.slane %v2003_v42, 4  ;;  %v5064_v8 = vrot.slane %v2006_v16, 5  ;;  %v2021_v22 = vshrl.u32 %v340_v34, 16  ;;  %6986 = vst [vmem:[#allocation134_spill] sm:$0xff] %v5066_v33  ;;  %v5096_v33 = vpop.permute.xlu1 %1584 }
 0x131   : > { %6984 = vst [vmem:[#allocation132_spill] sm:$0xff] %v5057_v7  ;;  %6985 = vst [vmem:[#allocation133_spill] sm:$0xff] %v5059_v20  ;;  %v2024_v63 = vshll.u32 %v340_v34, 16  ;;  %v342_v44 = vld [vmem:[%s4748_s24 + $0x50] sm:$0x7]  ;;  %v5074_v32 = vmax.bf16 %v4427_v0, %v787_v36  ;;  %v5090_v0 = vrot.slane %v2033_v10, 5 }
 0x132   : > { %6987 = vst [vmem:[#allocation135_spill] sm:$0xff] %v5069_v3  ;;  %v3664_v29 = vld [vmem:[%s3945_s20 + $0x4c] sm:$0x7]  ;;  %v345_v38 = vld [vmem:[%s4748_s24 + $0x5c] sm:$0x7]  ;;  %v5084_v34 = vmax.bf16 %v4429_v47, %v786_v27  ;;  %v2048_v3 = vshrl.u32 %v343_v14, 16 }
 0x133   : > { %v789_v39 = vmax.bf16 %v3664_v29, %v4395_v60  ;;  %6988 = vst [vmem:[#allocation136_spill] sm:$0xff] %v5074_v32  ;;  %v3847_v58 = vld.sshfl [vmem:[%s4801_s28 + $0x22] sm:$0x3 pattern:$0x76325410]  ;;  %v5088_v60 = vrot.slane %v2030_v4, 4 }
 0x134   : > { %v3848_v48 = vld.sshfl [vmem:[%s4801_s28 + $0x20] sm:$0x3 pattern:$0x76325410]  ;;  %6989 = vst [vmem:[#allocation137_spill] sm:$0xff] %v5084_v34  ;;  %v2051_v36 = vshll.u32 %v343_v14, 16  ;;  %v5099_v34 = vpop.permute.xlu0 %1582  ;;  %3172 = vrot.lane.b32.xlu1 %v3847_v58, %s3903_s21  ;;  %v5126_v58 = vpop.permute.xlu1 %1588 }
 0x135   : > { %v2039_v29 = vshrl.u32 %v342_v44, 16  ;;  %v5092_v42 = vrot.slane %v2021_v22, 4  ;;  %v5094_v16 = vrot.slane %v2024_v63, 5  ;;  %v2042_v47 = vshll.u32 %v342_v44, 16  ;;  %6990 = vst [vmem:[#allocation138_spill] sm:$0xff] %v5096_v33  ;;  %6991 = vst [vmem:[#allocation139_spill] sm:$0xff] %v5099_v34  ;;  %3170 = vrot.lane.b32.xlu0 %v3848_v48, %s3903_s21 }
 0x136   : > { %v2066_v27 = vshrl.u32 %v345_v38, 16  ;;  %v344_v50 = vld [vmem:[%s4748_s24 + $0x58] sm:$0x7]  ;;  %v3665_v40 = vld [vmem:[%s3945_s20 + $0x48] sm:$0x7]  ;;  %v6992_v32 = vld [vmem:[#allocation44_spill] sm:$0xff] }
 0x137   : > { %v788_v4 = vmax.bf16 %v3665_v40, %v4397_v9  ;;  %v5104_v10 = vmax.bf16 %v6992_v32, %v789_v39  ;;  %v347_v14 = vld [vmem:[%s4748_s24 + $0x64] sm:$0x7]  ;;  %v5113_v33 = vrot.slane %v2048_v3, 4  ;;  %v2069_v34 = vshll.u32 %v345_v38, 16  ;;  %v346_v44 = vld [vmem:[%s4748_s24 + $0x60] sm:$0x7] }
 0x138   : > { %v3849_v1 = vld.sshfl [vmem:[%s4801_s28 + $0x26] sm:$0x3 pattern:$0x76325410]  ;;  %v5117_v9 = vrot.slane %v2051_v36, 5  ;;  %v5119_v39 = vrot.slane %v2039_v29, 4  ;;  %v5128_v48 = vpop.permute.xlu0 %1586 }
 0x139   : > { %6993 = vst [vmem:[#allocation44_spill] sm:$0xff] %v5104_v10  ;;  %v3850_v22 = vld.sshfl [vmem:[%s4801_s28 + $0x24] sm:$0x3 pattern:$0x76325410]  ;;  %v2057_v32 = vshrl.u32 %v344_v50, 16  ;;  %3176 = vrot.lane.b32.xlu1 %v3849_v1, %s3903_s21 }
 0x13a   : > { %v2060_v40 = vshll.u32 %v344_v50, 16  ;;  %v5122_v63 = vrot.slane %v2042_v47, 5  ;;  %v5124_v3 = vrot.slane %v2066_v27, 4  ;;  %v2084_v38 = vshrl.u32 %v347_v14, 16  ;;  %6995 = vst [vmem:[#allocation141_spill] sm:$0xff] %v5126_v58  ;;  %6996 = vst [vmem:[#allocation142_spill] sm:$0xff] %v5128_v48  ;;  %3174 = vrot.lane.b32.xlu0 %v3850_v22, %s3903_s21 }
 0x13b   : > { %v2087_v10 = vshll.u32 %v347_v14, 16  ;;  %v349_v36 = vld [vmem:[%s4748_s24 + $0x6c] sm:$0x7]  ;;  %v3666_v29 = vld [vmem:[%s3945_s20 + $0x54] sm:$0x7]  ;;  %v6998_v53 = vld [vmem:[#allocation41_spill] sm:$0xff] }
 0x13c   : > { %6994 = vst [vmem:[#allocation140_spill] sm:$0xff] %v5124_v3  ;;  %v6997_v45 = vld [vmem:[#allocation40_spill] sm:$0xff]  ;;  %v6999_v35 = vld [vmem:[#allocation45_spill] sm:$0xff]  ;;  %v348_v47 = vld [vmem:[%s4748_s24 + $0x68] sm:$0x7]  ;;  %v5143_v58 = vrot.slane %v2069_v34, 5  ;;  %v5158_v22 = vpop.permute.xlu0 %1590 }
 0x13d   : > { %v791_v61 = vmax.bf16 %v3666_v29, %v6997_v45  ;;  %v3667_v21 = vld [vmem:[%s3945_s20 + $0x50] sm:$0x7]  ;;  %v5136_v28 = vmax.bf16 %v6999_v35, %v788_v4  ;;  %v3851_v27 = vld.sshfl [vmem:[%s4801_s28 + $0x2a] sm:$0x3 pattern:$0x76325410] }
 0x13e   : > { %v790_v50 = vmax.bf16 %v3667_v21, %v6998_v53  ;;  %v3852_v3 = vld.sshfl [vmem:[%s4801_s28 + $0x28] sm:$0x3 pattern:$0x76325410]  ;;  %v2075_v48 = vshrl.u32 %v346_v44, 16  ;;  %v5148_v21 = vrot.slane %v2057_v32, 4  ;;  %3180 = vrot.lane.b32.xlu1 %v3851_v27, %s3903_s21 }
 0x13f   : > { %7000 = vst [vmem:[#allocation40_spill] sm:$0xff] %v5136_v28  ;;  %v351_v45 = vld [vmem:[%s4748_s24 + $0x74] sm:$0x7]  ;;  %v5150_v35 = vrot.slane %v2060_v40, 5  ;;  %v2078_v53 = vshll.u32 %v346_v44, 16  ;;  %v2102_v4 = vshrl.u32 %v349_v36, 16  ;;  %v5156_v28 = vpop.permute.xlu1 %1592  ;;  %v5162_v32 = vmax.bf16 %v4455_v54, %v791_v61  ;;  %3178 = vrot.lane.b32.xlu0 %v3852_v3, %s3903_s21 }
 0x140   : > { %v5152_v29 = vrot.slane %v2084_v38, 4  ;;  %v5154_v14 = vrot.slane %v2087_v10, 5  ;;  %v2105_v34 = vshll.u32 %v349_v36, 16  ;;  %7002 = vst [vmem:[#allocation45_spill] sm:$0xff] %v5156_v28  ;;  %v2093_v1 = vshrl.u32 %v348_v47, 16  ;;  %7003 = vst [vmem:[#allocation143_spill] sm:$0xff] %v5158_v22 }
 0x141   : > { %v3853_v7 = vld.sshfl [vmem:[%s4801_s28 + $0x2e] sm:$0x3 pattern:$0x76325410]  ;;  %v2096_v40 = vshll.u32 %v348_v47, 16  ;;  %v2120_v44 = vshrl.u32 %v351_v45, 16 }
 0x142   : > { %7001 = vst [vmem:[#allocation41_spill] sm:$0xff] %v5154_v14  ;;  %v350_v20 = vld [vmem:[%s4748_s24 + $0x70] sm:$0x7]  ;;  %v5168_v14 = vrot.slane %v2075_v48, 4  ;;  %v2123_v36 = vshll.u32 %v351_v45, 16  ;;  %v5176_v28 = vrot.slane %v2078_v53, 5  ;;  %3184 = vrot.lane.b32.xlu1 %v3853_v7, %s3903_s21 }
 0x143   : > { %v3854_v38 = vld.sshfl [vmem:[%s4801_s28 + $0x2c] sm:$0x3 pattern:$0x76325410]  ;;  %v3668_v22 = vld [vmem:[%s3945_s20 + $0x7c] sm:$0x7]  ;;  %v5185_v3 = vpop.permute.xlu1 %1596 }
 0x144   : > { %7004 = vst [vmem:[#allocation144_spill] sm:$0xff] %v5168_v14  ;;  %v801_v54 = vmax.bf16 %v3668_v22, %v4487_v59  ;;  %v3669_v61 = vld [vmem:[%s3945_s20 + $0x78] sm:$0x7]  ;;  %7005 = vst [vmem:[#allocation145_spill] sm:$0xff] %v5176_v28  ;;  %v5178_v10 = vrot.slane %v2102_v4, 4  ;;  %v5181_v14 = vrot.slane %v2105_v34, 5  ;;  %v5187_v22 = vpop.permute.xlu0 %1594  ;;  %v5196_v34 = vmax.bf16 %v4457_v24, %v790_v50  ;;  %3182 = vrot.lane.b32.xlu0 %v3854_v38, %s3903_s21 }
 0x145   : > { %v800_v47 = vmax.bf16 %v3669_v61, %v4489_v6  ;;  %v353_v48 = vld [vmem:[%s4748_s24 + $0x7c] sm:$0x7]  ;;  %v5183_v27 = vrot.slane %v2093_v1, 4  ;;  %7009 = vst [vmem:[#allocation149_spill] sm:$0xff] %v5185_v3  ;;  %v2111_v45 = vshrl.u32 %v350_v20, 16  ;;  %v2114_v59 = vshll.u32 %v350_v20, 16 }
 0x146   : > { %7006 = vst [vmem:[#allocation146_spill] sm:$0xff] %v5178_v10  ;;  %7007 = vst [vmem:[#allocation147_spill] sm:$0xff] %v5181_v14  ;;  %v3855_v6 = vld.sshfl [vmem:[%s4801_s28 + $0x32] sm:$0x3 pattern:$0x76325410] }
 0x147   : > { %7008 = vst [vmem:[#allocation148_spill] sm:$0xff] %v5183_v27  ;;  %7010 = vst [vmem:[#allocation150_spill] sm:$0xff] %v5187_v22  ;;  %v5191_v53 = vld [vmem:[%s3945_s20 + $0x5c] sm:$0x7]  ;;  %v7011_v61 = vld [vmem:[#allocation42_spill] sm:$0xff]  ;;  %v5198_v1 = vrot.slane %v2096_v40, 5  ;;  %v5214_v40 = vmax.bf16 %v4539_v23, %v801_v54  ;;  %3188 = vrot.lane.b32.xlu1 %v3855_v6, %s3903_s21 }
 0x148   : > { %v5200_v27 = vrot.slane %v2120_v44, 4  ;;  %v352_v3 = vld [vmem:[%s4748_s24 + $0x78] sm:$0x7]  ;;  %v5204_v10 = vrot.slane %v2123_v36, 5  ;;  %v2138_v20 = vshrl.u32 %v353_v48, 16  ;;  %v5217_v44 = vmax.bf16 %v4541_v19, %v800_v47 }
 0x149   : > { %v3856_v14 = vld.sshfl [vmem:[%s4801_s28 + $0x30] sm:$0x3 pattern:$0x76325410]  ;;  %v355_v22 = vld [vmem:[%s4748_s24 + $0x84] sm:$0x7] }
 0x14a   : > { %7012 = vst [vmem:[#allocation42_spill] sm:$0xff] %v5200_v27  ;;  %7013 = vst [vmem:[#allocation151_spill] sm:$0xff] %v5204_v10  ;;  %v3671_v28 = vld [vmem:[%s3945_s20 + $0x84] sm:$0x7]  ;;  %v3672_v24 = vld [vmem:[%s3945_s20 + $0x80] sm:$0x7]  ;;  %v5223_v10 = vpop.permute.xlu1 %1600  ;;  %3186 = vrot.lane.b32.xlu0 %v3856_v14, %s3903_s21 }
 0x14b   : > { %v803_v4 = vmax.bf16 %v3671_v28, %v4503_v51  ;;  %v802_v50 = vmax.bf16 %v3672_v24, %v4505_v11  ;;  %7014 = vst [vmem:[#allocation152_spill] sm:$0xff] %v5214_v40  ;;  %7015 = vst [vmem:[#allocation153_spill] sm:$0xff] %v5217_v44  ;;  %v5219_v7 = vrot.slane %v2111_v45, 4  ;;  %v5221_v36 = vrot.slane %v2114_v59, 5  ;;  %v5225_v28 = vpop.permute.xlu0 %1598  ;;  %v354_v47 = vld [vmem:[%s4748_s24 + $0x80] sm:$0x7] }
 0x14c   : > { %v2141_v38 = vshll.u32 %v353_v48, 16  ;;  %7018 = vst [vmem:[#allocation156_spill] sm:$0xff] %v5223_v10  ;;  %v2129_v51 = vshrl.u32 %v352_v3, 16  ;;  %7019 = vst [vmem:[#allocation157_spill] sm:$0xff] %v5225_v28  ;;  %v2132_v23 = vshll.u32 %v352_v3, 16  ;;  %v2156_v54 = vshrl.u32 %v355_v22, 16 }
 0x14d   : > { %7016 = vst [vmem:[#allocation154_spill] sm:$0xff] %v5219_v7  ;;  %7017 = vst [vmem:[#allocation155_spill] sm:$0xff] %v5221_v36  ;;  %v3857_v27 = vld.sshfl [vmem:[%s4801_s28 + $0x36] sm:$0x3 pattern:$0x76325410]  ;;  %v5243_v19 = vmax.bf16 %v4555_v46, %v803_v4 }
 0x14e   : > { %v3858_v45 = vld.sshfl [vmem:[%s4801_s28 + $0x34] sm:$0x3 pattern:$0x76325410]  ;;  %v5234_v59 = vrot.slane %v2138_v20, 4  ;;  %v2159_v48 = vshll.u32 %v355_v22, 16  ;;  %v5246_v20 = vmax.bf16 %v4557_v30, %v802_v50  ;;  %v5253_v14 = vpop.permute.xlu1 %1604  ;;  %3192 = vrot.lane.b32.xlu1 %v3857_v27, %s3903_s21 }
 0x14f   : > { %v3673_v24 = vld [vmem:[%s3945_s20 + $0x8c] sm:$0x7]  ;;  %v3674_v11 = vld [vmem:[%s3945_s20 + $0x88] sm:$0x7]  ;;  %7021 = vst [vmem:[#allocation159_spill] sm:$0xff] %v5243_v19  ;;  %v5249_v6 = vrot.slane %v2141_v38, 5  ;;  %3190 = vrot.lane.b32.xlu0 %v3858_v45, %s3903_s21 }
 0x150   : > { %7020 = vst [vmem:[#allocation158_spill] sm:$0xff] %v5234_v59  ;;  %v805_v36 = vmax.bf16 %v3673_v24, %v4523_v57  ;;  %v804_v3 = vmax.bf16 %v3674_v11, %v4525_v25  ;;  %7022 = vst [vmem:[#allocation160_spill] sm:$0xff] %v5246_v20  ;;  %v357_v44 = vld [vmem:[%s4748_s24 + $0x8c] sm:$0x7]  ;;  %v5251_v28 = vrot.slane %v2129_v51, 4  ;;  %v2147_v57 = vshrl.u32 %v354_v47, 16  ;;  %v5255_v25 = vpop.permute.xlu0 %1602 }
 0x151   : > { %7023 = vst [vmem:[#allocation161_spill] sm:$0xff] %v5249_v6  ;;  %7025 = vst [vmem:[#allocation163_spill] sm:$0xff] %v5253_v14  ;;  %v2150_v22 = vshll.u32 %v354_v47, 16  ;;  %v5258_v46 = vrot.slane %v2132_v23, 5  ;;  %v5260_v4 = vrot.slane %v2156_v54, 4  ;;  %v5268_v24 = vrot.slane %v2159_v48, 5 }
 0x152   : > { %7024 = vst [vmem:[#allocation162_spill] sm:$0xff] %v5251_v28  ;;  %7026 = vst [vmem:[#allocation164_spill] sm:$0xff] %v5255_v25  ;;  %v3859_v11 = vld.sshfl [vmem:[%s4801_s28 + $0x3a] sm:$0x3 pattern:$0x76325410]  ;;  %v5278_v50 = vmax.bf16 %v4571_v26, %v805_v36  ;;  %v5281_v48 = vmax.bf16 %v4573_v31, %v804_v3  ;;  %v5287_v25 = vpop.permute.xlu1 %1608 }
 0x153   : > { %7027 = vst [vmem:[#allocation165_spill] sm:$0xff] %v5258_v46  ;;  %7028 = vst [vmem:[#allocation166_spill] sm:$0xff] %v5260_v4  ;;  %v356_v38 = vld [vmem:[%s4748_s24 + $0x88] sm:$0x7]  ;;  %v2174_v47 = vshrl.u32 %v357_v44, 16  ;;  %v5283_v27 = vrot.slane %v2147_v57, 4  ;;  %3196 = vrot.lane.b32.xlu1 %v3859_v11, %s3903_s21 }
 0x154   : > { %v3860_v51 = vld.sshfl [vmem:[%s4801_s28 + $0x38] sm:$0x3 pattern:$0x76325410]  ;;  %7029 = vst [vmem:[#allocation167_spill] sm:$0xff] %v5268_v24  ;;  %7030 = vst [vmem:[#allocation168_spill] sm:$0xff] %v5278_v50 }
 0x155   : > { %v359_v23 = vld [vmem:[%s4748_s24 + $0x94] sm:$0x7]  ;;  %v3676_v10 = vld [vmem:[%s3945_s20 + $0x90] sm:$0x7]  ;;  %7031 = vst [vmem:[#allocation169_spill] sm:$0xff] %v5281_v48  ;;  %7032 = vst [vmem:[#allocation170_spill] sm:$0xff] %v5283_v27  ;;  %3194 = vrot.lane.b32.xlu0 %v3860_v51, %s3903_s21 }
 0x156   : > { %v3675_v40 = vld [vmem:[%s3945_s20 + $0x94] sm:$0x7]  ;;  %v806_v30 = vmax.bf16 %v3676_v10, %v4537_v18  ;;  %v5285_v20 = vrot.slane %v2150_v22, 5  ;;  %v2177_v45 = vshll.u32 %v357_v44, 16  ;;  %7034 = vst [vmem:[#allocation172_spill] sm:$0xff] %v5287_v25  ;;  %v2168_v26 = vshll.u32 %v356_v38, 16  ;;  %v5317_v51 = vpop.permute.xlu1 %1612 }
 0x157   : > { %v807_v54 = vmax.bf16 %v3675_v40, %v4535_v17  ;;  %v2165_v17 = vshrl.u32 %v356_v38, 16  ;;  %v5289_v40 = vpop.permute.xlu0 %1606  ;;  %v3861_v19 = vld.sshfl [vmem:[%s4801_s28 + $0x3e] sm:$0x3 pattern:$0x76325410]  ;;  %v2192_v10 = vshrl.u32 %v359_v23, 16 }
 0x158   : > { %7033 = vst [vmem:[#allocation171_spill] sm:$0xff] %v5285_v20  ;;  %7035 = vst [vmem:[#allocation173_spill] sm:$0xff] %v5289_v40  ;;  %v358_v36 = vld [vmem:[%s4748_s24 + $0x90] sm:$0x7]  ;;  %v5298_v57 = vrot.slane %v2174_v47, 4  ;;  %v2195_v44 = vshll.u32 %v359_v23, 16  ;;  %3200 = vrot.lane.b32.xlu1 %v3861_v19, %s3903_s21 }
 0x159   : > { %v3862_v3 = vld.sshfl [vmem:[%s4801_s28 + $0x3c] sm:$0x3 pattern:$0x76325410]  ;;  %v7037_v14 = vld [vmem:[#allocation60_spill] sm:$0xff]  ;;  %v7039_v25 = vld [vmem:[#allocation66_spill] sm:$0xff] }
 0x15a   : > { %7036 = vst [vmem:[#allocation174_spill] sm:$0xff] %v5298_v57  ;;  %v3677_v22 = vld [vmem:[%s3945_s20 + $0x9c] sm:$0x7]  ;;  %v3678_v18 = vld [vmem:[%s3945_s20 + $0x98] sm:$0x7]  ;;  %v5307_v31 = vmax.bf16 %v7039_v25, %v807_v54  ;;  %v7041_v48 = vld [vmem:[#allocation67_spill] sm:$0xff]  ;;  %3198 = vrot.lane.b32.xlu0 %v3862_v3, %s3903_s21 }
 0x15b   : > { %v809_v20 = vmax.bf16 %v3677_v22, %v7037_v14  ;;  %v7038_v50 = vld [vmem:[#allocation61_spill] sm:$0xff]  ;;  %v5310_v47 = vmax.bf16 %v7041_v48, %v806_v30  ;;  %v5313_v11 = vrot.slane %v2177_v45, 5  ;;  %v5315_v57 = vrot.slane %v2165_v17, 4  ;;  %7045 = vst [vmem:[#allocation175_spill] sm:$0xff] %v5317_v51  ;;  %v7051_v30 = vld [vmem:[#allocation63_spill] sm:$0xff]  ;;  %v7052_v48 = vld [vmem:[#allocation68_spill] sm:$0xff] }
 0x15c   : > { %v808_v38 = vmax.bf16 %v3678_v18, %v7038_v50  ;;  %7040 = vst [vmem:[#allocation60_spill] sm:$0xff] %v5307_v31  ;;  %v361_v40 = vld [vmem:[%s4748_s24 + $0x9c] sm:$0x7]  ;;  %v2183_v14 = vshrl.u32 %v358_v36, 16  ;;  %v2186_v23 = vshll.u32 %v358_v36, 16  ;;  %v5319_v50 = vpop.permute.xlu0 %1610  ;;  %v5322_v25 = vrot.slane %v2168_v26, 5 }
 0x15d   : > { %7042 = vst [vmem:[#allocation61_spill] sm:$0xff] %v5310_v47  ;;  %7043 = vst [vmem:[#allocation66_spill] sm:$0xff] %v5313_v11  ;;  %v3863_v18 = vld.sshfl [vmem:[%s4801_s28 + $0x42] sm:$0x3 pattern:$0x76325410]  ;;  %v5342_v47 = vmax.bf16 %v7052_v48, %v809_v20 }
 0x15e   : > { %7044 = vst [vmem:[#allocation67_spill] sm:$0xff] %v5315_v57  ;;  %7046 = vst [vmem:[#allocation176_spill] sm:$0xff] %v5319_v50  ;;  %v5324_v54 = vrot.slane %v2192_v10, 4  ;;  %v360_v45 = vld [vmem:[%s4748_s24 + $0x98] sm:$0x7]  ;;  %v5332_v22 = vrot.slane %v2195_v44, 5  ;;  %3204 = vrot.lane.b32.xlu1 %v3863_v18, %s3903_s21 }
 0x15f   : > { %7047 = vst [vmem:[#allocation177_spill] sm:$0xff] %v5322_v25  ;;  %v3864_v17 = vld.sshfl [vmem:[%s4801_s28 + $0x40] sm:$0x3 pattern:$0x76325410]  ;;  %v2210_v36 = vshrl.u32 %v361_v40, 16 }
 0x160   : > { %7048 = vst [vmem:[#allocation178_spill] sm:$0xff] %v5324_v54  ;;  %7049 = vst [vmem:[#allocation179_spill] sm:$0xff] %v5332_v22  ;;  %v363_v26 = vld [vmem:[%s4748_s24 + $0xa4] sm:$0x7]  ;;  %v3680_v57 = vld [vmem:[%s3945_s20 + $0xa0] sm:$0x7]  ;;  %v5351_v22 = vpop.permute.xlu1 %1616  ;;  %3202 = vrot.lane.b32.xlu0 %v3864_v17, %s3903_s21 }
 0x161   : > { %v3679_v25 = vld [vmem:[%s3945_s20 + $0xa4] sm:$0x7]  ;;  %v810_v31 = vmax.bf16 %v3680_v57, %v7051_v30  ;;  %v7054_v44 = vld [vmem:[#allocation69_spill] sm:$0xff]  ;;  %v5347_v19 = vrot.slane %v2183_v14, 4  ;;  %v5349_v51 = vrot.slane %v2186_v23, 5  ;;  %v2213_v3 = vshll.u32 %v361_v40, 16 }
 0x162   : > { %v7050_v10 = vld [vmem:[#allocation62_spill] sm:$0xff]  ;;  %v5345_v50 = vmax.bf16 %v7054_v44, %v808_v38  ;;  %7058 = vst [vmem:[#allocation180_spill] sm:$0xff] %v5351_v22  ;;  %v2204_v57 = vshll.u32 %v360_v45, 16  ;;  %v2228_v14 = vshrl.u32 %v363_v26, 16  ;;  %v5362_v48 = vrot.slane %v2210_v36, 4  ;;  %v7188_v46 = vld [vmem:[#allocation88_spill] sm:$0xff] }
 0x163   : > { %v811_v54 = vmax.bf16 %v3679_v25, %v7050_v10  ;;  %7053 = vst [vmem:[#allocation62_spill] sm:$0xff] %v5342_v47  ;;  %7056 = vst [vmem:[#allocation68_spill] sm:$0xff] %v5347_v19  ;;  %v2201_v25 = vshrl.u32 %v360_v45, 16  ;;  %v5353_v10 = vpop.permute.xlu0 %1614  ;;  %v362_v23 = vld [vmem:[%s4748_s24 + $0xa0] sm:$0x7]  ;;  %v2231_v40 = vshll.u32 %v363_v26, 16 }
 0x164   : > { %7055 = vst [vmem:[#allocation63_spill] sm:$0xff] %v5345_v50  ;;  %7057 = vst [vmem:[#allocation69_spill] sm:$0xff] %v5349_v51  ;;  %v3865_v11 = vld.sshfl [vmem:[%s4801_s28 + $0x46] sm:$0x3 pattern:$0x76325410]  ;;  %v5381_v17 = vpop.permute.xlu1 %1620 }
 0x165   : > { %7059 = vst [vmem:[#allocation181_spill] sm:$0xff] %v5353_v10  ;;  %v3866_v30 = vld.sshfl [vmem:[%s4801_s28 + $0x44] sm:$0x3 pattern:$0x76325410]  ;;  %7060 = vst [vmem:[#allocation182_spill] sm:$0xff] %v5362_v48  ;;  %3208 = vrot.lane.b32.xlu1 %v3865_v11, %s3903_s21 }
 0x166   : > { %v3681_v44 = vld [vmem:[%s3945_s20 + $0xac] sm:$0x7]  ;;  %v7061_v51 = vld [vmem:[#allocation64_spill] sm:$0xff]  ;;  %v3682_v20 = vld [vmem:[%s3945_s20 + $0xa8] sm:$0x7]  ;;  %v5377_v18 = vrot.slane %v2213_v3, 5  ;;  %3206 = vrot.lane.b32.xlu0 %v3866_v30, %s3903_s21 }
 0x167   : > { %v813_v19 = vmax.bf16 %v3681_v44, %v7061_v51  ;;  %v7062_v47 = vld [vmem:[#allocation65_spill] sm:$0xff]  ;;  %v7063_v22 = vld [vmem:[#allocation70_spill] sm:$0xff]  ;;  %v7065_v50 = vld [vmem:[#allocation71_spill] sm:$0xff]  ;;  %v5379_v48 = vrot.slane %v2201_v25, 4  ;;  %7069 = vst [vmem:[#allocation183_spill] sm:$0xff] %v5381_v17  ;;  %v2219_v51 = vshrl.u32 %v362_v23, 16 }
 0x168   : > { %v812_v45 = vmax.bf16 %v3682_v20, %v7062_v47  ;;  %v5371_v38 = vmax.bf16 %v7063_v22, %v811_v54  ;;  %v5374_v36 = vmax.bf16 %v7065_v50, %v810_v31  ;;  %v365_v10 = vld [vmem:[%s4748_s24 + $0xac] sm:$0x7]  ;;  %7067 = vst [vmem:[#allocation70_spill] sm:$0xff] %v5377_v18  ;;  %v2222_v26 = vshll.u32 %v362_v23, 16  ;;  %v5383_v47 = vpop.permute.xlu0 %1618  ;;  %v364_v3 = vld [vmem:[%s4748_s24 + $0xa8] sm:$0x7] }
 0x169   : > { %7068 = vst [vmem:[#allocation71_spill] sm:$0xff] %v5379_v48  ;;  %7070 = vst [vmem:[#allocation184_spill] sm:$0xff] %v5383_v47  ;;  %v3867_v20 = vld.sshfl [vmem:[%s4801_s28 + $0x4a] sm:$0x3 pattern:$0x76325410] }
 0x16a   : > { %7064 = vst [vmem:[#allocation64_spill] sm:$0xff] %v5371_v38  ;;  %7066 = vst [vmem:[#allocation65_spill] sm:$0xff] %v5374_v36  ;;  %v5386_v54 = vrot.slane %v2204_v57, 5  ;;  %v5388_v22 = vrot.slane %v2228_v14, 4  ;;  %v5396_v44 = vrot.slane %v2231_v40, 5  ;;  %v2246_v23 = vshrl.u32 %v365_v10, 16  ;;  %3212 = vrot.lane.b32.xlu1 %v3867_v20, %s3903_s21 }
 0x16b   : > { %v3868_v25 = vld.sshfl [vmem:[%s4801_s28 + $0x48] sm:$0x3 pattern:$0x76325410]  ;;  %v367_v57 = vld [vmem:[%s4748_s24 + $0xb4] sm:$0x7] }
 0x16c   : > { %7071 = vst [vmem:[#allocation185_spill] sm:$0xff] %v5386_v54  ;;  %7072 = vst [vmem:[#allocation186_spill] sm:$0xff] %v5388_v22  ;;  %v3683_v54 = vld [vmem:[%s3945_s20 + $0xb4] sm:$0x7]  ;;  %v7074_v14 = vld [vmem:[#allocation2_spill] sm:$0xff]  ;;  %v5411_v11 = vrot.slane %v2219_v51, 4  ;;  %3210 = vrot.lane.b32.xlu0 %v3868_v25, %s3903_s21 }
 0x16d   : > { %7073 = vst [vmem:[#allocation187_spill] sm:$0xff] %v5396_v44  ;;  %v815_v22 = vmax.bf16 %v3683_v54, %v7074_v14  ;;  %v3684_v48 = vld [vmem:[%s3945_s20 + $0xb0] sm:$0x7]  ;;  %v7075_v31 = vld [vmem:[#allocation3_spill] sm:$0xff]  ;;  %v7078_v40 = vld [vmem:[#allocation73_spill] sm:$0xff]  ;;  %v5413_v17 = vrot.slane %v2222_v26, 5  ;;  %v5415_v44 = vpop.permute.xlu1 %1624  ;;  %v5417_v14 = vpop.permute.xlu0 %1622 }
 0x16e   : > { %v814_v38 = vmax.bf16 %v3684_v48, %v7075_v31  ;;  %v7076_v50 = vld [vmem:[#allocation72_spill] sm:$0xff]  ;;  %v5409_v47 = vmax.bf16 %v7078_v40, %v812_v45  ;;  %v2249_v30 = vshll.u32 %v365_v10, 16  ;;  %7082 = vst [vmem:[#allocation188_spill] sm:$0xff] %v5415_v44  ;;  %v2237_v54 = vshrl.u32 %v364_v3, 16  ;;  %7083 = vst [vmem:[#allocation189_spill] sm:$0xff] %v5417_v14  ;;  %v7087_v44 = vld [vmem:[#allocation74_spill] sm:$0xff] }
 0x16f   : > { %v5406_v36 = vmax.bf16 %v7076_v50, %v813_v19  ;;  %7080 = vst [vmem:[#allocation72_spill] sm:$0xff] %v5411_v11  ;;  %7081 = vst [vmem:[#allocation73_spill] sm:$0xff] %v5413_v17  ;;  %v3869_v18 = vld.sshfl [vmem:[%s4801_s28 + $0x4e] sm:$0x3 pattern:$0x76325410]  ;;  %v5435_v45 = vmax.bf16 %v7087_v44, %v815_v22 }
 0x170   : > { %7079 = vst [vmem:[#allocation3_spill] sm:$0xff] %v5409_v47  ;;  %v2240_v48 = vshll.u32 %v364_v3, 16  ;;  %v2264_v51 = vshrl.u32 %v367_v57, 16  ;;  %v366_v26 = vld [vmem:[%s4748_s24 + $0xb0] sm:$0x7]  ;;  %v5426_v50 = vrot.slane %v2246_v23, 4  ;;  %3216 = vrot.lane.b32.xlu1 %v3869_v18, %s3903_s21 }
 0x171   : > { %7077 = vst [vmem:[#allocation2_spill] sm:$0xff] %v5406_v36  ;;  %v3870_v31 = vld.sshfl [vmem:[%s4801_s28 + $0x4c] sm:$0x3 pattern:$0x76325410]  ;;  %v2267_v10 = vshll.u32 %v367_v57, 16  ;;  %v5445_v25 = vpop.permute.xlu1 %1628 }
 0x172   : > { %7084 = vst [vmem:[#allocation190_spill] sm:$0xff] %v5426_v50  ;;  %v3685_v40 = vld [vmem:[%s3945_s20 + $0xbc] sm:$0x7]  ;;  %v7085_v17 = vld [vmem:[#allocation4_spill] sm:$0xff]  ;;  %v3686_v19 = vld [vmem:[%s3945_s20 + $0xb8] sm:$0x7]  ;;  %3214 = vrot.lane.b32.xlu0 %v3870_v31, %s3903_s21 }
 0x173   : > { %v817_v11 = vmax.bf16 %v3685_v40, %v7085_v17  ;;  %v7086_v36 = vld [vmem:[#allocation5_spill] sm:$0xff]  ;;  %7088 = vst [vmem:[#allocation4_spill] sm:$0xff] %v5435_v45  ;;  %v7089_v47 = vld [vmem:[#allocation75_spill] sm:$0xff]  ;;  %v5441_v20 = vrot.slane %v2249_v30, 5  ;;  %v5443_v50 = vrot.slane %v2237_v54, 4  ;;  %7093 = vst [vmem:[#allocation191_spill] sm:$0xff] %v5445_v25  ;;  %v5447_v40 = vpop.permute.xlu0 %1626 }
 0x174   : > { %v816_v3 = vmax.bf16 %v3686_v19, %v7086_v36  ;;  %v5438_v23 = vmax.bf16 %v7089_v47, %v814_v38  ;;  %v369_v14 = vld [vmem:[%s4748_s24 + $0xbc] sm:$0x7]  ;;  %v2255_v17 = vshrl.u32 %v366_v26, 16  ;;  %v2258_v57 = vshll.u32 %v366_v26, 16  ;;  %7094 = vst [vmem:[#allocation192_spill] sm:$0xff] %v5447_v40  ;;  %v7099_v38 = vld [vmem:[#allocation7_spill] sm:$0xff] }
 0x175   : > { %7091 = vst [vmem:[#allocation74_spill] sm:$0xff] %v5441_v20  ;;  %7092 = vst [vmem:[#allocation75_spill] sm:$0xff] %v5443_v50  ;;  %v3871_v36 = vld.sshfl [vmem:[%s4801_s28 + $0x52] sm:$0x3 pattern:$0x76325410] }
 0x176   : > { %7090 = vst [vmem:[#allocation5_spill] sm:$0xff] %v5438_v23  ;;  %v5450_v19 = vrot.slane %v2240_v48, 5  ;;  %v5452_v22 = vrot.slane %v2264_v51, 4  ;;  %v368_v44 = vld [vmem:[%s4748_s24 + $0xb8] sm:$0x7]  ;;  %v5460_v54 = vrot.slane %v2267_v10, 5  ;;  %3220 = vrot.lane.b32.xlu1 %v3871_v36, %s3903_s21 }
 0x177   : > { %v3872_v30 = vld.sshfl [vmem:[%s4801_s28 + $0x50] sm:$0x3 pattern:$0x76325410]  ;;  %v2282_v26 = vshrl.u32 %v369_v14, 16  ;;  %v7102_v10 = vld [vmem:[#allocation77_spill] sm:$0xff] }
 0x178   : > { %7095 = vst [vmem:[#allocation193_spill] sm:$0xff] %v5450_v19  ;;  %7096 = vst [vmem:[#allocation194_spill] sm:$0xff] %v5452_v22  ;;  %v3687_v48 = vld [vmem:[%s3945_s20 + $0xc4] sm:$0x7]  ;;  %v3688_v22 = vld [vmem:[%s3945_s20 + $0xc0] sm:$0x7]  ;;  %v5472_v40 = vmax.bf16 %v7102_v10, %v816_v3  ;;  %3218 = vrot.lane.b32.xlu0 %v3872_v30, %s3903_s21 }
 0x179   : > { %7097 = vst [vmem:[#allocation195_spill] sm:$0xff] %v5460_v54  ;;  %v7098_v19 = vld [vmem:[#allocation6_spill] sm:$0xff]  ;;  %v818_v45 = vmax.bf16 %v3688_v22, %v7099_v38  ;;  %v7100_v47 = vld [vmem:[#allocation76_spill] sm:$0xff]  ;;  %v5474_v25 = vrot.slane %v2255_v17, 4  ;;  %v5476_v18 = vrot.slane %v2258_v57, 5  ;;  %v2285_v31 = vshll.u32 %v369_v14, 16  ;;  %v5478_v54 = vpop.permute.xlu1 %1632 }
 0x17a   : > { %v819_v51 = vmax.bf16 %v3687_v48, %v7098_v19  ;;  %v5469_v23 = vmax.bf16 %v7100_v47, %v817_v11  ;;  %7103 = vst [vmem:[#allocation7_spill] sm:$0xff] %v5472_v40  ;;  %7106 = vst [vmem:[#allocation196_spill] sm:$0xff] %v5478_v54  ;;  %v2273_v19 = vshrl.u32 %v368_v44, 16  ;;  %v5480_v48 = vpop.permute.xlu0 %1630  ;;  %v3689_v50 = vld [vmem:[%s3945_s20 + $0x58] sm:$0x7]  ;;  %v7108_v22 = vld [vmem:[#allocation43_spill] sm:$0xff] }
 0x17b   : > { %7104 = vst [vmem:[#allocation76_spill] sm:$0xff] %v5474_v25  ;;  %7105 = vst [vmem:[#allocation77_spill] sm:$0xff] %v5476_v18  ;;  %v792_v38 = vmax.bf16 %v3689_v50, %v7108_v22  ;;  %v371_v17 = vld [vmem:[%s4748_s24 + $0xc4] sm:$0x7]  ;;  %v5493_v10 = vrot.slane %v2282_v26, 4  ;;  %v2276_v18 = vshll.u32 %v368_v44, 16 }
 0x17c   : > { %7101 = vst [vmem:[#allocation6_spill] sm:$0xff] %v5469_v23  ;;  %7107 = vst [vmem:[#allocation197_spill] sm:$0xff] %v5480_v48  ;;  %v3873_v57 = vld.sshfl [vmem:[%s4801_s28 + $0x56] sm:$0x3 pattern:$0x76325410] }
 0x17d   : > { %v3874_v14 = vld.sshfl [vmem:[%s4801_s28 + $0x54] sm:$0x3 pattern:$0x76325410]  ;;  %7109 = vst [vmem:[#allocation43_spill] sm:$0xff] %v5493_v10  ;;  %v7111_v3 = vld [vmem:[#allocation9_spill] sm:$0xff]  ;;  %3224 = vrot.lane.b32.xlu1 %v3873_v57, %s3903_s21 }
 0x17e   : > { %v3690_v50 = vld [vmem:[%s3945_s20 + $0xcc] sm:$0x7]  ;;  %v7110_v22 = vld [vmem:[#allocation8_spill] sm:$0xff]  ;;  %v3691_v23 = vld [vmem:[%s3945_s20 + $0xc8] sm:$0x7]  ;;  %v5508_v44 = vrot.slane %v2285_v31, 5  ;;  %3222 = vrot.lane.b32.xlu0 %v3874_v14, %s3903_s21 }
 0x17f   : > { %v821_v11 = vmax.bf16 %v3690_v50, %v7110_v22  ;;  %v820_v40 = vmax.bf16 %v3691_v23, %v7111_v3  ;;  %v7112_v48 = vld [vmem:[#allocation78_spill] sm:$0xff]  ;;  %v7114_v26 = vld [vmem:[#allocation79_spill] sm:$0xff]  ;;  %v5510_v36 = vrot.slane %v2273_v19, 4  ;;  %v2300_v30 = vshrl.u32 %v371_v17, 16  ;;  %v5512_v50 = vpop.permute.xlu1 %1636  ;;  %v5514_v22 = vpop.permute.xlu0 %1634  ;;  %v7198_v59 = vld [vmem:[#allocation96_spill] sm:$0xff] }
 0x180   : > { %v5502_v54 = vmax.bf16 %v7112_v48, %v819_v51  ;;  %v370_v47 = vld [vmem:[%s4748_s24 + $0xc0] sm:$0x7]  ;;  %v5506_v10 = vmax.bf16 %v7114_v26, %v818_v45  ;;  %7116 = vst [vmem:[#allocation78_spill] sm:$0xff] %v5508_v44  ;;  %v2303_v25 = vshll.u32 %v371_v17, 16  ;;  %7118 = vst [vmem:[#allocation198_spill] sm:$0xff] %v5512_v50  ;;  %v7120_v23 = vmax.bf16 %v5191_v53, %v7011_v61  ;;  %v7121_v51 = vld [vmem:[#allocation52_spill] sm:$0xff] }
 0x181   : > { %7117 = vst [vmem:[#allocation79_spill] sm:$0xff] %v5510_v36  ;;  %7119 = vst [vmem:[#allocation199_spill] sm:$0xff] %v5514_v22  ;;  %v373_v19 = vld [vmem:[%s4748_s24 + $0xcc] sm:$0x7]  ;;  %v5531_v36 = vrot.slane %v2276_v18, 5  ;;  %v2291_v44 = vshrl.u32 %v370_v47, 16 }
 0x182   : > { %7113 = vst [vmem:[#allocation8_spill] sm:$0xff] %v5502_v54  ;;  %7115 = vst [vmem:[#allocation9_spill] sm:$0xff] %v5506_v10  ;;  %v5520_v48 = vmax.bf16 %v7121_v51, %v7120_v23  ;;  %v3875_v3 = vld.sshfl [vmem:[%s4801_s28 + $0x5a] sm:$0x3 pattern:$0x76325410] }
 0x183   : > { %v3876_v17 = vld.sshfl [vmem:[%s4801_s28 + $0x58] sm:$0x3 pattern:$0x76325410]  ;;  %7122 = vst [vmem:[#allocation52_spill] sm:$0xff] %v5531_v36  ;;  %v7123_v61 = vld [vmem:[#allocation10_spill] sm:$0xff]  ;;  %v5549_v36 = vpop.permute.xlu1 %1640  ;;  %3228 = vrot.lane.b32.xlu1 %v3875_v3, %s3903_s21 }
 0x184   : > { %v3692_v53 = vld [vmem:[%s3945_s20 + $0xd4] sm:$0x7]  ;;  %v3693_v51 = vld [vmem:[%s3945_s20 + $0xd0] sm:$0x7]  ;;  %v7124_v31 = vld [vmem:[#allocation11_spill] sm:$0xff]  ;;  %v5545_v54 = vrot.slane %v2300_v30, 4  ;;  %3226 = vrot.lane.b32.xlu0 %v3876_v17, %s3903_s21 }
 0x185   : > { %v823_v23 = vmax.bf16 %v3692_v53, %v7123_v61  ;;  %v822_v45 = vmax.bf16 %v3693_v51, %v7124_v31  ;;  %v7125_v10 = vld [vmem:[#allocation80_spill] sm:$0xff]  ;;  %v7127_v18 = vld [vmem:[#allocation81_spill] sm:$0xff]  ;;  %v5547_v57 = vrot.slane %v2303_v25, 5  ;;  %v2294_v14 = vshll.u32 %v370_v47, 16  ;;  %7131 = vst [vmem:[#allocation200_spill] sm:$0xff] %v5549_v36  ;;  %v5551_v53 = vpop.permute.xlu0 %1638  ;;  %v7133_v61 = vld [vmem:[#allocation46_spill] sm:$0xff] }
 0x186   : > { %v5540_v22 = vmax.bf16 %v7125_v10, %v821_v11  ;;  %v5543_v26 = vmax.bf16 %v7127_v18, %v820_v40  ;;  %7129 = vst [vmem:[#allocation80_spill] sm:$0xff] %v5545_v54  ;;  %v2318_v50 = vshrl.u32 %v373_v19, 16  ;;  %7132 = vst [vmem:[#allocation201_spill] sm:$0xff] %v5551_v53  ;;  %v3694_v31 = vld [vmem:[%s3945_s20 + $0x64] sm:$0x7]  ;;  %v7134_v10 = vld [vmem:[#allocation53_spill] sm:$0xff] }
 0x187   : > { %7130 = vst [vmem:[#allocation81_spill] sm:$0xff] %v5547_v57  ;;  %v795_v11 = vmax.bf16 %v3694_v31, %v7133_v61  ;;  %v5556_v51 = vmax.bf16 %v7134_v10, %v792_v38  ;;  %v372_v25 = vld [vmem:[%s4748_s24 + $0xc8] sm:$0x7]  ;;  %v5565_v57 = vrot.slane %v2291_v44, 4  ;;  %v2321_v54 = vshll.u32 %v373_v19, 16  ;;  %v7136_v38 = vld [vmem:[#allocation12_spill] sm:$0xff] }
 0x188   : > { %7126 = vst [vmem:[#allocation10_spill] sm:$0xff] %v5540_v22  ;;  %7128 = vst [vmem:[#allocation11_spill] sm:$0xff] %v5543_v26  ;;  %v3877_v30 = vld.sshfl [vmem:[%s4801_s28 + $0x5e] sm:$0x3 pattern:$0x76325410] }
 0x189   : > { %v3878_v18 = vld.sshfl [vmem:[%s4801_s28 + $0x5c] sm:$0x3 pattern:$0x76325410]  ;;  %7135 = vst [vmem:[#allocation46_spill] sm:$0xff] %v5565_v57  ;;  %v7138_v26 = vld [vmem:[#allocation82_spill] sm:$0xff]  ;;  %3232 = vrot.lane.b32.xlu1 %v3877_v30, %s3903_s21 }
 0x18a   : > { %v3695_v31 = vld [vmem:[%s3945_s20 + $0xdc] sm:$0x7]  ;;  %v3696_v10 = vld [vmem:[%s3945_s20 + $0xd8] sm:$0x7]  ;;  %v375_v47 = vld [vmem:[%s4748_s24 + $0xd4] sm:$0x7]  ;;  %v5575_v53 = vmax.bf16 %v7138_v26, %v823_v23  ;;  %3230 = vrot.lane.b32.xlu0 %v3878_v18, %s3903_s21 }
 0x18b   : > { %v825_v61 = vmax.bf16 %v3695_v31, %v7136_v38  ;;  %v7137_v40 = vld [vmem:[#allocation13_spill] sm:$0xff]  ;;  %v7140_v44 = vld [vmem:[#allocation83_spill] sm:$0xff]  ;;  %v5580_v36 = vrot.slane %v2294_v14, 5  ;;  %v5582_v3 = vrot.slane %v2318_v50, 4  ;;  %v2309_v17 = vshrl.u32 %v372_v25, 16  ;;  %v5584_v31 = vpop.permute.xlu1 %1644  ;;  %v5586_v38 = vpop.permute.xlu0 %1642  ;;  %v7148_v20 = vld [vmem:[#allocation14_spill] sm:$0xff] }
 0x18c   : > { %v824_v22 = vmax.bf16 %v3696_v10, %v7137_v40  ;;  %7139 = vst [vmem:[#allocation53_spill] sm:$0xff] %v5575_v53  ;;  %v5578_v19 = vmax.bf16 %v7140_v44, %v822_v45  ;;  %v2312_v57 = vshll.u32 %v372_v25, 16  ;;  %7144 = vst [vmem:[#allocation83_spill] sm:$0xff] %v5584_v31  ;;  %v5589_v40 = vld [vmem:[%s3945_s20 + $0x60] sm:$0x7]  ;;  %v7146_v10 = vld [vmem:[#allocation47_spill] sm:$0xff] }
 0x18d   : > { %7142 = vst [vmem:[#allocation13_spill] sm:$0xff] %v5580_v36  ;;  %7143 = vst [vmem:[#allocation82_spill] sm:$0xff] %v5582_v3  ;;  %v374_v23 = vld [vmem:[%s4748_s24 + $0xd0] sm:$0x7]  ;;  %v5602_v3 = vrot.slane %v2321_v54, 5  ;;  %v2336_v36 = vshrl.u32 %v375_v47, 16 }
 0x18e   : > { %7141 = vst [vmem:[#allocation12_spill] sm:$0xff] %v5578_v19  ;;  %7145 = vst [vmem:[#allocation202_spill] sm:$0xff] %v5586_v38  ;;  %v3879_v14 = vld.sshfl [vmem:[%s4801_s28 + $0x62] sm:$0x3 pattern:$0x76325410] }
 0x18f   : > { %v3880_v44 = vld.sshfl [vmem:[%s4801_s28 + $0x60] sm:$0x3 pattern:$0x76325410]  ;;  %7147 = vst [vmem:[#allocation47_spill] sm:$0xff] %v5602_v3  ;;  %v7149_v50 = vld [vmem:[#allocation15_spill] sm:$0xff]  ;;  %v5618_v24 = vpop.permute.xlu1 %1648  ;;  %3236 = vrot.lane.b32.xlu1 %v3879_v14, %s3903_s21 }
 0x190   : > { %v3698_v26 = vld [vmem:[%s3945_s20 + $0xe4] sm:$0x7]  ;;  %v3699_v53 = vld [vmem:[%s3945_s20 + $0xe0] sm:$0x7]  ;;  %v7150_v38 = vld [vmem:[#allocation85_spill] sm:$0xff]  ;;  %v5616_v3 = vrot.slane %v2309_v17, 4  ;;  %3234 = vrot.lane.b32.xlu0 %v3880_v44, %s3903_s21 }
 0x191   : > { %v827_v45 = vmax.bf16 %v3698_v26, %v7148_v20  ;;  %v826_v19 = vmax.bf16 %v3699_v53, %v7149_v50  ;;  %v5611_v31 = vmax.bf16 %v7150_v38, %v825_v61  ;;  %v7152_v25 = vld [vmem:[#allocation86_spill] sm:$0xff]  ;;  %v2339_v27 = vshll.u32 %v375_v47, 16  ;;  %v5620_v20 = vpop.permute.xlu0 %1646  ;;  %v5626_v61 = vld [vmem:[%s4748_s24 + $0xdc] sm:$0x7] }
 0x192   : > { %v5614_v54 = vmax.bf16 %v7152_v25, %v824_v22  ;;  %7154 = vst [vmem:[#allocation85_spill] sm:$0xff] %v5616_v3  ;;  %v2327_v30 = vshrl.u32 %v374_v23, 16  ;;  %v2330_v18 = vshll.u32 %v374_v23, 16  ;;  %7155 = vst [vmem:[#allocation86_spill] sm:$0xff] %v5618_v24  ;;  %v7157_v26 = vld [vmem:[#allocation54_spill] sm:$0xff]  ;;  %v5636_v50 = vrot.slane %v2312_v57, 5 }
 0x193   : > { %7151 = vst [vmem:[#allocation14_spill] sm:$0xff] %v5611_v31  ;;  %7156 = vst [vmem:[#allocation203_spill] sm:$0xff] %v5620_v20  ;;  %v5623_v53 = vmax.bf16 %v7157_v26, %v795_v11  ;;  %v3881_v17 = vld.sshfl [vmem:[%s4801_s28 + $0x66] sm:$0x3 pattern:$0x76325410] }
 0x194   : > { %7153 = vst [vmem:[#allocation15_spill] sm:$0xff] %v5614_v54  ;;  %v3882_v38 = vld.sshfl [vmem:[%s4801_s28 + $0x64] sm:$0x3 pattern:$0x76325410]  ;;  %7158 = vst [vmem:[#allocation54_spill] sm:$0xff] %v5636_v50  ;;  %3240 = vrot.lane.b32.xlu1 %v3881_v17, %s3903_s21 }
 0x195   : > { %v5638_v25 = vrot.slane %v2336_v36, 4  ;;  %v3700_v11 = vld [vmem:[%s3945_s20 + $0xec] sm:$0x7]  ;;  %v7160_v26 = vld [vmem:[#allocation16_spill] sm:$0xff]  ;;  %v3701_v31 = vld [vmem:[%s3945_s20 + $0xe8] sm:$0x7]  ;;  %3238 = vrot.lane.b32.xlu0 %v3882_v38, %s3903_s21 }
 0x196   : > { %v829_v22 = vmax.bf16 %v3700_v11, %v7160_v26  ;;  %v7161_v47 = vld [vmem:[#allocation17_spill] sm:$0xff]  ;;  %v7164_v36 = vld [vmem:[#allocation90_spill] sm:$0xff]  ;;  %v5655_v14 = vrot.slane %v2339_v27, 5  ;;  %v5657_v44 = vrot.slane %v2327_v30, 4  ;;  %v2354_v11 = vshrl.u32 %v5626_v61, 16  ;;  %v5662_v26 = vpop.permute.xlu1 %1652  ;;  %v7174_v3 = vld [vmem:[#allocation91_spill] sm:$0xff] }
 0x197   : > { %7159 = vst [vmem:[#allocation204_spill] sm:$0xff] %v5638_v25  ;;  %v828_v54 = vmax.bf16 %v3701_v31, %v7161_v47  ;;  %v5647_v20 = vld [vmem:[%s4748_s24 + $0xd8] sm:$0x7]  ;;  %v5653_v24 = vmax.bf16 %v7164_v36, %v826_v19  ;;  %v5659_v25 = vrot.slane %v2330_v18, 5  ;;  %7169 = vst [vmem:[#allocation206_spill] sm:$0xff] %v5662_v26  ;;  %v5664_v31 = vpop.permute.xlu0 %1650  ;;  %v7176_v27 = vld [vmem:[#allocation92_spill] sm:$0xff] }
 0x198   : > { %v7162_v23 = vld [vmem:[#allocation89_spill] sm:$0xff]  ;;  %7167 = vst [vmem:[#allocation90_spill] sm:$0xff] %v5657_v44  ;;  %7170 = vst [vmem:[#allocation207_spill] sm:$0xff] %v5664_v31  ;;  %v3702_v18 = vld [vmem:[%s3945_s20 + $0xf4] sm:$0x7]  ;;  %v2345_v50 = vshrl.u32 %v5647_v20, 16 }
 0x199   : > { %v5650_v57 = vmax.bf16 %v7162_v23, %v827_v45  ;;  %7165 = vst [vmem:[#allocation17_spill] sm:$0xff] %v5653_v24  ;;  %7166 = vst [vmem:[#allocation89_spill] sm:$0xff] %v5655_v14  ;;  %v3883_v47 = vld.sshfl [vmem:[%s4801_s28 + $0x6a] sm:$0x3 pattern:$0x76325410] }
 0x19a   : > { %7168 = vst [vmem:[#allocation205_spill] sm:$0xff] %v5659_v25  ;;  %v2357_v45 = vshll.u32 %v5626_v61, 16  ;;  %v3884_v30 = vld.sshfl [vmem:[%s4801_s28 + $0x68] sm:$0x3 pattern:$0x76325410]  ;;  %v5695_v38 = vpop.permute.xlu1 %1656  ;;  %3244 = vrot.lane.b32.xlu1 %v3883_v47, %s3903_s21 }
 0x19b   : > { %7163 = vst [vmem:[#allocation16_spill] sm:$0xff] %v5650_v57  ;;  %v7171_v23 = vld [vmem:[#allocation20_spill] sm:$0xff]  ;;  %v7173_v61 = vld [vmem:[#allocation21_spill] sm:$0xff]  ;;  %v7175_v57 = vld [vmem:[#allocation27_spill] sm:$0xff]  ;;  %v5692_v4 = vrot.slane %v2354_v11, 4  ;;  %v2348_v17 = vshll.u32 %v5647_v20, 16  ;;  %3242 = vrot.lane.b32.xlu0 %v3884_v30, %s3903_s21 }
 0x19c   : > { %v831_v36 = vmax.bf16 %v3702_v18, %v7171_v23  ;;  %v3703_v25 = vld [vmem:[%s3945_s20 + $0xf0] sm:$0x7]  ;;  %v1731_v19 = vmax.bf16 %v7174_v3, %v7173_v61  ;;  %v1730_v24 = vmax.bf16 %v7176_v27, %v7175_v57  ;;  %v7177_v31 = vld [vmem:[#allocation93_spill] sm:$0xff]  ;;  %v7179_v18 = vld [vmem:[#allocation94_spill] sm:$0xff]  ;;  %7182 = vst [vmem:[#allocation91_spill] sm:$0xff] %v5695_v38  ;;  %v5697_v3 = vpop.permute.xlu0 %1654 }
 0x19d   : > { %v7172_v44 = vld [vmem:[#allocation84_spill] sm:$0xff]  ;;  %v5685_v26 = vmax.bf16 %v7177_v31, %v829_v22  ;;  %v5688_v23 = vmax.bf16 %v7179_v18, %v828_v54  ;;  %7181 = vst [vmem:[#allocation21_spill] sm:$0xff] %v5692_v4  ;;  %7183 = vst [vmem:[#allocation27_spill] sm:$0xff] %v5697_v3  ;;  %v3704_v61 = vld [vmem:[%s3945_s20 + $0xfc] sm:$0x7] }
 0x19e   : > { %v830_v14 = vmax.bf16 %v3703_v25, %v7172_v44  ;;  %v3885_v25 = vld.sshfl [vmem:[%s4801_s28 + $0x6e] sm:$0x3 pattern:$0x76325410]  ;;  %v7185_v11 = vld [vmem:[#allocation100_spill] sm:$0xff]  ;;  %v7191_v22 = vld [vmem:[#allocation98_spill] sm:$0xff] }
 0x19f   : > { %7178 = vst [vmem:[#allocation20_spill] sm:$0xff] %v5685_v26  ;;  %7180 = vst [vmem:[#allocation84_spill] sm:$0xff] %v5688_v23  ;;  %v3886_v44 = vld.sshfl [vmem:[%s4801_s28 + $0x6c] sm:$0x3 pattern:$0x76325410]  ;;  %3248 = vrot.lane.b32.xlu1 %v3885_v25, %s3903_s21 }
 0x1a0   : > { %v7184_v57 = vld [vmem:[#allocation87_spill] sm:$0xff]  ;;  %v3705_v4 = vld [vmem:[%s3945_s20 + $0xf8] sm:$0x7]  ;;  %v5716_v26 = vmax.bf16 %v7191_v22, %v830_v14  ;;  %v7193_v38 = vld [vmem:[#allocation102_spill] sm:$0xff]  ;;  %v5731_v14 = vrot.slane %v2345_v50, 4  ;;  %3246 = vrot.lane.b32.xlu0 %v3886_v44, %s3903_s21 }
 0x1a1   : > { %v833_v27 = vmax.bf16 %v3704_v61, %v7184_v57  ;;  %v7186_v31 = vld [vmem:[#allocation99_spill] sm:$0xff]  ;;  %v832_v28 = vmax.bf16 %v3705_v4, %v7188_v46  ;;  %v7189_v61 = vld [vmem:[#allocation97_spill] sm:$0xff]  ;;  %v3887_v7 = vld.sshfl [vmem:[%s4801_s28 + $0x72] sm:$0x3 pattern:$0x76325410] }
 0x1a2   : > { %v7187_v18 = vor.u32 %v7185_v11, %v7186_v31  ;;  %v5713_v57 = vmax.bf16 %v7189_v61, %v831_v36  ;;  %7192 = vst [vmem:[#allocation93_spill] sm:$0xff] %v5716_v26  ;;  %v7194_v54 = vld [vmem:[#allocation101_spill] sm:$0xff]  ;;  %v3706_v11 = vld [vmem:[%s4748_s24 + $0x4] sm:$0x7]  ;;  %v7196_v46 = vld [vmem:[#allocation95_spill] sm:$0xff]  ;;  %v5729_v61 = vrot.slane %v2357_v45, 5 }
 0x1a3   : > { %v7195_v23 = vor.u32 %v7193_v38, %v7194_v54  ;;  %v1795_v31 = vmax.bf16 %v3706_v11, %v1731_v19  ;;  %v1733_v4 = vmax.bf16 %v7196_v46, %v4884_v15  ;;  %v7197_v47 = vld [vmem:[#allocation29_spill] sm:$0xff]  ;;  %v3888_v36 = vld.sshfl [vmem:[%s4801_s28 + $0x70] sm:$0x3 pattern:$0x76325410]  ;;  %7199 = vst [vmem:[#allocation94_spill] sm:$0xff] %v5731_v14  ;;  %v5733_v38 = vpop.permute.xlu1 %1660  ;;  %3252 = vrot.lane.b32.xlu1 %v3887_v7, %s3903_s21 }
 0x1a4   : > { %v1875_v20 = vrot.slane %v7187_v18, 4  ;;  %7190 = vst [vmem:[#allocation92_spill] sm:$0xff] %v5713_v57  ;;  %v3707_v18 = vld [vmem:[%s4748_s24] sm:$0x7]  ;;  %v1732_v30 = vmax.bf16 %v7198_v59, %v7197_v47  ;;  %v7201_v19 = vld [vmem:[#allocation105_spill] sm:$0xff]  ;;  %v7206_v11 = vld [vmem:[#allocation103_spill] sm:$0xff]  ;;  %3250 = vrot.lane.b32.xlu0 %v3888_v36, %s3903_s21 }
 0x1a5   : > { %v1866_v3 = vrot.slane %v7195_v23, 4  ;;  %v1794_v6 = vmax.bf16 %v3707_v18, %v1730_v24  ;;  %v5735_v23 = vpop.permute.xlu0 %1658  ;;  %v5742_v59 = vmax.bf16 %v7201_v19, %v833_v27  ;;  %v7203_v22 = vld [vmem:[#allocation18_spill] sm:$0xff]  ;;  %v7205_v50 = vld [vmem:[#allocation25_spill] sm:$0xff]  ;;  %v7208_v47 = vld [vmem:[#allocation104_spill] sm:$0xff]  ;;  %v7211_v27 = vor.u32 %v4860_v43, %v4837_v62 }
 0x1a6   : > { %7200 = vst [vmem:[#allocation87_spill] sm:$0xff] %v5735_v23  ;;  %v7204_v45 = vor.u32 %v4835_v56, %v7203_v22  ;;  %v1735_v18 = vmax.bf16 %v7206_v11, %v7205_v50  ;;  %v7207_v46 = vld [vmem:[#allocation26_spill] sm:$0xff]  ;;  %v3708_v19 = vld [vmem:[%s4748_s24 + $0xc] sm:$0x7]  ;;  %v2499_v11 = vmax.bf16 %v1875_v20, %v1795_v31  ;;  %v5765_v26 = vrot.slane %v2348_v17, 5  ;;  %v7219_v20 = vld [vmem:[#allocation24_spill] sm:$0xff] }
 0x1a7   : > { %7202 = vst [vmem:[#allocation100_spill] sm:$0xff] %v5742_v59  ;;  %v1734_v14 = vmax.bf16 %v7208_v47, %v7207_v46  ;;  %v7209_v15 = vld [vmem:[#allocation106_spill] sm:$0xff]  ;;  %v1884_v56 = vrot.slane %v7211_v27, 4  ;;  %v1797_v22 = vmax.bf16 %v3708_v19, %v1733_v4  ;;  %v2498_v46 = vmax.bf16 %v1866_v3, %v1794_v6  ;;  %v7213_v47 = vld [vmem:[#allocation19_spill] sm:$0xff]  ;;  %v7221_v3 = vld [vmem:[#allocation113_spill] sm:$0xff] }
 0x1a8   : > { %v5747_v54 = vrot.slane %v7204_v45, 4  ;;  %v5756_v24 = vmax.bf16 %v7209_v15, %v832_v28  ;;  %v3709_v45 = vld [vmem:[%s4748_s24 + $0x8] sm:$0x7]  ;;  %v7212_v25 = vld [vmem:[#allocation30_spill] sm:$0xff]  ;;  %v5767_v28 = vpop.permute.xlu1 %1664 }
 0x1a9   : > { %v1796_v50 = vmax.bf16 %v3709_v45, %v1732_v30  ;;  %v1737_v44 = vmax.bf16 %v7213_v47, %v7212_v25  ;;  %7214 = vst [vmem:[#allocation88_spill] sm:$0xff] %v5767_v28  ;;  %v5769_v15 = vpop.permute.xlu0 %1662  ;;  %v3889_v62 = vld.sshfl [vmem:[%s4801_s28 + $0x76] sm:$0x3 pattern:$0x76325410]  ;;  %v7216_v43 = vld [vmem:[#allocation23_spill] sm:$0xff] }
 0x1aa   : > { %7210 = vst [vmem:[#allocation99_spill] sm:$0xff] %v5756_v24  ;;  %7215 = vst [vmem:[#allocation97_spill] sm:$0xff] %v5769_v15  ;;  %v7217_v4 = vor.u32 %v4868_v49, %v7216_v43  ;;  %v7218_v30 = vld [vmem:[#allocation107_spill] sm:$0xff]  ;;  %v7222_v17 = vld [vmem:[#allocation22_spill] sm:$0xff]  ;;  %3256 = vrot.lane.b32.xlu1 %v3889_v62, %s3903_s21 }
 0x1ab   : > { %v7220_v31 = vor.u32 %v7218_v30, %v7219_v20  ;;  %v1736_v19 = vmax.bf16 %v7222_v17, %v7221_v3  ;;  %v3890_v49 = vld.sshfl [vmem:[%s4801_s28 + $0x74] sm:$0x3 pattern:$0x76325410]  ;;  %v3712_v17 = vld [vmem:[%s4801_s28 + $0x2] sm:$0x3] }
 0x1ac   : > { %v5775_v27 = vrot.slane %v7217_v4, 4  ;;  %v3710_v47 = vld [vmem:[%s4748_s24 + $0x14] sm:$0x7]  ;;  %v3711_v4 = vld [vmem:[%s4748_s24 + $0x10] sm:$0x7]  ;;  %v2563_v25 = vmax.bf16 %v3712_v17, %v2499_v11  ;;  %v3141_v36 = vpop.permute.xlu1 %3140  ;;  %3254 = vrot.lane.b32.xlu0 %v3890_v49, %s3903_s21 }
 0x1ad   : > { %v5780_v6 = vrot.slane %v7220_v31, 4  ;;  %v1799_v43 = vmax.bf16 %v3710_v47, %v1735_v18  ;;  %v1798_v30 = vmax.bf16 %v3711_v4, %v1734_v14  ;;  %v7223_v20 = vld [vmem:[#allocation28_spill] sm:$0xff]  ;;  %v3713_v45 = vld [vmem:[%s4801_s28] sm:$0x3]  ;;  %v2501_v18 = vmax.bf16 %v5747_v54, %v1797_v22  ;;  %v3714_v15 = vld [vmem:[%s4748_s24 + $0x1c] sm:$0x7]  ;;  %v3139_v23 = vpop.permute.xlu0 %3138 }
 0x1ae   : > { %v7224_v31 = vor.u32 %v4901_v52, %v7223_v20  ;;  %v2562_v24 = vmax.bf16 %v3713_v45, %v2498_v46  ;;  %v2500_v47 = vmax.bf16 %v1884_v56, %v1796_v50  ;;  %v3891_v14 = vld.sshfl [vmem:[%s4801_s28 + $0x7a] sm:$0x3 pattern:$0x76325410]  ;;  %v1801_v7 = vmax.bf16 %v3714_v15, %v1737_v44  ;;  %v451_v59 = vld [vmem:[%s5792_s5 + $0x2] sm:$0x3] }
 0x1af   : > { %v3892_v4 = vld.sshfl [vmem:[%s4801_s28 + $0x78] sm:$0x3 pattern:$0x76325410]  ;;  %v450_v28 = vld [vmem:[%s5792_s5] sm:$0x3]  ;;  %v3331_v50 = vmax.bf16 %v3141_v36, %v2563_v25  ;;  %3260 = vrot.lane.b32.xlu1 %v3891_v14, %s3903_s21 }
 0x1b0   : > { %v5802_v3 = vrot.slane %v7224_v31, 4  ;;  %v7225_v52 = vld [vmem:[#allocation31_spill] sm:$0xff]  ;;  %v7226_v20 = vld [vmem:[#allocation110_spill] sm:$0xff]  ;;  %v3715_v11 = vld [vmem:[%s4748_s24 + $0x18] sm:$0x7]  ;;  %v3330_v44 = vmax.bf16 %v3139_v23, %v2562_v24  ;;  %v2502_v23 = vmax.bf16 %v5780_v6, %v1798_v30  ;;  %3258 = vrot.lane.b32.xlu0 %v3892_v4, %s3903_s21 }
 0x1b1   : > { %v7227_v31 = vor.u32 %v7225_v52, %v7226_v20  ;;  %v1800_v46 = vmax.bf16 %v3715_v11, %v1736_v19  ;;  %v7228_v54 = vld [vmem:[#allocation117_spill] sm:$0xff]  ;;  %v7229_v56 = vld [vmem:[#allocation108_spill] sm:$0xff]  ;;  %v7230_v15 = vld [vmem:[#allocation118_spill] sm:$0xff]  ;;  %v2503_v19 = vmax.bf16 %v5775_v27, %v1799_v43  ;;  %v3395_v24 = vmax.bf16 %v3331_v50, %v451_v59  ;;  %v3143_v27 = vpop.permute.xlu0 %3142 }
 0x1b2   : > { %v1739_v22 = vmax.bf16 %v7229_v56, %v7228_v54  ;;  %v7231_v45 = vld [vmem:[#allocation109_spill] sm:$0xff]  ;;  %v3394_v25 = vmax.bf16 %v3330_v44, %v450_v28  ;;  %v3716_v36 = vld [vmem:[%s4801_s28 + $0x6] sm:$0x3]  ;;  %v3717_v20 = vld [vmem:[%s4801_s28 + $0x4] sm:$0x3]  ;;  %v3145_v56 = vpop.permute.xlu1 %3144  ;;  %v2505_v43 = vmax.bf16 %v5802_v3, %v1801_v7  ;;  %v7232_v59 = vor.u32 %v4931_v12, %v4929_v2 }
 0x1b3   : > { %v5815_v57 = vrot.slane %v7227_v31, 4  ;;  %v1738_v17 = vmax.bf16 %v7231_v45, %v7230_v15  ;;  %v2565_v52 = vmax.bf16 %v3716_v36, %v2501_v18  ;;  %v2564_v31 = vmax.bf16 %v3717_v20, %v2500_v47  ;;  %v3893_v11 = vld.sshfl [vmem:[%s4801_s28 + $0x7e] sm:$0x3 pattern:$0x76325410]  ;;  %v7233_v45 = vld [vmem:[#allocation114_spill] sm:$0xff] }
 0x1b4   : > { %v3894_v54 = vld.sshfl [vmem:[%s4801_s28 + $0x7c] sm:$0x3 pattern:$0x76325410]  ;;  %v453_v62 = vld [vmem:[%s5792_s5 + $0x6] sm:$0x3]  ;;  %3264 = vrot.lane.b32.xlu1 %v3893_v11, %s3903_s21 }
 0x1b5   : > { %v452_v49 = vld [vmem:[%s5792_s5 + $0x4] sm:$0x3]  ;;  %v5842_v28 = vrot.slane %v7232_v59, 4  ;;  %3460 = vst.msk [vmem:[%s5826_s8 + $0x2] sm:$0x3] %vm3458_vm0, %v3395_v24  ;;  %v3333_v47 = vmax.bf16 %v3145_v56, %v2565_v52  ;;  %v3332_v50 = vmax.bf16 %v3143_v27, %v2564_v31  ;;  %v2504_v44 = vmax.bf16 %v5815_v57, %v1800_v46  ;;  %v7235_v46 = vld [vmem:[#allocation32_spill] sm:$0xff]  ;;  %3262 = vrot.lane.b32.xlu0 %v3894_v54, %s3903_s21 }
 0x1b6   : > { %v3718_v6 = vld [vmem:[%s4748_s24 + $0x24] sm:$0x7]  ;;  %3459 = vst.msk [vmem:[%s5826_s8] sm:$0x3] %vm3458_vm0, %v3394_v25  ;;  %v3719_v3 = vld [vmem:[%s4748_s24 + $0x20] sm:$0x7]  ;;  %v7234_v24 = vor.u32 %v4935_v41, %v7233_v45  ;;  %v3149_v27 = vpop.permute.xlu1 %3148 }
 0x1b7   : > { %v5845_v30 = vmax.bf16 %v3718_v6, %v1739_v22  ;;  %v5848_v18 = vld [vmem:[%s4748_s24 + $0xe4] sm:$0x7]  ;;  %v5856_v7 = vmax.bf16 %v3719_v3, %v1738_v17  ;;  %v3720_v2 = vld [vmem:[%s4801_s28 + $0xa] sm:$0x3]  ;;  %v3721_v22 = vld [vmem:[%s4801_s28 + $0x8] sm:$0x3]  ;;  %v3397_v14 = vmax.bf16 %v3333_v47, %v453_v62  ;;  %v3396_v4 = vmax.bf16 %v3332_v50, %v452_v49  ;;  %v3147_v6 = vpop.permute.xlu0 %3146 }
 0x1b8   : > { %v2567_v12 = vmax.bf16 %v3720_v2, %v2503_v19  ;;  %v2566_v15 = vmax.bf16 %v3721_v22, %v2502_v23  ;;  %v1938_v57 = vrot.slane %v7234_v24, 4  ;;  %v7236_v25 = vld [vmem:[#allocation111_spill] sm:$0xff]  ;;  %v7237_v36 = vld [vmem:[#allocation36_spill] sm:$0xff]  ;;  %v7239_v19 = vmax.bf16 %v5589_v40, %v7146_v10  ;;  %v7250_v54 = vld [vmem:[#allocation49_spill] sm:$0xff] }
 0x1b9   : > { %v1741_v17 = vmax.bf16 %v7236_v25, %v7235_v46  ;;  %v7238_v52 = vld [vmem:[#allocation112_spill] sm:$0xff]  ;;  %v7240_v31 = vld [vmem:[#allocation55_spill] sm:$0xff]  ;;  %v2372_v23 = vshrl.u32 %v5848_v18, 16  ;;  %3462 = vst.msk [vmem:[%s5826_s8 + $0x6] sm:$0x3] %vm3458_vm0, %v3397_v14  ;;  %v2507_v50 = vmax.bf16 %v5842_v28, %v5845_v30 }
 0x1ba   : > { %v1740_v20 = vmax.bf16 %v7238_v52, %v7237_v36  ;;  %v5873_v56 = vmax.bf16 %v7240_v31, %v7239_v19  ;;  %v455_v41 = vld [vmem:[%s5792_s5 + $0xa] sm:$0x3]  ;;  %v454_v59 = vld [vmem:[%s5792_s5 + $0x8] sm:$0x3]  ;;  %v3722_v3 = vld [vmem:[%s4801_s28 + $0xe] sm:$0x3]  ;;  %v3335_v40 = vmax.bf16 %v3149_v27, %v2567_v12  ;;  %v3334_v10 = vmax.bf16 %v3147_v6, %v2566_v15 }
 0x1bb   : > { %v2569_v2 = vmax.bf16 %v3722_v3, %v2505_v43  ;;  %v7241_v22 = vld [vmem:[#allocation119_spill] sm:$0xff]  ;;  %3461 = vst.msk [vmem:[%s5826_s8 + $0x4] sm:$0x3] %vm3458_vm0, %v3396_v4  ;;  %v7243_v43 = vld [vmem:[#allocation34_spill] sm:$0xff]  ;;  %v7246_v25 = vld [vmem:[#allocation116_spill] sm:$0xff]  ;;  %v2506_v12 = vmax.bf16 %v1938_v57, %v5856_v7 }
 0x1bc   : > { %v7242_v45 = vor.u32 %v4963_v5, %v7241_v22  ;;  %v3723_v49 = vld [vmem:[%s4801_s28 + $0xc] sm:$0x3]  ;;  %v3725_v30 = vld [vmem:[%s4748_s24 + $0x28] sm:$0x7]  ;;  %v3399_v19 = vmax.bf16 %v3335_v40, %v455_v41  ;;  %v3398_v31 = vmax.bf16 %v3334_v10, %v454_v59  ;;  %v7249_v6 = vld [vmem:[#allocation48_spill] sm:$0xff] }
 0x1bd   : > { %v2568_v47 = vmax.bf16 %v3723_v49, %v2504_v44  ;;  %v7244_v24 = vld [vmem:[#allocation115_spill] sm:$0xff]  ;;  %v7247_v44 = vld [vmem:[#allocation120_spill] sm:$0xff]  ;;  %v1804_v4 = vmax.bf16 %v3725_v30, %v1740_v20  ;;  %v7254_v59 = vld [vmem:[#allocation33_spill] sm:$0xff] }
 0x1be   : > { %v5882_v62 = vrot.slane %v7242_v45, 4  ;;  %v1743_v46 = vmax.bf16 %v7244_v24, %v7243_v43  ;;  %v7245_v5 = vld [vmem:[#allocation35_spill] sm:$0xff]  ;;  %v7248_v15 = vor.u32 %v4989_v55, %v7247_v44  ;;  %v3153_v55 = vpop.permute.xlu1 %3152  ;;  %v7251_v45 = vld [vmem:[#allocation37_spill] sm:$0xff]  ;;  %v7256_v43 = vld [vmem:[#allocation38_spill] sm:$0xff]  ;;  %3464 = vst.msk [vmem:[%s5826_s8 + $0xa] sm:$0x3] %vm3458_vm0, %v3399_v19 }
 0x1bf   : > { %v1742_v36 = vmax.bf16 %v7246_v25, %v7245_v5  ;;  %v3724_v14 = vld [vmem:[%s4748_s24 + $0x2c] sm:$0x7]  ;;  %v3727_v3 = vld [vmem:[%s3945_s20 + $0x68] sm:$0x7]  ;;  %v7252_v20 = vor.u32 %v4995_v37, %v7251_v45  ;;  %v7257_v24 = vld [vmem:[#allocation121_spill] sm:$0xff] }
 0x1c0   : > { %v1956_v52 = vrot.slane %v7248_v15, 4  ;;  %v1805_v28 = vmax.bf16 %v3724_v14, %v1741_v17  ;;  %v3726_v27 = vld [vmem:[%s3945_s20 + $0x6c] sm:$0x7]  ;;  %v796_v7 = vmax.bf16 %v3727_v3, %v7250_v54  ;;  %v3151_v17 = vpop.permute.xlu0 %3150  ;;  %v1745_v5 = vmax.bf16 %v7257_v24, %v7256_v43  ;;  %v7259_v44 = vld [vmem:[#allocation122_spill] sm:$0xff]  ;;  %3463 = vst.msk [vmem:[%s5826_s8 + $0x8] sm:$0x3] %vm3458_vm0, %v3398_v31 }
 0x1c1   : > { %v797_v11 = vmax.bf16 %v3726_v27, %v7249_v6  ;;  %v457_v57 = vld [vmem:[%s5792_s5 + $0xe] sm:$0x3]  ;;  %v456_v22 = vld [vmem:[%s5792_s5 + $0xc] sm:$0x3]  ;;  %v5912_v49 = vrot.slane %v7252_v20, 4  ;;  %v3337_v14 = vmax.bf16 %v3153_v55, %v2569_v2  ;;  %v3336_v37 = vmax.bf16 %v3151_v17, %v2568_v47  ;;  %v7261_v43 = vld [vmem:[#allocation126_spill] sm:$0xff] }
 0x1c2   : > { %v7253_v41 = vld [vmem:[#allocation123_spill] sm:$0xff]  ;;  %v3728_v30 = vld [vmem:[%s4748_s24 + $0x34] sm:$0x7]  ;;  %v3729_v6 = vld [vmem:[%s4748_s24 + $0x30] sm:$0x7]  ;;  %v2509_v19 = vmax.bf16 %v5882_v62, %v1805_v28  ;;  %v2508_v31 = vmax.bf16 %v1956_v52, %v1804_v4  ;;  %v3157_v55 = vpop.permute.xlu1 %3156  ;;  %v2063_v62 = vor.u32 %v5150_v35, %v5148_v21 }
 0x1c3   : > { %v7255_v40 = vor.u32 %v7253_v41, %v7254_v59  ;;  %v7258_v25 = vld [vmem:[#allocation131_spill] sm:$0xff]  ;;  %v1807_v27 = vmax.bf16 %v3728_v30, %v1743_v46  ;;  %v1806_v3 = vmax.bf16 %v3729_v6, %v1742_v36  ;;  %v3730_v54 = vld [vmem:[%s4801_s28 + $0x12] sm:$0x3]  ;;  %v3731_v20 = vld [vmem:[%s4801_s28 + $0x10] sm:$0x3]  ;;  %v3401_v59 = vmax.bf16 %v3337_v14, %v457_v57 }
 0x1c4   : > { %v1744_v15 = vmax.bf16 %v7259_v44, %v7258_v25  ;;  %v2571_v45 = vmax.bf16 %v3730_v54, %v2507_v50  ;;  %v2570_v41 = vmax.bf16 %v3731_v20, %v2506_v12  ;;  %v459_v2 = vld [vmem:[%s5792_s5 + $0x12] sm:$0x3]  ;;  %v458_v47 = vld [vmem:[%s5792_s5 + $0x10] sm:$0x3]  ;;  %v3155_v17 = vpop.permute.xlu0 %3154  ;;  %v7260_v46 = vld [vmem:[#allocation127_spill] sm:$0xff] }
 0x1c5   : > { %v5917_v10 = vrot.slane %v7255_v40, 4  ;;  %v3400_v40 = vmax.bf16 %v3336_v37, %v456_v22  ;;  %v7262_v36 = vor.u32 %v7260_v46, %v7261_v43  ;;  %v7263_v50 = vld [vmem:[#allocation39_spill] sm:$0xff]  ;;  %v7264_v25 = vld [vmem:[#allocation128_spill] sm:$0xff]  ;;  %v3732_v52 = vld [vmem:[%s4748_s24 + $0x3c] sm:$0x7] }
 0x1c6   : > { %v7265_v44 = vor.u32 %v7263_v50, %v7264_v25  ;;  %v7266_v57 = vld [vmem:[#allocation140_spill] sm:$0xff]  ;;  %v1809_v28 = vmax.bf16 %v3732_v52, %v1745_v5  ;;  %v3733_v4 = vld [vmem:[%s4748_s24 + $0x38] sm:$0x7]  ;;  %3466 = vst.msk [vmem:[%s5826_s8 + $0xe] sm:$0x3] %vm3458_vm0, %v3401_v59  ;;  %v3339_v37 = vmax.bf16 %v3157_v55, %v2571_v45  ;;  %v3338_v30 = vmax.bf16 %v3155_v17, %v2570_v41  ;;  %v7297_v21 = vld [vmem:[#allocation142_spill] sm:$0xff] }
 0x1c7   : > { %v5937_v24 = vrot.slane %v7262_v36, 4  ;;  %v2072_v22 = vor.u32 %v5143_v58, %v7266_v57  ;;  %v1808_v14 = vmax.bf16 %v3733_v4, %v1744_v15  ;;  %3465 = vst.msk [vmem:[%s5826_s8 + $0xc] sm:$0x3] %vm3458_vm0, %v3400_v40  ;;  %v7267_v6 = vld [vmem:[#allocation136_spill] sm:$0xff]  ;;  %v7269_v46 = vld [vmem:[#allocation137_spill] sm:$0xff]  ;;  %v2511_v50 = vmax.bf16 %v5912_v49, %v1807_v27  ;;  %v3161_v49 = vpop.permute.xlu1 %3160 }
 0x1c8   : > { %v5942_v12 = vrot.slane %v7265_v44, 4  ;;  %v7268_v54 = vld [vmem:[#allocation124_spill] sm:$0xff]  ;;  %v7270_v43 = vld [vmem:[#allocation125_spill] sm:$0xff]  ;;  %v2510_v5 = vmax.bf16 %v5917_v10, %v1806_v3  ;;  %v3403_v15 = vmax.bf16 %v3339_v37, %v459_v2  ;;  %v3402_v59 = vmax.bf16 %v3338_v30, %v458_v47  ;;  %v3159_v10 = vpop.permute.xlu0 %3158 }
 0x1c9   : > { %v1747_v20 = vmax.bf16 %v7268_v54, %v7267_v6  ;;  %v1746_v36 = vmax.bf16 %v7270_v43, %v7269_v46  ;;  %v3734_v25 = vld [vmem:[%s4801_s28 + $0x16] sm:$0x3]  ;;  %v3735_v40 = vld [vmem:[%s4801_s28 + $0x14] sm:$0x3]  ;;  %v7272_v17 = vld [vmem:[#allocation57_spill] sm:$0xff]  ;;  %v2513_v30 = vmax.bf16 %v5937_v24, %v1809_v28  ;;  %v1754_v35 = vmax.bf16 %v7297_v21, %v5873_v56 }
 0x1ca   : > { %v2573_v44 = vmax.bf16 %v3734_v25, %v2509_v19  ;;  %v2572_v45 = vmax.bf16 %v3735_v40, %v2508_v31  ;;  %v7271_v41 = vld [vmem:[#allocation56_spill] sm:$0xff]  ;;  %v5966_v52 = vmax.bf16 %v7272_v17, %v796_v7  ;;  %v7273_v3 = vld [vmem:[#allocation133_spill] sm:$0xff]  ;;  %v7276_v31 = vor.u32 %v5064_v8, %v5062_v13  ;;  %3468 = vst.msk [vmem:[%s5826_s8 + $0x12] sm:$0x3] %vm3458_vm0, %v3403_v15  ;;  %v3736_v54 = vld [vmem:[%s4748_s24 + $0x44] sm:$0x7] }
 0x1cb   : > { %v5963_v55 = vmax.bf16 %v7271_v41, %v797_v11  ;;  %v461_v4 = vld [vmem:[%s5792_s5 + $0x16] sm:$0x3]  ;;  %v460_v27 = vld [vmem:[%s5792_s5 + $0x14] sm:$0x3]  ;;  %3467 = vst.msk [vmem:[%s5826_s8 + $0x10] sm:$0x3] %vm3458_vm0, %v3402_v59  ;;  %v2512_v6 = vmax.bf16 %v5942_v12, %v1808_v14  ;;  %v1811_v46 = vmax.bf16 %v3736_v54, %v1747_v20 }
 0x1cc   : > { %v7274_v2 = vld [vmem:[#allocation132_spill] sm:$0xff]  ;;  %v5978_v11 = vrot.slane %v7276_v31, 4  ;;  %v3341_v7 = vmax.bf16 %v3161_v49, %v2573_v44  ;;  %v3340_v37 = vmax.bf16 %v3159_v10, %v2572_v45  ;;  %v3737_v43 = vld [vmem:[%s4748_s24 + $0x40] sm:$0x7]  ;;  %v3738_v8 = vld [vmem:[%s4801_s28 + $0x1a] sm:$0x3]  ;;  %v7283_v31 = vor.u32 %v5090_v0, %v5088_v60 }
 0x1cd   : > { %v7275_v47 = vor.u32 %v7273_v3, %v7274_v2  ;;  %v1810_v13 = vmax.bf16 %v3737_v43, %v1746_v36  ;;  %v2575_v25 = vmax.bf16 %v3738_v8, %v2511_v50  ;;  %v3739_v40 = vld [vmem:[%s4801_s28 + $0x18] sm:$0x3]  ;;  %v7277_v59 = vld [vmem:[#allocation44_spill] sm:$0xff]  ;;  %v7280_v24 = vld [vmem:[#allocation130_spill] sm:$0xff]  ;;  %v3165_v2 = vpop.permute.xlu1 %3164 }
 0x1ce   : > { %v2574_v15 = vmax.bf16 %v3739_v40, %v2510_v5  ;;  %v7278_v44 = vld [vmem:[#allocation129_spill] sm:$0xff]  ;;  %v7279_v41 = vld [vmem:[#allocation40_spill] sm:$0xff]  ;;  %v3405_v17 = vmax.bf16 %v3341_v7, %v461_v4  ;;  %v3404_v12 = vmax.bf16 %v3340_v37, %v460_v27  ;;  %v7281_v20 = vld [vmem:[#allocation50_spill] sm:$0xff]  ;;  %v6003_v54 = vrot.slane %v7283_v31, 4 }
 0x1cf   : > { %v5973_v19 = vrot.slane %v7275_v47, 4  ;;  %v1749_v45 = vmax.bf16 %v7278_v44, %v7277_v59  ;;  %v1748_v28 = vmax.bf16 %v7280_v24, %v7279_v41  ;;  %v3740_v14 = vld [vmem:[%s3945_s20 + $0x74] sm:$0x7]  ;;  %v3741_v36 = vld [vmem:[%s3945_s20 + $0x70] sm:$0x7]  ;;  %v7282_v10 = vld [vmem:[#allocation51_spill] sm:$0xff]  ;;  %v3163_v47 = vpop.permute.xlu0 %3162  ;;  %v7284_v4 = vor.u32 %v5094_v16, %v5092_v42 }
 0x1d0   : > { %v799_v49 = vmax.bf16 %v3740_v14, %v7281_v20  ;;  %v798_v50 = vmax.bf16 %v3741_v36, %v7282_v10  ;;  %v463_v3 = vld [vmem:[%s5792_s5 + $0x1a] sm:$0x3]  ;;  %v462_v5 = vld [vmem:[%s5792_s5 + $0x18] sm:$0x3]  ;;  %3470 = vst.msk [vmem:[%s5826_s8 + $0x16] sm:$0x3] %vm3458_vm0, %v3405_v17  ;;  %v3343_v7 = vmax.bf16 %v3165_v2, %v2575_v25  ;;  %v3342_v37 = vmax.bf16 %v3163_v47, %v2574_v15 }
 0x1d1   : > { %v6008_v27 = vrot.slane %v7284_v4, 4  ;;  %3469 = vst.msk [vmem:[%s5826_s8 + $0x14] sm:$0x3] %vm3458_vm0, %v3404_v12  ;;  %v3742_v43 = vld [vmem:[%s4801_s28 + $0x1e] sm:$0x3]  ;;  %v7285_v0 = vld [vmem:[#allocation134_spill] sm:$0xff]  ;;  %v2515_v44 = vmax.bf16 %v5973_v19, %v1811_v46  ;;  %v2514_v41 = vmax.bf16 %v5978_v11, %v1810_v13  ;;  %v3169_v14 = vpop.permute.xlu1 %3168  ;;  %v7288_v11 = vor.u32 %v5122_v63, %v5119_v39 }
 0x1d2   : > { %v2577_v8 = vmax.bf16 %v3742_v43, %v2513_v30  ;;  %v3743_v40 = vld [vmem:[%s4801_s28 + $0x1c] sm:$0x3]  ;;  %v1751_v59 = vmax.bf16 %v7285_v0, %v5162_v32  ;;  %v7286_v42 = vld [vmem:[#allocation135_spill] sm:$0xff]  ;;  %v3407_v12 = vmax.bf16 %v3343_v7, %v463_v3  ;;  %v3406_v30 = vmax.bf16 %v3342_v37, %v462_v5  ;;  %v7292_v3 = vld [vmem:[#allocation138_spill] sm:$0xff] }
 0x1d3   : > { %v2576_v60 = vmax.bf16 %v3743_v40, %v2512_v6  ;;  %v1750_v16 = vmax.bf16 %v7286_v42, %v5196_v34  ;;  %v3744_v24 = vld [vmem:[%s4748_s24 + $0x4c] sm:$0x7]  ;;  %v3745_v15 = vld [vmem:[%s4748_s24 + $0x48] sm:$0x7]  ;;  %v465_v6 = vld [vmem:[%s5792_s5 + $0x1e] sm:$0x3]  ;;  %v3167_v20 = vpop.permute.xlu0 %3166  ;;  %v7287_v34 = vor.u32 %v5117_v9, %v5113_v33  ;;  %v1753_v2 = vmax.bf16 %v7292_v3, %v5520_v48 }
 0x1d4   : > { %v1813_v25 = vmax.bf16 %v3744_v24, %v1749_v45  ;;  %v1812_v17 = vmax.bf16 %v3745_v15, %v1748_v28  ;;  %v464_v32 = vld [vmem:[%s5792_s5 + $0x1c] sm:$0x3]  ;;  %v6034_v46 = vrot.slane %v7288_v11, 4  ;;  %v7290_v28 = vld [vmem:[#allocation144_spill] sm:$0xff]  ;;  %v7293_v5 = vld [vmem:[#allocation139_spill] sm:$0xff]  ;;  %v3345_v63 = vmax.bf16 %v3169_v14, %v2577_v8 }
 0x1d5   : > { %v6029_v19 = vrot.slane %v7287_v34, 4  ;;  %v7289_v13 = vld [vmem:[#allocation41_spill] sm:$0xff]  ;;  %v1752_v33 = vmax.bf16 %v7293_v5, %v5556_v51  ;;  %3472 = vst.msk [vmem:[%s5826_s8 + $0x1a] sm:$0x3] %vm3458_vm0, %v3407_v12  ;;  %3471 = vst.msk [vmem:[%s5826_s8 + $0x18] sm:$0x3] %vm3458_vm0, %v3406_v30  ;;  %v3344_v9 = vmax.bf16 %v3167_v20, %v2576_v60  ;;  %v3173_v24 = vpop.permute.xlu1 %3172 }
 0x1d6   : > { %v2090_v45 = vor.u32 %v7289_v13, %v5152_v29  ;;  %v7291_v36 = vld [vmem:[#allocation145_spill] sm:$0xff]  ;;  %v3746_v39 = vld [vmem:[%s4748_s24 + $0x54] sm:$0x7]  ;;  %v3747_v29 = vld [vmem:[%s4748_s24 + $0x50] sm:$0x7]  ;;  %v3409_v43 = vmax.bf16 %v3345_v63, %v465_v6  ;;  %v2517_v40 = vmax.bf16 %v6003_v54, %v1813_v25  ;;  %v2516_v8 = vmax.bf16 %v6008_v27, %v1812_v17 }
 0x1d7   : > { %v2081_v10 = vor.u32 %v7291_v36, %v7290_v28  ;;  %v1815_v47 = vmax.bf16 %v3746_v39, %v1751_v59  ;;  %v1814_v31 = vmax.bf16 %v3747_v29, %v1750_v16  ;;  %v3748_v4 = vld [vmem:[%s4801_s28 + $0x22] sm:$0x3]  ;;  %v3749_v37 = vld [vmem:[%s4801_s28 + $0x20] sm:$0x3]  ;;  %v3408_v51 = vmax.bf16 %v3344_v9, %v464_v32  ;;  %v7295_v59 = vld [vmem:[#allocation59_spill] sm:$0xff]  ;;  %v3171_v15 = vpop.permute.xlu0 %3170 }
 0x1d8   : > { %v2579_v7 = vmax.bf16 %v3748_v4, %v2515_v44  ;;  %v2578_v48 = vmax.bf16 %v3749_v37, %v2514_v41  ;;  %v7294_v60 = vld [vmem:[#allocation58_spill] sm:$0xff]  ;;  %v6058_v42 = vmax.bf16 %v7295_v59, %v798_v50  ;;  %v2073_v41 = vrot.slane %v2072_v22, 4  ;;  %v3750_v27 = vld [vmem:[%s4748_s24 + $0x5c] sm:$0x7]  ;;  %v3751_v25 = vld [vmem:[%s4748_s24 + $0x58] sm:$0x7] }
 0x1d9   : > { %v6055_v0 = vmax.bf16 %v7294_v60, %v799_v49  ;;  %v467_v16 = vld [vmem:[%s5792_s5 + $0x22] sm:$0x3]  ;;  %v466_v44 = vld [vmem:[%s5792_s5 + $0x20] sm:$0x3]  ;;  %v2064_v54 = vrot.slane %v2063_v62, 4  ;;  %v1817_v49 = vmax.bf16 %v3750_v27, %v1753_v2  ;;  %v1816_v50 = vmax.bf16 %v3751_v25, %v1752_v33  ;;  %v7296_v58 = vld [vmem:[#allocation141_spill] sm:$0xff]  ;;  %v3177_v13 = vpop.permute.xlu1 %3176 }
 0x1da   : > { %3474 = vst.msk [vmem:[%s5826_s8 + $0x1e] sm:$0x3] %vm3458_vm0, %v3409_v43  ;;  %3473 = vst.msk [vmem:[%s5826_s8 + $0x1c] sm:$0x3] %vm3458_vm0, %v3408_v51  ;;  %v3347_v17 = vmax.bf16 %v3173_v24, %v2579_v7  ;;  %v3346_v12 = vmax.bf16 %v3171_v15, %v2578_v48  ;;  %v1755_v57 = vmax.bf16 %v7296_v58, %v5623_v53  ;;  %v3752_v14 = vld [vmem:[%s4801_s28 + $0x26] sm:$0x3] }
 0x1db   : > { %v2519_v22 = vmax.bf16 %v6029_v19, %v1815_v47  ;;  %v2518_v62 = vmax.bf16 %v6034_v46, %v1814_v31  ;;  %v2581_v32 = vmax.bf16 %v3752_v14, %v2517_v40  ;;  %v3753_v20 = vld [vmem:[%s4801_s28 + $0x24] sm:$0x3]  ;;  %v469_v11 = vld [vmem:[%s5792_s5 + $0x26] sm:$0x3]  ;;  %v3175_v28 = vpop.permute.xlu0 %3174  ;;  %v6084_v56 = vrot.slane %v2090_v45, 4  ;;  %v7299_v36 = vld [vmem:[#allocation147_spill] sm:$0xff] }
 0x1dc   : > { %v3411_v30 = vmax.bf16 %v3347_v17, %v467_v16  ;;  %v3410_v6 = vmax.bf16 %v3346_v12, %v466_v44  ;;  %v2580_v34 = vmax.bf16 %v3753_v20, %v2516_v8  ;;  %v468_v53 = vld [vmem:[%s5792_s5 + $0x24] sm:$0x3]  ;;  %v6086_v19 = vrot.slane %v2081_v10, 4  ;;  %v7300_v2 = vld [vmem:[#allocation148_spill] sm:$0xff]  ;;  %v3755_v10 = vld [vmem:[%s4748_s24 + $0x60] sm:$0x7] }
 0x1dd   : > { %v7298_v46 = vld [vmem:[#allocation146_spill] sm:$0xff]  ;;  %v2099_v5 = vor.u32 %v5198_v1, %v7300_v2  ;;  %v3349_v33 = vmax.bf16 %v3177_v13, %v2581_v32  ;;  %v2521_v9 = vmax.bf16 %v2073_v41, %v1817_v49  ;;  %v2520_v45 = vmax.bf16 %v2064_v54, %v1816_v50  ;;  %v3756_v31 = vld [vmem:[%s4801_s28 + $0x2a] sm:$0x3]  ;;  %v3757_v7 = vld [vmem:[%s4801_s28 + $0x28] sm:$0x3]  ;;  %v3181_v59 = vpop.permute.xlu1 %3180 }
 0x1de   : > { %v2108_v3 = vor.u32 %v7299_v36, %v7298_v46  ;;  %3476 = vst.msk [vmem:[%s5826_s8 + $0x22] sm:$0x3] %vm3458_vm0, %v3411_v30  ;;  %3475 = vst.msk [vmem:[%s5826_s8 + $0x20] sm:$0x3] %vm3458_vm0, %v3410_v6  ;;  %v3348_v63 = vmax.bf16 %v3175_v28, %v2580_v34  ;;  %v3754_v39 = vld [vmem:[%s4748_s24 + $0x64] sm:$0x7]  ;;  %v1818_v29 = vmax.bf16 %v3755_v10, %v1754_v35 }
 0x1df   : > { %v1819_v47 = vmax.bf16 %v3754_v39, %v1755_v57  ;;  %v2583_v4 = vmax.bf16 %v3756_v31, %v2519_v22  ;;  %v2582_v1 = vmax.bf16 %v3757_v7, %v2518_v62  ;;  %v7301_v37 = vld [vmem:[#allocation45_spill] sm:$0xff]  ;;  %v7302_v43 = vld [vmem:[#allocation143_spill] sm:$0xff]  ;;  %v3413_v40 = vmax.bf16 %v3349_v33, %v469_v11  ;;  %v3179_v24 = vpop.permute.xlu0 %3178  ;;  %v7303_v41 = vld [vmem:[#allocation42_spill] sm:$0xff] }
 0x1e0   : > { %v1757_v48 = vmax.bf16 %v7301_v37, %v5963_v55  ;;  %v1756_v51 = vmax.bf16 %v7302_v43, %v5966_v52  ;;  %v3412_v8 = vmax.bf16 %v3348_v63, %v468_v53  ;;  %v471_v60 = vld [vmem:[%s5792_s5 + $0x2a] sm:$0x3]  ;;  %v470_v16 = vld [vmem:[%s5792_s5 + $0x28] sm:$0x3]  ;;  %v6106_v44 = vrot.slane %v2108_v3, 4  ;;  %v7305_v55 = vld [vmem:[#allocation154_spill] sm:$0xff] }
 0x1e1   : > { %v6108_v15 = vrot.slane %v2099_v5, 4  ;;  %v7304_v54 = vld [vmem:[#allocation151_spill] sm:$0xff]  ;;  %v6115_v52 = vld [vmem:[%s4748_s24 + $0xe0] sm:$0x7]  ;;  %3478 = vst.msk [vmem:[%s5826_s8 + $0x26] sm:$0x3] %vm3458_vm0, %v3413_v40  ;;  %v3351_v50 = vmax.bf16 %v3181_v59, %v2583_v4  ;;  %v3350_v17 = vmax.bf16 %v3179_v24, %v2582_v1  ;;  %v2523_v6 = vmax.bf16 %v6084_v56, %v1819_v47 }
 0x1e2   : > { %v2126_v27 = vor.u32 %v7304_v54, %v7303_v41  ;;  %v7306_v49 = vld [vmem:[#allocation155_spill] sm:$0xff]  ;;  %3477 = vst.msk [vmem:[%s5826_s8 + $0x24] sm:$0x3] %vm3458_vm0, %v3412_v8  ;;  %v7307_v35 = vld [vmem:[#allocation149_spill] sm:$0xff]  ;;  %v7308_v62 = vld [vmem:[#allocation150_spill] sm:$0xff]  ;;  %v2522_v14 = vmax.bf16 %v6086_v19, %v1818_v29  ;;  %v2375_v28 = vshll.u32 %v5848_v18, 16 }
 0x1e3   : > { %v2117_v25 = vor.u32 %v7306_v49, %v7305_v55  ;;  %v3758_v12 = vld [vmem:[%s4801_s28 + $0x2e] sm:$0x3]  ;;  %v3759_v57 = vld [vmem:[%s4801_s28 + $0x2c] sm:$0x3]  ;;  %v1759_v22 = vmax.bf16 %v7307_v35, %v6055_v0  ;;  %v1758_v30 = vmax.bf16 %v7308_v62, %v6058_v42  ;;  %v3761_v34 = vld [vmem:[%s4748_s24 + $0x68] sm:$0x7]  ;;  %v3415_v13 = vmax.bf16 %v3351_v50, %v471_v60  ;;  %v3185_v42 = vpop.permute.xlu1 %3184  ;;  %v3183_v36 = vpop.permute.xlu0 %3182 }
 0x1e4   : > { %v2585_v58 = vmax.bf16 %v3758_v12, %v2521_v9  ;;  %v2584_v21 = vmax.bf16 %v3759_v57, %v2520_v45  ;;  %v3760_v32 = vld [vmem:[%s4748_s24 + $0x6c] sm:$0x7]  ;;  %v1820_v11 = vmax.bf16 %v3761_v34, %v1756_v51  ;;  %v3414_v53 = vmax.bf16 %v3350_v17, %v470_v16  ;;  %v7309_v19 = vld [vmem:[#allocation158_spill] sm:$0xff]  ;;  %v7310_v3 = vld [vmem:[#allocation161_spill] sm:$0xff] }
 0x1e5   : > { %v1821_v20 = vmax.bf16 %v3760_v32, %v1757_v48  ;;  %v2363_v0 = vshrl.u32 %v6115_v52, 16  ;;  %v473_v46 = vld [vmem:[%s5792_s5 + $0x2e] sm:$0x3]  ;;  %v472_v56 = vld [vmem:[%s5792_s5 + $0x2c] sm:$0x3]  ;;  %v2144_v2 = vor.u32 %v7310_v3, %v7309_v19  ;;  %v7311_v5 = vld [vmem:[#allocation162_spill] sm:$0xff] }
 0x1e6   : > { %v7312_v33 = vld [vmem:[#allocation165_spill] sm:$0xff]  ;;  %3480 = vst.msk [vmem:[%s5826_s8 + $0x2a] sm:$0x3] %vm3458_vm0, %v3415_v13  ;;  %3479 = vst.msk [vmem:[%s5826_s8 + $0x28] sm:$0x3] %vm3458_vm0, %v3414_v53  ;;  %v3353_v9 = vmax.bf16 %v3185_v42, %v2585_v58  ;;  %v3352_v45 = vmax.bf16 %v3183_v36, %v2584_v21  ;;  %v2127_v39 = vrot.slane %v2126_v27, 4  ;;  %v2524_v8 = vmax.bf16 %v6108_v15, %v1820_v11 }
 0x1e7   : > { %v2135_v63 = vor.u32 %v7312_v33, %v7311_v5  ;;  %v2118_v47 = vrot.slane %v2117_v25, 4  ;;  %v3762_v10 = vld [vmem:[%s4748_s24 + $0x74] sm:$0x7]  ;;  %v3763_v31 = vld [vmem:[%s4748_s24 + $0x70] sm:$0x7]  ;;  %v2525_v40 = vmax.bf16 %v6106_v44, %v1821_v20  ;;  %v6151_v60 = vrot.slane %v2372_v23, 4  ;;  %v3189_v24 = vpop.permute.xlu1 %3188  ;;  %v3187_v54 = vpop.permute.xlu0 %3186 }
 0x1e8   : > { %v1823_v29 = vmax.bf16 %v3762_v10, %v1759_v22  ;;  %v1822_v4 = vmax.bf16 %v3763_v31, %v1758_v30  ;;  %v3764_v7 = vld [vmem:[%s4801_s28 + $0x32] sm:$0x3]  ;;  %v3765_v37 = vld [vmem:[%s4801_s28 + $0x30] sm:$0x3]  ;;  %v3417_v43 = vmax.bf16 %v3353_v9, %v473_v46  ;;  %v3416_v51 = vmax.bf16 %v3352_v45, %v472_v56  ;;  %v7313_v27 = vld [vmem:[#allocation166_spill] sm:$0xff] }
 0x1e9   : > { %v2587_v1 = vmax.bf16 %v3764_v7, %v2523_v6  ;;  %v2586_v48 = vmax.bf16 %v3765_v37, %v2522_v14  ;;  %v2366_v59 = vshll.u32 %v6115_v52, 16  ;;  %v475_v16 = vld [vmem:[%s5792_s5 + $0x32] sm:$0x3]  ;;  %v474_v41 = vld [vmem:[%s5792_s5 + $0x30] sm:$0x3]  ;;  %v7314_v55 = vld [vmem:[#allocation167_spill] sm:$0xff] }
 0x1ea   : > { %v2162_v49 = vor.u32 %v7314_v55, %v7313_v27  ;;  %v7315_v25 = vld [vmem:[#allocation170_spill] sm:$0xff]  ;;  %v7316_v50 = vld [vmem:[#allocation171_spill] sm:$0xff]  ;;  %3482 = vst.msk [vmem:[%s5826_s8 + $0x2e] sm:$0x3] %vm3458_vm0, %v3417_v43  ;;  %3481 = vst.msk [vmem:[%s5826_s8 + $0x2c] sm:$0x3] %vm3458_vm0, %v3416_v51  ;;  %v2527_v32 = vmax.bf16 %v2127_v39, %v1823_v29  ;;  %v2526_v20 = vmax.bf16 %v2118_v47, %v1822_v4 }
 0x1eb   : > { %v2153_v44 = vor.u32 %v7316_v50, %v7315_v25  ;;  %v3355_v18 = vmax.bf16 %v3189_v24, %v2587_v1  ;;  %v3354_v23 = vmax.bf16 %v3187_v54, %v2586_v48  ;;  %v2145_v15 = vrot.slane %v2144_v2, 4  ;;  %v3766_v12 = vld [vmem:[%s4748_s24 + $0x7c] sm:$0x7]  ;;  %v7317_v58 = vld [vmem:[#allocation156_spill] sm:$0xff]  ;;  %v3767_v22 = vld [vmem:[%s4748_s24 + $0x78] sm:$0x7]  ;;  %v3193_v3 = vpop.permute.xlu1 %3192  ;;  %v3191_v5 = vpop.permute.xlu0 %3190 }
 0x1ec   : > { %v6164_v17 = vrot.slane %v2135_v63, 4  ;;  %v7318_v57 = vld [vmem:[#allocation152_spill] sm:$0xff]  ;;  %v7320_v62 = vld [vmem:[#allocation157_spill] sm:$0xff]  ;;  %v6176_v56 = vrot.slane %v2375_v28, 5  ;;  %v6178_v36 = vrot.slane %v2363_v0, 4  ;;  %v7323_v33 = vld [vmem:[#allocation174_spill] sm:$0xff] }
 0x1ed   : > { %v7319_v21 = vmax.bf16 %v7317_v58, %v7318_v57  ;;  %v7321_v30 = vld [vmem:[#allocation153_spill] sm:$0xff]  ;;  %v3419_v34 = vmax.bf16 %v3355_v18, %v475_v16  ;;  %v3418_v11 = vmax.bf16 %v3354_v23, %v474_v41  ;;  %v3768_v13 = vld [vmem:[%s4801_s28 + $0x36] sm:$0x3]  ;;  %v3769_v46 = vld [vmem:[%s4801_s28 + $0x34] sm:$0x3]  ;;  %v6193_v29 = vrot.slane %v2162_v49, 4 }
 0x1ee   : > { %v7322_v6 = vmax.bf16 %v7320_v62, %v7321_v30  ;;  %v2589_v53 = vmax.bf16 %v3768_v13, %v2525_v40  ;;  %v2588_v42 = vmax.bf16 %v3769_v46, %v2524_v8  ;;  %v477_v19 = vld [vmem:[%s5792_s5 + $0x36] sm:$0x3]  ;;  %v476_v2 = vld [vmem:[%s5792_s5 + $0x34] sm:$0x3]  ;;  %v7324_v63 = vld [vmem:[#allocation66_spill] sm:$0xff]  ;;  %v6195_v31 = vrot.slane %v2153_v44, 4 }
 0x1ef   : > { %v1825_v35 = vmax.bf16 %v3766_v12, %v7319_v21  ;;  %v2180_v9 = vor.u32 %v7324_v63, %v7323_v33  ;;  %v7325_v45 = vld [vmem:[#allocation67_spill] sm:$0xff]  ;;  %v7326_v39 = vld [vmem:[#allocation177_spill] sm:$0xff]  ;;  %3484 = vst.msk [vmem:[%s5826_s8 + $0x32] sm:$0x3] %vm3458_vm0, %v3419_v34  ;;  %3483 = vst.msk [vmem:[%s5826_s8 + $0x30] sm:$0x3] %vm3458_vm0, %v3418_v11  ;;  %v3195_v12 = vpop.permute.xlu0 %3194 }
 0x1f0   : > { %v1824_v14 = vmax.bf16 %v3767_v22, %v7322_v6  ;;  %v2171_v47 = vor.u32 %v7326_v39, %v7325_v45  ;;  %v6187_v10 = vld [vmem:[%s4748_s24 + $0xec] sm:$0x7]  ;;  %v3357_v28 = vmax.bf16 %v3193_v3, %v2589_v53  ;;  %v3356_v0 = vmax.bf16 %v3191_v5, %v2588_v42  ;;  %v3770_v4 = vld [vmem:[%s4801_s28 + $0x3a] sm:$0x3]  ;;  %v3771_v1 = vld [vmem:[%s4801_s28 + $0x38] sm:$0x3] }
 0x1f1   : > { %v2591_v7 = vmax.bf16 %v3770_v4, %v2527_v32  ;;  %v2590_v37 = vmax.bf16 %v3771_v1, %v2526_v20  ;;  %v2529_v48 = vmax.bf16 %v2145_v15, %v1825_v35  ;;  %v3772_v51 = vld [vmem:[%s4748_s24 + $0x84] sm:$0x7]  ;;  %v7327_v40 = vld [vmem:[#allocation163_spill] sm:$0xff]  ;;  %v3773_v41 = vld [vmem:[%s4748_s24 + $0x80] sm:$0x7]  ;;  %v6208_v44 = vrot.slane %v2366_v59, 5  ;;  %v3197_v15 = vpop.permute.xlu1 %3196 }
 0x1f2   : > { %v2528_v43 = vmax.bf16 %v6164_v17, %v1824_v14  ;;  %v7328_v8 = vld [vmem:[#allocation159_spill] sm:$0xff]  ;;  %v7330_v54 = vld [vmem:[#allocation164_spill] sm:$0xff]  ;;  %v3421_v25 = vmax.bf16 %v3357_v28, %v477_v19  ;;  %v3420_v50 = vmax.bf16 %v3356_v0, %v476_v2  ;;  %v2390_v18 = vshrl.u32 %v6187_v10, 16  ;;  %v479_v23 = vld [vmem:[%s5792_s5 + $0x3a] sm:$0x3] }
 0x1f3   : > { %v7329_v16 = vmax.bf16 %v7327_v40, %v7328_v8  ;;  %v7331_v27 = vld [vmem:[#allocation160_spill] sm:$0xff]  ;;  %v478_v17 = vld [vmem:[%s5792_s5 + $0x38] sm:$0x3]  ;;  %v7333_v58 = vld [vmem:[#allocation178_spill] sm:$0xff]  ;;  %v3359_v59 = vmax.bf16 %v3197_v15, %v2591_v7  ;;  %v3358_v6 = vmax.bf16 %v3195_v12, %v2590_v37  ;;  %v2181_v14 = vrot.slane %v2180_v9, 4 }
 0x1f4   : > { %v7332_v55 = vmax.bf16 %v7330_v54, %v7331_v27  ;;  %v7334_v57 = vld [vmem:[#allocation179_spill] sm:$0xff]  ;;  %v7335_v35 = vld [vmem:[#allocation68_spill] sm:$0xff]  ;;  %v7336_v22 = vld [vmem:[#allocation69_spill] sm:$0xff]  ;;  %3486 = vst.msk [vmem:[%s5826_s8 + $0x36] sm:$0x3] %vm3458_vm0, %v3421_v25  ;;  %v2172_v32 = vrot.slane %v2171_v47, 4 }
 0x1f5   : > { %v1827_v24 = vmax.bf16 %v3772_v51, %v7329_v16  ;;  %v2198_v21 = vor.u32 %v7334_v57, %v7333_v58  ;;  %v2189_v62 = vor.u32 %v7336_v22, %v7335_v35  ;;  %v6218_v30 = vld [vmem:[%s4748_s24 + $0xe8] sm:$0x7]  ;;  %3485 = vst.msk [vmem:[%s5826_s8 + $0x34] sm:$0x3] %vm3458_vm0, %v3420_v50  ;;  %v3774_v20 = vld [vmem:[%s4748_s24 + $0x8c] sm:$0x7]  ;;  %v3423_v9 = vmax.bf16 %v3359_v59, %v479_v23  ;;  %v3201_v1 = vpop.permute.xlu1 %3200  ;;  %v3199_v51 = vpop.permute.xlu0 %3198 }
 0x1f6   : > { %v1826_v49 = vmax.bf16 %v3773_v41, %v7332_v55  ;;  %v7337_v34 = vld [vmem:[#allocation172_spill] sm:$0xff]  ;;  %v3775_v46 = vld [vmem:[%s4748_s24 + $0x88] sm:$0x7]  ;;  %v7340_v42 = vld [vmem:[#allocation173_spill] sm:$0xff]  ;;  %v3422_v39 = vmax.bf16 %v3358_v6, %v478_v17  ;;  %v2393_v0 = vshll.u32 %v6187_v10, 16  ;;  %v2381_v4 = vshrl.u32 %v6218_v30, 16 }
 0x1f7   : > { %v7338_v11 = vld [vmem:[#allocation168_spill] sm:$0xff]  ;;  %v7341_v19 = vld [vmem:[#allocation169_spill] sm:$0xff]  ;;  %v2531_v47 = vmax.bf16 %v6193_v29, %v1827_v24  ;;  %v7344_v40 = vld [vmem:[#allocation70_spill] sm:$0xff]  ;;  %3488 = vst.msk [vmem:[%s5826_s8 + $0x3a] sm:$0x3] %vm3458_vm0, %v3423_v9  ;;  %v2199_v24 = vrot.slane %v2198_v21, 4 }
 0x1f8   : > { %v7339_v13 = vmax.bf16 %v7337_v34, %v7338_v11  ;;  %v7342_v3 = vmax.bf16 %v7340_v42, %v7341_v19  ;;  %v3776_v5 = vld [vmem:[%s4801_s28 + $0x3e] sm:$0x3]  ;;  %v3777_v63 = vld [vmem:[%s4801_s28 + $0x3c] sm:$0x3]  ;;  %v2530_v28 = vmax.bf16 %v6195_v31, %v1826_v49  ;;  %3487 = vst.msk [vmem:[%s5826_s8 + $0x38] sm:$0x3] %vm3458_vm0, %v3422_v39 }
 0x1f9   : > { %v2593_v33 = vmax.bf16 %v3776_v5, %v2529_v48  ;;  %v2592_v45 = vmax.bf16 %v3777_v63, %v2528_v43  ;;  %v481_v7 = vld [vmem:[%s5792_s5 + $0x3e] sm:$0x3]  ;;  %v480_v37 = vld [vmem:[%s5792_s5 + $0x3c] sm:$0x3]  ;;  %v7343_v48 = vld [vmem:[#allocation182_spill] sm:$0xff]  ;;  %v2190_v54 = vrot.slane %v2189_v62, 4 }
 0x1fa   : > { %v1829_v53 = vmax.bf16 %v3774_v20, %v7339_v13  ;;  %v1828_v2 = vmax.bf16 %v3775_v46, %v7342_v3  ;;  %v2216_v8 = vor.u32 %v7344_v40, %v7343_v48  ;;  %v7345_v43 = vld [vmem:[#allocation71_spill] sm:$0xff]  ;;  %v7346_v16 = vld [vmem:[#allocation185_spill] sm:$0xff]  ;;  %v3778_v27 = vld [vmem:[%s4748_s24 + $0x94] sm:$0x7]  ;;  %v6258_v34 = vrot.slane %v2390_v18, 4  ;;  %v3205_v46 = vpop.permute.xlu1 %3204 }
 0x1fb   : > { %v2207_v41 = vor.u32 %v7346_v16, %v7345_v43  ;;  %v3361_v29 = vmax.bf16 %v3201_v1, %v2593_v33  ;;  %v3360_v31 = vmax.bf16 %v3199_v51, %v2592_v45  ;;  %v7347_v55 = vld [vmem:[#allocation175_spill] sm:$0xff]  ;;  %v7348_v49 = vld [vmem:[#allocation60_spill] sm:$0xff]  ;;  %v7351_v17 = vld [vmem:[#allocation61_spill] sm:$0xff]  ;;  %v2384_v11 = vshll.u32 %v6218_v30, 16 }
 0x1fc   : > { %v7349_v25 = vmax.bf16 %v7347_v55, %v7348_v49  ;;  %v3779_v23 = vld [vmem:[%s4748_s24 + $0x90] sm:$0x7]  ;;  %v2533_v57 = vmax.bf16 %v2181_v14, %v1829_v53  ;;  %v2532_v35 = vmax.bf16 %v2172_v32, %v1828_v2  ;;  %v3780_v21 = vld [vmem:[%s4801_s28 + $0x42] sm:$0x3]  ;;  %v3781_v62 = vld [vmem:[%s4801_s28 + $0x40] sm:$0x3]  ;;  %v3203_v14 = vpop.permute.xlu0 %3202 }
 0x1fd   : > { %v7350_v15 = vld [vmem:[#allocation176_spill] sm:$0xff]  ;;  %v3425_v22 = vmax.bf16 %v3361_v29, %v481_v7  ;;  %v3424_v59 = vmax.bf16 %v3360_v31, %v480_v37  ;;  %v2595_v6 = vmax.bf16 %v3780_v21, %v2531_v47  ;;  %v2594_v20 = vmax.bf16 %v3781_v62, %v2530_v28  ;;  %v483_v13 = vld [vmem:[%s5792_s5 + $0x42] sm:$0x3]  ;;  %v482_v42 = vld [vmem:[%s5792_s5 + $0x40] sm:$0x3] }
 0x1fe   : > { %v1831_v50 = vmax.bf16 %v3778_v27, %v7349_v25  ;;  %v7352_v12 = vmax.bf16 %v7350_v15, %v7351_v17  ;;  %v7353_v53 = vld [vmem:[#allocation186_spill] sm:$0xff]  ;;  %v7354_v32 = vld [vmem:[#allocation187_spill] sm:$0xff]  ;;  %v7355_v3 = vld [vmem:[#allocation72_spill] sm:$0xff]  ;;  %v6271_v63 = vrot.slane %v2216_v8, 4  ;;  %v6273_v45 = vrot.slane %v2207_v41, 4  ;;  %v3209_v25 = vpop.permute.xlu1 %3208 }
 0x1ff   : > { %v2234_v19 = vor.u32 %v7354_v32, %v7353_v53  ;;  %v7356_v2 = vld [vmem:[#allocation73_spill] sm:$0xff]  ;;  %3490 = vst.msk [vmem:[%s5826_s8 + $0x3e] sm:$0x3] %vm3458_vm0, %v3425_v22  ;;  %3489 = vst.msk [vmem:[%s5826_s8 + $0x3c] sm:$0x3] %vm3458_vm0, %v3424_v59  ;;  %v3363_v18 = vmax.bf16 %v3205_v46, %v2595_v6  ;;  %v3362_v33 = vmax.bf16 %v3203_v14, %v2594_v20  ;;  %v7357_v51 = vld [vmem:[#allocation180_spill] sm:$0xff] }
 0x200   : > { %v1830_v58 = vmax.bf16 %v3779_v23, %v7352_v12  ;;  %v2225_v5 = vor.u32 %v7356_v2, %v7355_v3  ;;  %v3782_v9 = vld [vmem:[%s4801_s28 + $0x46] sm:$0x3]  ;;  %v3783_v47 = vld [vmem:[%s4801_s28 + $0x44] sm:$0x3]  ;;  %v2535_v7 = vmax.bf16 %v2199_v24, %v1831_v50  ;;  %v3784_v37 = vld [vmem:[%s4748_s24 + $0x9c] sm:$0x7]  ;;  %v3207_v23 = vpop.permute.xlu0 %3206 }
 0x201   : > { %v2597_v39 = vmax.bf16 %v3782_v9, %v2533_v57  ;;  %v2596_v28 = vmax.bf16 %v3783_v47, %v2532_v35  ;;  %v7358_v48 = vld [vmem:[#allocation62_spill] sm:$0xff]  ;;  %v3785_v8 = vld [vmem:[%s4748_s24 + $0x98] sm:$0x7]  ;;  %v7361_v29 = vld [vmem:[#allocation63_spill] sm:$0xff]  ;;  %v3427_v27 = vmax.bf16 %v3363_v18, %v483_v13  ;;  %v3426_v55 = vmax.bf16 %v3362_v33, %v482_v42 }
 0x202   : > { %v2534_v1 = vmax.bf16 %v2190_v54, %v1830_v58  ;;  %v7359_v40 = vmax.bf16 %v7357_v51, %v7358_v48  ;;  %v7360_v16 = vld [vmem:[#allocation181_spill] sm:$0xff]  ;;  %v6285_v49 = vrot.slane %v2393_v0, 5  ;;  %v6287_v24 = vrot.slane %v2381_v4, 4  ;;  %v485_v54 = vld [vmem:[%s5792_s5 + $0x46] sm:$0x3]  ;;  %v7365_v58 = vld [vmem:[#allocation75_spill] sm:$0xff]  ;;  %v3213_v48 = vpop.permute.xlu1 %3212 }
 0x203   : > { %v7362_v41 = vmax.bf16 %v7360_v16, %v7361_v29  ;;  %v484_v50 = vld [vmem:[%s5792_s5 + $0x44] sm:$0x3]  ;;  %v7366_v57 = vld [vmem:[#allocation193_spill] sm:$0xff]  ;;  %v6296_v22 = vld [vmem:[%s4748_s24 + $0xf4] sm:$0x7]  ;;  %v3365_v0 = vmax.bf16 %v3209_v25, %v2597_v39  ;;  %v3364_v4 = vmax.bf16 %v3207_v23, %v2596_v28  ;;  %v2235_v59 = vrot.slane %v2234_v19, 4 }
 0x204   : > { %v1833_v43 = vmax.bf16 %v3784_v37, %v7359_v40  ;;  %v7363_v15 = vld [vmem:[#allocation190_spill] sm:$0xff]  ;;  %v2243_v35 = vor.u32 %v7366_v57, %v7365_v58  ;;  %3492 = vst.msk [vmem:[%s5826_s8 + $0x42] sm:$0x3] %vm3458_vm0, %v3427_v27  ;;  %3491 = vst.msk [vmem:[%s5826_s8 + $0x40] sm:$0x3] %vm3458_vm0, %v3426_v55  ;;  %v2226_v21 = vrot.slane %v2225_v5, 4 }
 0x205   : > { %v1832_v31 = vmax.bf16 %v3785_v8, %v7362_v41  ;;  %v7364_v17 = vld [vmem:[#allocation74_spill] sm:$0xff]  ;;  %v7367_v62 = vld [vmem:[#allocation183_spill] sm:$0xff]  ;;  %v7368_v20 = vld [vmem:[#allocation64_spill] sm:$0xff]  ;;  %v3429_v9 = vmax.bf16 %v3365_v0, %v485_v54  ;;  %v3428_v5 = vmax.bf16 %v3364_v4, %v484_v50  ;;  %v6314_v28 = vrot.slane %v2384_v11, 5 }
 0x206   : > { %v2252_v12 = vor.u32 %v7364_v17, %v7363_v15  ;;  %v3786_v6 = vld [vmem:[%s4748_s24 + $0xa4] sm:$0x7]  ;;  %v7369_v13 = vmax.bf16 %v7367_v62, %v7368_v20  ;;  %v3787_v42 = vld [vmem:[%s4748_s24 + $0xa0] sm:$0x7]  ;;  %v7370_v14 = vld [vmem:[#allocation184_spill] sm:$0xff]  ;;  %v2537_v39 = vmax.bf16 %v6271_v63, %v1833_v43  ;;  %v2408_v37 = vshrl.u32 %v6296_v22, 16 }
 0x207   : > { %v7371_v53 = vld [vmem:[#allocation65_spill] sm:$0xff]  ;;  %v3788_v2 = vld [vmem:[%s4801_s28 + $0x4a] sm:$0x3]  ;;  %v3789_v33 = vld [vmem:[%s4801_s28 + $0x48] sm:$0x3]  ;;  %v2536_v47 = vmax.bf16 %v6273_v45, %v1832_v31  ;;  %v2244_v31 = vrot.slane %v2243_v35, 4 }
 0x208   : > { %v1835_v46 = vmax.bf16 %v3786_v6, %v7369_v13  ;;  %v7372_v32 = vmax.bf16 %v7370_v14, %v7371_v53  ;;  %v2599_v18 = vmax.bf16 %v3788_v2, %v2535_v7  ;;  %v2598_v19 = vmax.bf16 %v3789_v33, %v2534_v1  ;;  %v487_v51 = vld [vmem:[%s5792_s5 + $0x4a] sm:$0x3]  ;;  %v486_v40 = vld [vmem:[%s5792_s5 + $0x48] sm:$0x3]  ;;  %v3211_v7 = vpop.permute.xlu0 %3210  ;;  %v7373_v8 = vld [vmem:[#allocation194_spill] sm:$0xff]  ;;  %v3217_v2 = vpop.permute.xlu1 %3216 }
 0x209   : > { %v7374_v16 = vld [vmem:[#allocation195_spill] sm:$0xff]  ;;  %v7375_v1 = vld [vmem:[#allocation76_spill] sm:$0xff]  ;;  %v7376_v41 = vld [vmem:[#allocation77_spill] sm:$0xff]  ;;  %3494 = vst.msk [vmem:[%s5826_s8 + $0x46] sm:$0x3] %vm3458_vm0, %v3429_v9  ;;  %v2253_v43 = vrot.slane %v2252_v12, 4 }
 0x20a   : > { %v1834_v3 = vmax.bf16 %v3787_v42, %v7372_v32  ;;  %v2270_v29 = vor.u32 %v7374_v16, %v7373_v8  ;;  %v2261_v27 = vor.u32 %v7376_v41, %v7375_v1  ;;  %v6324_v63 = vld [vmem:[%s4748_s24 + $0xf0] sm:$0x7]  ;;  %3493 = vst.msk [vmem:[%s5826_s8 + $0x44] sm:$0x3] %vm3458_vm0, %v3428_v5  ;;  %v3367_v11 = vmax.bf16 %v3213_v48, %v2599_v18  ;;  %v3790_v55 = vld [vmem:[%s4748_s24 + $0xac] sm:$0x7] }
 0x20b   : > { %v3366_v45 = vmax.bf16 %v3211_v7, %v2598_v19  ;;  %v7377_v54 = vld [vmem:[#allocation188_spill] sm:$0xff]  ;;  %v7378_v25 = vld [vmem:[#allocation2_spill] sm:$0xff]  ;;  %v3791_v15 = vld [vmem:[%s4748_s24 + $0xa8] sm:$0x7]  ;;  %v2539_v4 = vmax.bf16 %v2235_v59, %v1835_v46  ;;  %v2411_v14 = vshll.u32 %v6296_v22, 16  ;;  %v2399_v53 = vshrl.u32 %v6324_v63, 16 }
 0x20c   : > { %v7379_v50 = vmax.bf16 %v7377_v54, %v7378_v25  ;;  %v7380_v17 = vld [vmem:[#allocation189_spill] sm:$0xff]  ;;  %v7381_v58 = vld [vmem:[#allocation3_spill] sm:$0xff]  ;;  %v2538_v6 = vmax.bf16 %v2226_v21, %v1834_v3  ;;  %v3431_v62 = vmax.bf16 %v3367_v11, %v487_v51  ;;  %v3215_v59 = vpop.permute.xlu0 %3214  ;;  %v7384_v21 = vld [vmem:[#allocation78_spill] sm:$0xff]  ;;  %v6354_v51 = vrot.slane %v2261_v27, 4 }
 0x20d   : > { %v7382_v57 = vmax.bf16 %v7380_v17, %v7381_v58  ;;  %v3430_v20 = vmax.bf16 %v3366_v45, %v486_v40  ;;  %v3792_v12 = vld [vmem:[%s4801_s28 + $0x4e] sm:$0x3]  ;;  %v3793_v35 = vld [vmem:[%s4801_s28 + $0x4c] sm:$0x3]  ;;  %v7386_v19 = vld [vmem:[#allocation52_spill] sm:$0xff] }
 0x20e   : > { %v1837_v23 = vmax.bf16 %v3790_v55, %v7379_v50  ;;  %v2601_v13 = vmax.bf16 %v3792_v12, %v2537_v39  ;;  %v2600_v42 = vmax.bf16 %v3793_v35, %v2536_v47  ;;  %v489_v32 = vld [vmem:[%s5792_s5 + $0x4e] sm:$0x3]  ;;  %v488_v18 = vld [vmem:[%s5792_s5 + $0x4c] sm:$0x3]  ;;  %3496 = vst.msk [vmem:[%s5826_s8 + $0x4a] sm:$0x3] %vm3458_vm0, %v3431_v62 }
 0x20f   : > { %v1836_v0 = vmax.bf16 %v3791_v15, %v7382_v57  ;;  %v7383_v46 = vld [vmem:[#allocation43_spill] sm:$0xff]  ;;  %3495 = vst.msk [vmem:[%s5826_s8 + $0x48] sm:$0x3] %vm3458_vm0, %v3430_v20  ;;  %v6352_v47 = vrot.slane %v2270_v29, 4  ;;  %v3794_v48 = vld [vmem:[%s4801_s28 + $0x52] sm:$0x3] }
 0x210   : > { %v2288_v3 = vor.u32 %v7384_v21, %v7383_v46  ;;  %v7385_v33 = vld [vmem:[#allocation79_spill] sm:$0xff]  ;;  %v3369_v5 = vmax.bf16 %v3217_v2, %v2601_v13  ;;  %v3368_v39 = vmax.bf16 %v3215_v59, %v2600_v42  ;;  %v2603_v40 = vmax.bf16 %v3794_v48, %v2539_v4  ;;  %v3795_v7 = vld [vmem:[%s4801_s28 + $0x50] sm:$0x3]  ;;  %v3796_v41 = vld [vmem:[%s4748_s24 + $0xb4] sm:$0x7]  ;;  %v3219_v4 = vpop.permute.xlu0 %3218 }
 0x211   : > { %v2279_v9 = vor.u32 %v7386_v19, %v7385_v33  ;;  %v2602_v8 = vmax.bf16 %v3795_v7, %v2538_v6  ;;  %v2541_v16 = vmax.bf16 %v2253_v43, %v1837_v23  ;;  %v2540_v1 = vmax.bf16 %v2244_v31, %v1836_v0  ;;  %v7387_v11 = vld [vmem:[#allocation191_spill] sm:$0xff]  ;;  %v7388_v45 = vld [vmem:[#allocation4_spill] sm:$0xff]  ;;  %v7391_v50 = vld [vmem:[#allocation5_spill] sm:$0xff]  ;;  %v3221_v23 = vpop.permute.xlu1 %3220 }
 0x212   : > { %v7389_v55 = vmax.bf16 %v7387_v11, %v7388_v45  ;;  %v3797_v25 = vld [vmem:[%s4748_s24 + $0xb0] sm:$0x7]  ;;  %v3433_v17 = vmax.bf16 %v3369_v5, %v489_v32  ;;  %v3432_v58 = vmax.bf16 %v3368_v39, %v488_v18  ;;  %v6366_v57 = vrot.slane %v2408_v37, 4  ;;  %v7394_v62 = vld [vmem:[#allocation81_spill] sm:$0xff]  ;;  %v7395_v12 = vld [vmem:[#allocation46_spill] sm:$0xff] }
 0x213   : > { %v7390_v29 = vld [vmem:[#allocation192_spill] sm:$0xff]  ;;  %v2402_v43 = vshll.u32 %v6324_v63, 16  ;;  %v7396_v13 = vld [vmem:[#allocation13_spill] sm:$0xff]  ;;  %v3371_v37 = vmax.bf16 %v3221_v23, %v2603_v40  ;;  %v3370_v42 = vmax.bf16 %v3219_v4, %v2602_v8  ;;  %v2289_v32 = vrot.slane %v2288_v3, 4  ;;  %v7398_v46 = vld [vmem:[#allocation6_spill] sm:$0xff] }
 0x214   : > { %v1839_v54 = vmax.bf16 %v3796_v41, %v7389_v55  ;;  %v7392_v15 = vmax.bf16 %v7390_v29, %v7391_v50  ;;  %v491_v31 = vld [vmem:[%s5792_s5 + $0x52] sm:$0x3]  ;;  %v490_v0 = vld [vmem:[%s5792_s5 + $0x50] sm:$0x3]  ;;  %v2297_v35 = vor.u32 %v7396_v13, %v7395_v12  ;;  %3498 = vst.msk [vmem:[%s5826_s8 + $0x4e] sm:$0x3] %vm3458_vm0, %v3433_v17 }
 0x215   : > { %v7393_v6 = vld [vmem:[#allocation80_spill] sm:$0xff]  ;;  %3497 = vst.msk [vmem:[%s5826_s8 + $0x4c] sm:$0x3] %vm3458_vm0, %v3432_v58  ;;  %v2280_v2 = vrot.slane %v2279_v9, 4  ;;  %v3798_v18 = vld [vmem:[%s4748_s24 + $0xbc] sm:$0x7]  ;;  %v3435_v8 = vmax.bf16 %v3371_v37, %v491_v31  ;;  %v3434_v9 = vmax.bf16 %v3370_v42, %v490_v0 }
 0x216   : > { %v1838_v27 = vmax.bf16 %v3797_v25, %v7392_v15  ;;  %v2306_v20 = vor.u32 %v7394_v62, %v7393_v6  ;;  %v7397_v59 = vld [vmem:[#allocation196_spill] sm:$0xff]  ;;  %v3799_v19 = vld [vmem:[%s4748_s24 + $0xb8] sm:$0x7]  ;;  %v7401_v39 = vld [vmem:[#allocation7_spill] sm:$0xff]  ;;  %v2543_v45 = vmax.bf16 %v6352_v47, %v1839_v54  ;;  %v6391_v25 = vrot.slane %v2411_v14, 5  ;;  %v3225_v15 = vpop.permute.xlu1 %3224 }
 0x217   : > { %v7399_v21 = vmax.bf16 %v7397_v59, %v7398_v46  ;;  %v7400_v5 = vld [vmem:[#allocation197_spill] sm:$0xff]  ;;  %v3800_v41 = vld [vmem:[%s4801_s28 + $0x56] sm:$0x3]  ;;  %v3801_v40 = vld [vmem:[%s4801_s28 + $0x54] sm:$0x3]  ;;  %v6393_v29 = vrot.slane %v2399_v53, 4 }
 0x218   : > { %v7402_v48 = vmax.bf16 %v7400_v5, %v7401_v39  ;;  %v2605_v11 = vmax.bf16 %v3800_v41, %v2541_v16  ;;  %v2604_v3 = vmax.bf16 %v3801_v40, %v2540_v1  ;;  %v2542_v55 = vmax.bf16 %v6354_v51, %v1838_v27  ;;  %v493_v50 = vld [vmem:[%s5792_s5 + $0x56] sm:$0x3]  ;;  %v492_v17 = vld [vmem:[%s5792_s5 + $0x54] sm:$0x3]  ;;  %v3223_v16 = vpop.permute.xlu0 %3222  ;;  %v7403_v58 = vld [vmem:[#allocation82_spill] sm:$0xff] }
 0x219   : > { %v1841_v33 = vmax.bf16 %v3798_v18, %v7399_v21  ;;  %v7404_v23 = vld [vmem:[#allocation47_spill] sm:$0xff]  ;;  %v7405_v1 = vld [vmem:[#allocation85_spill] sm:$0xff]  ;;  %v7406_v31 = vld [vmem:[#allocation54_spill] sm:$0xff]  ;;  %3500 = vst.msk [vmem:[%s5826_s8 + $0x52] sm:$0x3] %vm3458_vm0, %v3435_v8  ;;  %v2307_v51 = vrot.slane %v2306_v20, 4 }
 0x21a   : > { %v1840_v7 = vmax.bf16 %v3799_v19, %v7402_v48  ;;  %v2324_v4 = vor.u32 %v7404_v23, %v7403_v58  ;;  %v2315_v0 = vor.u32 %v7406_v31, %v7405_v1  ;;  %v6402_v47 = vld [vmem:[%s4748_s24 + $0xfc] sm:$0x7]  ;;  %3499 = vst.msk [vmem:[%s5826_s8 + $0x50] sm:$0x3] %vm3458_vm0, %v3434_v9  ;;  %v3373_v14 = vmax.bf16 %v3225_v15, %v2605_v11  ;;  %v3802_v27 = vld [vmem:[%s4748_s24 + $0xc4] sm:$0x7]  ;;  %v3229_v8 = vpop.permute.xlu1 %3228 }
 0x21b   : > { %v3372_v53 = vmax.bf16 %v3223_v16, %v2604_v3  ;;  %v2298_v54 = vrot.slane %v2297_v35, 4  ;;  %v7407_v6 = vld [vmem:[#allocation198_spill] sm:$0xff]  ;;  %v7408_v62 = vld [vmem:[#allocation8_spill] sm:$0xff]  ;;  %v7410_v42 = vld [vmem:[#allocation199_spill] sm:$0xff]  ;;  %v2545_v21 = vmax.bf16 %v2289_v32, %v1841_v33  ;;  %v6418_v11 = vrot.slane %v2402_v43, 5 }
 0x21c   : > { %v7409_v12 = vmax.bf16 %v7407_v6, %v7408_v62  ;;  %v3803_v37 = vld [vmem:[%s4748_s24 + $0xc0] sm:$0x7]  ;;  %v7411_v18 = vld [vmem:[#allocation9_spill] sm:$0xff]  ;;  %v2544_v19 = vmax.bf16 %v2280_v2, %v1840_v7  ;;  %v3437_v5 = vmax.bf16 %v3373_v14, %v493_v50  ;;  %v2426_v40 = vshrl.u32 %v6402_v47, 16  ;;  %v3227_v32 = vpop.permute.xlu0 %3226  ;;  %v7413_v33 = vld [vmem:[#allocation204_spill] sm:$0xff] }
 0x21d   : > { %v7412_v59 = vmax.bf16 %v7410_v42, %v7411_v18  ;;  %v3436_v20 = vmax.bf16 %v3372_v53, %v492_v17  ;;  %v3804_v39 = vld [vmem:[%s4801_s28 + $0x5a] sm:$0x3]  ;;  %v3805_v48 = vld [vmem:[%s4801_s28 + $0x58] sm:$0x3]  ;;  %v7415_v50 = vld [vmem:[#allocation90_spill] sm:$0xff]  ;;  %v6434_v16 = vrot.slane %v2324_v4, 4 }
 0x21e   : > { %v1843_v13 = vmax.bf16 %v3802_v27, %v7409_v12  ;;  %v2607_v35 = vmax.bf16 %v3804_v39, %v2543_v45  ;;  %v2606_v41 = vmax.bf16 %v3805_v48, %v2542_v55  ;;  %v495_v3 = vld [vmem:[%s5792_s5 + $0x5a] sm:$0x3]  ;;  %v494_v9 = vld [vmem:[%s5792_s5 + $0x58] sm:$0x3]  ;;  %3502 = vst.msk [vmem:[%s5826_s8 + $0x56] sm:$0x3] %vm3458_vm0, %v3437_v5 }
 0x21f   : > { %v1842_v46 = vmax.bf16 %v3803_v37, %v7412_v59  ;;  %v7414_v2 = vld [vmem:[#allocation89_spill] sm:$0xff]  ;;  %3501 = vst.msk [vmem:[%s5826_s8 + $0x54] sm:$0x3] %vm3458_vm0, %v3436_v20  ;;  %v6436_v58 = vrot.slane %v2315_v0, 4  ;;  %v3808_v6 = vld [vmem:[%s4748_s24 + $0xcc] sm:$0x7] }
 0x220   : > { %v2342_v7 = vor.u32 %v7414_v2, %v7413_v33  ;;  %v7416_v15 = vld [vmem:[#allocation205_spill] sm:$0xff]  ;;  %v3375_v43 = vmax.bf16 %v3229_v8, %v2607_v35  ;;  %v3374_v55 = vmax.bf16 %v3227_v32, %v2606_v41  ;;  %v2547_v53 = vmax.bf16 %v2307_v51, %v1843_v13  ;;  %v7417_v62 = vld [vmem:[#allocation200_spill] sm:$0xff]  ;;  %v7418_v12 = vld [vmem:[#allocation10_spill] sm:$0xff]  ;;  %v3233_v13 = vpop.permute.xlu1 %3232 }
 0x221   : > { %v2333_v17 = vor.u32 %v7416_v15, %v7415_v50  ;;  %v6428_v45 = vld [vmem:[%s4748_s24 + $0xf8] sm:$0x7]  ;;  %v3806_v23 = vld [vmem:[%s4801_s28 + $0x5e] sm:$0x3]  ;;  %v3807_v31 = vld [vmem:[%s4801_s28 + $0x5c] sm:$0x3]  ;;  %v2546_v27 = vmax.bf16 %v2298_v54, %v1842_v46  ;;  %v7419_v37 = vmax.bf16 %v7417_v62, %v7418_v12 }
 0x222   : > { %v2609_v1 = vmax.bf16 %v3806_v23, %v2545_v21  ;;  %v2608_v14 = vmax.bf16 %v3807_v31, %v2544_v19  ;;  %v3809_v18 = vld [vmem:[%s4748_s24 + $0xc8] sm:$0x7]  ;;  %v7420_v4 = vld [vmem:[#allocation201_spill] sm:$0xff]  ;;  %v3439_v20 = vmax.bf16 %v3375_v43, %v495_v3  ;;  %v3438_v39 = vmax.bf16 %v3374_v55, %v494_v9  ;;  %v3231_v19 = vpop.permute.xlu0 %3230  ;;  %v7424_v41 = vld [vmem:[#allocation94_spill] sm:$0xff] }
 0x223   : > { %v1845_v42 = vmax.bf16 %v3808_v6, %v7419_v37  ;;  %v7421_v59 = vld [vmem:[#allocation11_spill] sm:$0xff]  ;;  %v2429_v21 = vshll.u32 %v6402_v47, 16  ;;  %v2417_v51 = vshrl.u32 %v6428_v45, 16  ;;  %v497_v54 = vld [vmem:[%s5792_s5 + $0x5e] sm:$0x3]  ;;  %v2351_v8 = vor.u32 %v5765_v26, %v7424_v41  ;;  %v7429_v31 = vld [vmem:[#allocation12_spill] sm:$0xff] }
 0x224   : > { %v7422_v5 = vmax.bf16 %v7420_v4, %v7421_v59  ;;  %v496_v46 = vld [vmem:[%s5792_s5 + $0x5c] sm:$0x3]  ;;  %3504 = vst.msk [vmem:[%s5826_s8 + $0x5a] sm:$0x3] %vm3458_vm0, %v3439_v20  ;;  %3503 = vst.msk [vmem:[%s5826_s8 + $0x58] sm:$0x3] %vm3458_vm0, %v3438_v39  ;;  %v3377_v3 = vmax.bf16 %v3233_v13, %v2609_v1  ;;  %v3376_v9 = vmax.bf16 %v3231_v19, %v2608_v14  ;;  %v3237_v20 = vpop.permute.xlu1 %3236 }
 0x225   : > { %v7423_v35 = vld [vmem:[#allocation21_spill] sm:$0xff]  ;;  %v2343_v32 = vrot.slane %v2342_v7, 4  ;;  %v2334_v33 = vrot.slane %v2333_v17, 4  ;;  %v3810_v2 = vld [vmem:[%s4748_s24 + $0xd4] sm:$0x7]  ;;  %v7425_v50 = vld [vmem:[#allocation83_spill] sm:$0xff]  ;;  %v2549_v17 = vmax.bf16 %v6434_v16, %v1845_v42 }
 0x226   : > { %v1844_v0 = vmax.bf16 %v3809_v18, %v7422_v5  ;;  %v2360_v48 = vor.u32 %v5729_v61, %v7423_v35  ;;  %v7426_v15 = vld [vmem:[#allocation53_spill] sm:$0xff]  ;;  %v3811_v23 = vld [vmem:[%s4748_s24 + $0xd0] sm:$0x7]  ;;  %v7428_v61 = vld [vmem:[#allocation202_spill] sm:$0xff]  ;;  %v3441_v7 = vmax.bf16 %v3377_v3, %v497_v54  ;;  %v3440_v37 = vmax.bf16 %v3376_v9, %v496_v46  ;;  %v3235_v13 = vpop.permute.xlu0 %3234 }
 0x227   : > { %v7427_v43 = vmax.bf16 %v7425_v50, %v7426_v15  ;;  %v7430_v6 = vmax.bf16 %v7428_v61, %v7429_v31  ;;  %v3812_v62 = vld [vmem:[%s4801_s28 + $0x62] sm:$0x3]  ;;  %v3813_v1 = vld [vmem:[%s4801_s28 + $0x60] sm:$0x3]  ;;  %v6472_v4 = vrot.slane %v2426_v40, 4  ;;  %v2420_v59 = vshll.u32 %v6428_v45, 16 }
 0x228   : > { %v2611_v12 = vmax.bf16 %v3812_v62, %v2547_v53  ;;  %v2610_v14 = vmax.bf16 %v3813_v1, %v2546_v27  ;;  %v2548_v18 = vmax.bf16 %v6436_v58, %v1844_v0  ;;  %v499_v5 = vld [vmem:[%s5792_s5 + $0x62] sm:$0x3]  ;;  %v498_v39 = vld [vmem:[%s5792_s5 + $0x60] sm:$0x3]  ;;  %v2378_v53 = vor.u32 %v6176_v56, %v6151_v60  ;;  %3506 = vst.msk [vmem:[%s5826_s8 + $0x5e] sm:$0x3] %vm3458_vm0, %v3441_v7 }
 0x229   : > { %v1847_v55 = vmax.bf16 %v3810_v2, %v7427_v43  ;;  %v1846_v26 = vmax.bf16 %v3811_v23, %v7430_v6  ;;  %v2369_v27 = vor.u32 %v6208_v44, %v6178_v36  ;;  %3505 = vst.msk [vmem:[%s5826_s8 + $0x5c] sm:$0x3] %vm3458_vm0, %v3440_v37  ;;  %v2361_v58 = vrot.slane %v2360_v48, 4  ;;  %v3814_v0 = vld [vmem:[%s4748_s24 + $0xdc] sm:$0x7]  ;;  %v7431_v54 = vld [vmem:[#allocation86_spill] sm:$0xff]  ;;  %v3241_v6 = vpop.permute.xlu1 %3240 }
 0x22a   : > { %v3379_v40 = vmax.bf16 %v3237_v20, %v2611_v12  ;;  %v3378_v16 = vmax.bf16 %v3235_v13, %v2610_v14  ;;  %v2352_v42 = vrot.slane %v2351_v8, 4  ;;  %v7432_v46 = vld [vmem:[#allocation14_spill] sm:$0xff]  ;;  %v3815_v56 = vld [vmem:[%s4748_s24 + $0xd8] sm:$0x7]  ;;  %v7434_v35 = vld [vmem:[#allocation203_spill] sm:$0xff]  ;;  %v6495_v23 = vrot.slane %v2429_v21, 5 }
 0x22b   : > { %v7433_v19 = vmax.bf16 %v7431_v54, %v7432_v46  ;;  %v7435_v41 = vld [vmem:[#allocation15_spill] sm:$0xff]  ;;  %v2551_v3 = vmax.bf16 %v2343_v32, %v1847_v55  ;;  %v2550_v9 = vmax.bf16 %v2334_v33, %v1846_v26  ;;  %v3816_v48 = vld [vmem:[%s4801_s28 + $0x66] sm:$0x3]  ;;  %v3817_v8 = vld [vmem:[%s4801_s28 + $0x64] sm:$0x3]  ;;  %v6497_v61 = vrot.slane %v2417_v51, 4  ;;  %v3239_v32 = vpop.permute.xlu0 %3238 }
 0x22c   : > { %v7436_v36 = vmax.bf16 %v7434_v35, %v7435_v41  ;;  %v3443_v2 = vmax.bf16 %v3379_v40, %v499_v5  ;;  %v3442_v50 = vmax.bf16 %v3378_v16, %v498_v39  ;;  %v2613_v15 = vmax.bf16 %v3816_v48, %v2549_v17  ;;  %v501_v31 = vld [vmem:[%s5792_s5 + $0x66] sm:$0x3]  ;;  %v500_v62 = vld [vmem:[%s5792_s5 + $0x64] sm:$0x3]  ;;  %v3818_v1 = vld [vmem:[%s4801_s28 + $0x6a] sm:$0x3] }
 0x22d   : > { %v1849_v60 = vmax.bf16 %v3814_v0, %v7433_v19  ;;  %v2612_v43 = vmax.bf16 %v3817_v8, %v2548_v18  ;;  %v2396_v33 = vor.u32 %v6285_v49, %v6258_v34  ;;  %v2387_v55 = vor.u32 %v6314_v28, %v6287_v24  ;;  %v3819_v7 = vld [vmem:[%s4801_s28 + $0x68] sm:$0x3]  ;;  %v3820_v17 = vld [vmem:[%s4748_s24 + $0xe4] sm:$0x7]  ;;  %v7438_v28 = vld [vmem:[#allocation16_spill] sm:$0xff]  ;;  %v3245_v54 = vpop.permute.xlu1 %3244 }
 0x22e   : > { %v1848_v44 = vmax.bf16 %v3815_v56, %v7436_v36  ;;  %3508 = vst.msk [vmem:[%s5826_s8 + $0x62] sm:$0x3] %vm3458_vm0, %v3443_v2  ;;  %3507 = vst.msk [vmem:[%s5826_s8 + $0x60] sm:$0x3] %vm3458_vm0, %v3442_v50  ;;  %v3381_v21 = vmax.bf16 %v3241_v6, %v2613_v15  ;;  %v2379_v51 = vrot.slane %v2378_v53, 4  ;;  %v2370_v12 = vrot.slane %v2369_v27, 4 }
 0x22f   : > { %v3380_v26 = vmax.bf16 %v3239_v32, %v2612_v43  ;;  %v2615_v14 = vmax.bf16 %v3818_v1, %v2551_v3  ;;  %v2614_v37 = vmax.bf16 %v3819_v7, %v2550_v9  ;;  %v2553_v34 = vmax.bf16 %v2361_v58, %v1849_v60  ;;  %v7437_v24 = vld [vmem:[#allocation206_spill] sm:$0xff]  ;;  %v7440_v20 = vld [vmem:[#allocation207_spill] sm:$0xff]  ;;  %v7441_v39 = vld [vmem:[#allocation17_spill] sm:$0xff]  ;;  %v3243_v58 = vpop.permute.xlu0 %3242 }
 0x230   : > { %v2552_v49 = vmax.bf16 %v2352_v42, %v1848_v44  ;;  %v7439_v18 = vmax.bf16 %v7437_v24, %v7438_v28  ;;  %v7442_v13 = vmax.bf16 %v7440_v20, %v7441_v39  ;;  %v3445_v40 = vmax.bf16 %v3381_v21, %v501_v31  ;;  %v503_v0 = vld [vmem:[%s5792_s5 + $0x6a] sm:$0x3]  ;;  %v502_v46 = vld [vmem:[%s5792_s5 + $0x68] sm:$0x3]  ;;  %v7444_v41 = vld [vmem:[#allocation20_spill] sm:$0xff] }
 0x231   : > { %v3444_v27 = vmax.bf16 %v3380_v26, %v500_v62  ;;  %v2422_v16 = vrot.slane %v2420_v59, 5  ;;  %v2397_v42 = vrot.slane %v2396_v33, 4  ;;  %v2414_v19 = vor.u32 %v6391_v25, %v6366_v57  ;;  %v7443_v35 = vld [vmem:[#allocation91_spill] sm:$0xff]  ;;  %v7447_v57 = vld [vmem:[#allocation84_spill] sm:$0xff]  ;;  %v3249_v6 = vpop.permute.xlu1 %3248 }
 0x232   : > { %v1851_v5 = vmax.bf16 %v3820_v17, %v7439_v18  ;;  %v1850_v53 = vmax.bf16 %v7442_v13, %v6115_v52  ;;  %3510 = vst.msk [vmem:[%s5826_s8 + $0x66] sm:$0x3] %vm3458_vm0, %v3445_v40  ;;  %v3383_v60 = vmax.bf16 %v3245_v54, %v2615_v14  ;;  %v3382_v52 = vmax.bf16 %v3243_v58, %v2614_v37  ;;  %v7446_v3 = vld [vmem:[#allocation27_spill] sm:$0xff]  ;;  %v3823_v24 = vld [vmem:[%s4801_s28 + $0x72] sm:$0x3] }
 0x233   : > { %3509 = vst.msk [vmem:[%s5826_s8 + $0x64] sm:$0x3] %vm3458_vm0, %v3444_v27  ;;  %v2388_v56 = vrot.slane %v2387_v55, 4  ;;  %v2405_v59 = vor.u32 %v6418_v11, %v6393_v29  ;;  %v7445_v36 = vmax.bf16 %v7443_v35, %v7444_v41  ;;  %v7448_v25 = vmax.bf16 %v7446_v3, %v7447_v57  ;;  %v3821_v2 = vld [vmem:[%s4801_s28 + $0x6e] sm:$0x3]  ;;  %v7454_v58 = vld [vmem:[#allocation88_spill] sm:$0xff] }
 0x234   : > { %v2617_v50 = vmax.bf16 %v3821_v2, %v2553_v34  ;;  %v3822_v48 = vld [vmem:[%s4801_s28 + $0x6c] sm:$0x3]  ;;  %v3447_v8 = vmax.bf16 %v3383_v60, %v503_v0  ;;  %v3446_v43 = vmax.bf16 %v3382_v52, %v502_v46  ;;  %v2555_v31 = vmax.bf16 %v2379_v51, %v1851_v5  ;;  %v505_v11 = vld [vmem:[%s5792_s5 + $0x6e] sm:$0x3]  ;;  %v7449_v51 = vld [vmem:[#allocation92_spill] sm:$0xff] }
 0x235   : > { %v1853_v44 = vmax.bf16 %v7445_v36, %v6187_v10  ;;  %v1852_v9 = vmax.bf16 %v7448_v25, %v6218_v30  ;;  %v2616_v15 = vmax.bf16 %v3822_v48, %v2552_v49  ;;  %v2554_v29 = vmax.bf16 %v2370_v12, %v1850_v53  ;;  %v504_v62 = vld [vmem:[%s5792_s5 + $0x6c] sm:$0x3]  ;;  %v3247_v10 = vpop.permute.xlu0 %3246  ;;  %v507_v5 = vld [vmem:[%s5792_s5 + $0x72] sm:$0x3]  ;;  %v3253_v20 = vpop.permute.xlu1 %3252  ;;  %v3825_v40 = vld [vmem:[%s4801_s28 + $0x76] sm:$0x3] }
 0x236   : > { %v2415_v32 = vrot.slane %v2414_v19, 4  ;;  %v2432_v33 = vor.u32 %v6495_v23, %v6472_v4  ;;  %3512 = vst.msk [vmem:[%s5826_s8 + $0x6a] sm:$0x3] %vm3458_vm0, %v3447_v8  ;;  %3511 = vst.msk [vmem:[%s5826_s8 + $0x68] sm:$0x3] %vm3458_vm0, %v3446_v43  ;;  %v3385_v30 = vmax.bf16 %v3249_v6, %v2617_v50  ;;  %v2406_v21 = vrot.slane %v2405_v59, 4 }
 0x237   : > { %v3384_v55 = vmax.bf16 %v3247_v10, %v2616_v15  ;;  %v2423_v26 = vor.u32 %v2422_v16, %v6497_v61  ;;  %v7450_v12 = vmax.bf16 %v5733_v38, %v7449_v51  ;;  %v7451_v4 = vld [vmem:[#allocation87_spill] sm:$0xff]  ;;  %v7452_v23 = vld [vmem:[#allocation93_spill] sm:$0xff]  ;;  %v2557_v37 = vmax.bf16 %v2397_v42, %v1853_v44  ;;  %v3824_v61 = vld [vmem:[%s4801_s28 + $0x70] sm:$0x3] }
 0x238   : > { %v7453_v14 = vmax.bf16 %v7451_v4, %v7452_v23  ;;  %v2556_v34 = vmax.bf16 %v2388_v56, %v1852_v9  ;;  %v3449_v49 = vmax.bf16 %v3385_v30, %v505_v11  ;;  %v2619_v28 = vmax.bf16 %v3823_v24, %v2555_v31  ;;  %v506_v38 = vld [vmem:[%s5792_s5 + $0x70] sm:$0x3]  ;;  %v3826_v16 = vld [vmem:[%s4801_s28 + $0x74] sm:$0x3]  ;;  %v7457_v52 = vld [vmem:[#allocation97_spill] sm:$0xff] }
 0x239   : > { %v1855_v1 = vmax.bf16 %v7450_v12, %v6296_v22  ;;  %v3448_v17 = vmax.bf16 %v3384_v55, %v504_v62  ;;  %v2618_v18 = vmax.bf16 %v3824_v61, %v2554_v29  ;;  %v3251_v39 = vpop.permute.xlu0 %3250  ;;  %v2433_v13 = vrot.slane %v2432_v33, 4  ;;  %v7455_v42 = vld [vmem:[#allocation100_spill] sm:$0xff]  ;;  %v7458_v56 = vld [vmem:[#allocation99_spill] sm:$0xff]  ;;  %v3257_v3 = vpop.permute.xlu1 %3256  ;;  %v3827_v2 = vld [vmem:[%s4801_s28 + $0x7a] sm:$0x3] }
 0x23a   : > { %v1854_v7 = vmax.bf16 %v7453_v14, %v6324_v63  ;;  %3514 = vst.msk [vmem:[%s5826_s8 + $0x6e] sm:$0x3] %vm3458_vm0, %v3449_v49  ;;  %v3387_v22 = vmax.bf16 %v3253_v20, %v2619_v28  ;;  %v2424_v53 = vrot.slane %v2423_v26, 4  ;;  %v2621_v27 = vmax.bf16 %v3825_v40, %v2557_v37  ;;  %v509_v44 = vld [vmem:[%s5792_s5 + $0x76] sm:$0x3] }
 0x23b   : > { %3513 = vst.msk [vmem:[%s5826_s8 + $0x6c] sm:$0x3] %vm3458_vm0, %v3448_v17  ;;  %v3386_v63 = vmax.bf16 %v3251_v39, %v2618_v18  ;;  %v2620_v0 = vmax.bf16 %v3826_v16, %v2556_v34  ;;  %v2559_v54 = vmax.bf16 %v2415_v32, %v1855_v1  ;;  %v7456_v19 = vmax.bf16 %v7454_v58, %v7455_v42  ;;  %v508_v57 = vld [vmem:[%s5792_s5 + $0x74] sm:$0x3]  ;;  %v3828_v48 = vld [vmem:[%s4801_s28 + $0x78] sm:$0x3] }
 0x23c   : > { %v2558_v46 = vmax.bf16 %v2406_v21, %v1854_v7  ;;  %v7459_v59 = vmax.bf16 %v7457_v52, %v7458_v56  ;;  %v3451_v41 = vmax.bf16 %v3387_v22, %v507_v5  ;;  %v511_v29 = vld [vmem:[%s5792_s5 + $0x7a] sm:$0x3]  ;;  %v510_v6 = vld [vmem:[%s5792_s5 + $0x78] sm:$0x3]  ;;  %v3829_v55 = vld [vmem:[%s4801_s28 + $0x7e] sm:$0x3] }
 0x23d   : > { %v1857_v60 = vmax.bf16 %v7456_v19, %v6402_v47  ;;  %v3450_v36 = vmax.bf16 %v3386_v63, %v506_v38  ;;  %v3255_v25 = vpop.permute.xlu0 %3254  ;;  %v3389_v47 = vmax.bf16 %v3257_v3, %v2621_v27  ;;  %v2623_v50 = vmax.bf16 %v3827_v2, %v2559_v54  ;;  %v3261_v11 = vpop.permute.xlu1 %3260  ;;  %v3830_v26 = vld [vmem:[%s4801_s28 + $0x7c] sm:$0x3]  ;;  %v513_v12 = vld [vmem:[%s5792_s5 + $0x7e] sm:$0x3] }
 0x23e   : > { %v1856_v35 = vmax.bf16 %v7459_v59, %v6428_v45  ;;  %3516 = vst.msk [vmem:[%s5826_s8 + $0x72] sm:$0x3] %vm3458_vm0, %v3451_v41  ;;  %v3388_v9 = vmax.bf16 %v3255_v25, %v2620_v0  ;;  %v2622_v45 = vmax.bf16 %v3828_v48, %v2558_v46  ;;  %v512_v4 = vld [vmem:[%s5792_s5 + $0x7c] sm:$0x3] }
 0x23f   : > { %3515 = vst.msk [vmem:[%s5826_s8 + $0x70] sm:$0x3] %vm3458_vm0, %v3450_v36  ;;  %v3453_v15 = vmax.bf16 %v3389_v47, %v509_v44  ;;  %v2561_v43 = vmax.bf16 %v2433_v13, %v1857_v60  ;;  %v3391_v10 = vmax.bf16 %v3261_v11, %v2623_v50 }
 0x240   : > { %v3452_v8 = vmax.bf16 %v3388_v9, %v508_v57  ;;  %v2560_v31 = vmax.bf16 %v2424_v53, %v1856_v35 }
 0x241   : > { %v3259_v62 = vpop.permute.xlu0 %3258  ;;  %3518 = vst.msk [vmem:[%s5826_s8 + $0x76] sm:$0x3] %vm3458_vm0, %v3453_v15  ;;  %v3455_v33 = vmax.bf16 %v3391_v10, %v511_v29  ;;  %v2625_v21 = vmax.bf16 %v3829_v55, %v2561_v43  ;;  %v3265_v1 = vpop.permute.xlu1 %3264 }
 0x242   : > { %3517 = vst.msk [vmem:[%s5826_s8 + $0x74] sm:$0x3] %vm3458_vm0, %v3452_v8  ;;  %v3390_v32 = vmax.bf16 %v3259_v62, %v2622_v45  ;;  %v2624_v51 = vmax.bf16 %v3830_v26, %v2560_v31 }
 0x243   : > { %3520 = vst.msk [vmem:[%s5826_s8 + $0x7a] sm:$0x3] %vm3458_vm0, %v3455_v33  ;;  %v3393_v14 = vmax.bf16 %v3265_v1, %v2625_v21 }
 0x244   : > { %v3454_v30 = vmax.bf16 %v3390_v32, %v510_v6 }
 0x245   : > { %v3263_v23 = vpop.permute.xlu0 %3262  ;;  %v3457_v37 = vmax.bf16 %v3393_v14, %v513_v12 }
 0x246   : > { %3519 = vst.msk [vmem:[%s5826_s8 + $0x78] sm:$0x3] %vm3458_vm0, %v3454_v30  ;;  %v3392_v7 = vmax.bf16 %v3263_v23, %v2624_v51 }
 0x247   : > { %3522 = vst.msk [vmem:[%s5826_s8 + $0x7e] sm:$0x3] %vm3458_vm0, %v3457_v37 }
 0x248   : > { %v3456_v34 = vmax.bf16 %v3392_v7, %v512_v4 }
 0x24a   : > { %3521 = vst.msk [vmem:[%s5826_s8 + $0x7c] sm:$0x3] %vm3458_vm0, %v3456_v34 }
 0x24b PF: > { %s14_s15 = sadd.s32 1, %s3901_s15  }
 0x24c   : > { %p11_p4 = scmp.ge.s32.totalorder %s14_s15, 4  }
 0x24e   :  { %13 = sbr.rel (!%p11_p4) target bundleno = 1 (0x1), region = 75 }

</bundles_post_ra>
